<compile_context>
chip_gen: v7x
topology: tpu7x:2x2x1
jax: 0.10.0
libtpu: 0.0.40
codegen_flags: <defaults>
</compile_context>

<pallas_src>
import functools

import jax
import jax.numpy as jnp
from jax.experimental import pallas as pl
from jax.experimental.pallas import tpu as pltpu


# ----------------------------------------------------------------------------
# In-kernel helpers (pure functions traced inside Pallas kernels)
# ----------------------------------------------------------------------------
def _layer_norm(x, gamma, beta, eps=1e-12):
    mu = jnp.mean(x, axis=-1, keepdims=True)
    var = jnp.mean(jnp.square(x - mu), axis=-1, keepdims=True)
    return (x - mu) * jax.lax.rsqrt(var + eps) * gamma + beta


def _gelu(x):
    # TODO(synk): reference pytorch_pretrained_bert GELU is erf-based; the tanh
    # approximation is used here (erf has no guaranteed Mosaic lowering).
    return 0.5 * x * (1.0 + jnp.tanh(0.7978845608028654 * (x + 0.044715 * x * x * x)))


def _mm(x, w):
    """bf16 MXU matmul with f32 accumulation."""
    return jnp.dot(x.astype(jnp.bfloat16), w.astype(jnp.bfloat16),
                   preferred_element_type=jnp.float32)


# ----------------------------------------------------------------------------
# Fused transformer layer: one pallas_call per layer, grid over batch
# ----------------------------------------------------------------------------
def _layer_kernel(x_ref, m_ref, qkv_w, qkv_b, o_w, o_b, ln1_g, ln1_b,
                  fc1_w, fc1_b, fc2_w, fc2_b, ln2_g, ln2_b, o_ref,
                  *, n_heads, scale):
    x = x_ref[0]                       # (S, H) f32
    mask = m_ref[0]                    # (1, S) additive bias
    H = x.shape[-1]
    Dh = H // n_heads

    # Fused QKV projection: one lane-dense (S, 3H) MXU matmul.
    qkv = _mm(x, qkv_w[...]) + qkv_b[...]
    q = qkv[:, :H]
    k = qkv[:, H:2 * H]
    v = qkv[:, 2 * H:]

    # Per-head masked softmax attention; heads stay packed on lanes so the
    # re-assembled context is written lane-dense (last dim = H).
    ctx_parts = []
    for h in range(n_heads):           # static unroll (small head count)
        sl = slice(h * Dh, (h + 1) * Dh)
        qh = q[:, sl].astype(jnp.bfloat16)
        kh = k[:, sl].astype(jnp.bfloat16)
        vh = v[:, sl].astype(jnp.bfloat16)
        s = jax.lax.dot_general(qh, kh, (((1,), (1,)), ((), ())),
                                preferred_element_type=jnp.float32)
        s = s * scale + mask
        s = s - jnp.max(s, axis=-1, keepdims=True)
        p = jnp.exp(s)
        p = p * pl.reciprocal(jnp.sum(p, axis=-1, keepdims=True), approx=True)
        ctx_parts.append(
            jnp.dot(p.astype(jnp.bfloat16), vh, preferred_element_type=jnp.float32))
    ctx = jnp.concatenate(ctx_parts, axis=-1)          # (S, H)

    # Attention output projection + residual + LayerNorm (fused epilogue).
    attn = _mm(ctx, o_w[...]) + o_b[...]
    x1 = _layer_norm(attn + x, ln1_g[...], ln1_b[...])

    # FFN: fc1 + GELU, fc2, residual + LayerNorm (fused epilogue).
    ff = _gelu(_mm(x1, fc1_w[...]) + fc1_b[...])
    ff = _mm(ff, fc2_w[...]) + fc2_b[...]
    o_ref[0] = _layer_norm(ff + x1, ln2_g[...], ln2_b[...])


def transformer_layer(x, mask_bias, lw, n_heads):
    B, S, H = x.shape
    inter = lw["fc1_w"].shape[1]
    scale = 1.0 / float(H // n_heads) ** 0.5
    w00 = lambda b: (0, 0)             # weights: same block every grid step
    return pl.pallas_call(
        functools.partial(_layer_kernel, n_heads=n_heads, scale=scale),
        grid=(B,),
        out_shape=jax.ShapeDtypeStruct((B, S, H), jnp.float32),
        in_specs=[
            pl.BlockSpec((1, S, H), lambda b: (b, 0, 0)),      # x
            pl.BlockSpec((1, 1, S), lambda b: (b, 0, 0)),      # mask bias
            pl.BlockSpec((H, 3 * H), w00),                     # qkv_w
            pl.BlockSpec((1, 3 * H), w00),                     # qkv_b
            pl.BlockSpec((H, H), w00),                         # o_w
            pl.BlockSpec((1, H), w00),                         # o_b
            pl.BlockSpec((1, H), w00),                         # ln1_g
            pl.BlockSpec((1, H), w00),                         # ln1_b
            pl.BlockSpec((H, inter), w00),                     # fc1_w
            pl.BlockSpec((1, inter), w00),                     # fc1_b
            pl.BlockSpec((inter, H), w00),                     # fc2_w
            pl.BlockSpec((1, H), w00),                         # fc2_b
            pl.BlockSpec((1, H), w00),                         # ln2_g
            pl.BlockSpec((1, H), w00),                         # ln2_b
        ],
        out_specs=pl.BlockSpec((1, S, H), lambda b: (b, 0, 0)),
        compiler_params=pltpu.CompilerParams(dimension_semantics=("parallel",)),
    )(x, mask_bias,
      lw["qkv_w"], lw["qkv_b"].reshape(1, -1),
      lw["o_w"], lw["o_b"].reshape(1, -1),
      lw["ln1_g"].reshape(1, -1), lw["ln1_b"].reshape(1, -1),
      lw["fc1_w"], lw["fc1_b"].reshape(1, -1),
      lw["fc2_w"], lw["fc2_b"].reshape(1, -1),
      lw["ln2_g"].reshape(1, -1), lw["ln2_b"].reshape(1, -1))


# ----------------------------------------------------------------------------
# Small fused one-shot kernels (embeddings, pooler)
# ----------------------------------------------------------------------------
def _ln_kernel(x_ref, g_ref, b_ref, o_ref):
    o_ref[...] = _layer_norm(x_ref[...], g_ref[...], b_ref[...])


def layer_norm_2d(x, gamma, beta):
    M, H = x.shape
    return pl.pallas_call(
        _ln_kernel,
        grid=(1,),
        out_shape=jax.ShapeDtypeStruct((M, H), jnp.float32),
        in_specs=[pl.BlockSpec((M, H), lambda i: (0, 0)),
                  pl.BlockSpec((1, H), lambda i: (0, 0)),
                  pl.BlockSpec((1, H), lambda i: (0, 0))],
        out_specs=pl.BlockSpec((M, H), lambda i: (0, 0)),
    )(x, gamma.reshape(1, H), beta.reshape(1, H))


def _vis_embed_kernel(f_ref, bx_ref, vw, vb, bw, bb, g_ref, be_ref, o_ref):
    vis = _mm(f_ref[...], vw[...]) + vb[...]
    loc = _mm(bx_ref[...], bw[...]) + bb[...]
    o_ref[...] = _layer_norm(vis + loc, g_ref[...], be_ref[...])


def visual_embed(feats2d, boxes2d, p):
    M, Fv = feats2d.shape
    Bd = boxes2d.shape[1]
    H = p["vis_w"].shape[1]
    return pl.pallas_call(
        _vis_embed_kernel,
        grid=(1,),
        out_shape=jax.ShapeDtypeStruct((M, H), jnp.float32),
        in_specs=[
            pl.BlockSpec((M, Fv), lambda i: (0, 0)),
            pl.BlockSpec((M, Bd), lambda i: (0, 0)),
            pl.BlockSpec((Fv, H), lambda i: (0, 0)),
            pl.BlockSpec((1, H), lambda i: (0, 0)),
            pl.BlockSpec((Bd, H), lambda i: (0, 0)),
            pl.BlockSpec((1, H), lambda i: (0, 0)),
            pl.BlockSpec((1, H), lambda i: (0, 0)),
            pl.BlockSpec((1, H), lambda i: (0, 0)),
        ],
        out_specs=pl.BlockSpec((M, H), lambda i: (0, 0)),
    )(feats2d, boxes2d, p["vis_w"], p["vis_b"].reshape(1, H),
      p["box_w"], p["box_b"].reshape(1, H),
      p["vis_ln_g"].reshape(1, H), p["vis_ln_b"].reshape(1, H))


def _dense_act_kernel(x_ref, w_ref, b_ref, o_ref, *, act):
    y = _mm(x_ref[...], w_ref[...]) + b_ref[...]
    if act == "tanh":
        y = jnp.tanh(y)
    elif act == "gelu":
        y = _gelu(y)
    o_ref[...] = y


def dense(x, w, b, act=None):
    M, K = x.shape
    N = w.shape[1]
    return pl.pallas_call(
        functools.partial(_dense_act_kernel, act=act),
        grid=(1,),
        out_shape=jax.ShapeDtypeStruct((M, N), jnp.float32),
        in_specs=[pl.BlockSpec((M, K), lambda i: (0, 0)),
                  pl.BlockSpec((K, N), lambda i: (0, 0)),
                  pl.BlockSpec((1, N), lambda i: (0, 0))],
        out_specs=pl.BlockSpec((M, N), lambda i: (0, 0)),
    )(x, w, b.reshape(1, N))


# ----------------------------------------------------------------------------
# Parameter construction (deterministic, synthetic)
# ----------------------------------------------------------------------------
def init_params(key, *, vocab, hidden, inter, n_layers, vis_dim, box_dim,
                max_pos, n_seg):
    std = 0.02
    bf16 = jnp.bfloat16

    def nrm(k, shape, dtype=jnp.float32):
        return (std * jax.random.normal(k, shape, dtype=jnp.float32)).astype(dtype)

    keys = iter(jax.random.split(key, 16 + 8 * n_layers))
    p = {
        "word_emb": nrm(next(keys), (vocab, hidden)),
        "pos_emb": nrm(next(keys), (max_pos, hidden)),
        "seg_emb": nrm(next(keys), (n_seg, hidden)),
        "txt_ln_g": jnp.ones((hidden,), jnp.float32),
        "txt_ln_b": jnp.zeros((hidden,), jnp.float32),
        "vis_w": nrm(next(keys), (vis_dim, hidden), bf16),
        "vis_b": jnp.zeros((hidden,), jnp.float32),
        "box_w": nrm(next(keys), (box_dim, hidden), bf16),
        "box_b": jnp.zeros((hidden,), jnp.float32),
        "vis_ln_g": jnp.ones((hidden,), jnp.float32),
        "vis_ln_b": jnp.zeros((hidden,), jnp.float32),
        "pool_w": nrm(next(keys), (hidden, hidden), bf16),
        "pool_b": jnp.zeros((hidden,), jnp.float32),
        "layers": [],
    }
    for _ in range(n_layers):
        p["layers"].append({
            "qkv_w": nrm(next(keys), (hidden, 3 * hidden), bf16),   # fused Q|K|V
            "qkv_b": jnp.zeros((3 * hidden,), jnp.float32),
            "o_w": nrm(next(keys), (hidden, hidden), bf16),
            "o_b": jnp.zeros((hidden,), jnp.float32),
            "ln1_g": jnp.ones((hidden,), jnp.float32),
            "ln1_b": jnp.zeros((hidden,), jnp.float32),
            "fc1_w": nrm(next(keys), (hidden, inter), bf16),
            "fc1_b": jnp.zeros((inter,), jnp.float32),
            "fc2_w": nrm(next(keys), (inter, hidden), bf16),
            "fc2_b": jnp.zeros((hidden,), jnp.float32),
            "ln2_g": jnp.ones((hidden,), jnp.float32),
            "ln2_b": jnp.zeros((hidden,), jnp.float32),
        })
    return p


# ----------------------------------------------------------------------------
# Forward pass
# ----------------------------------------------------------------------------
@functools.partial(jax.jit, static_argnames=("n_heads",))
def interbert_forward(params, input_ids, segment_ids, input_mask, feats, boxes,
                      *, n_heads):
    # TODO(synk): BertTokenizer string->id conversion (convert_sents_to_features)
    # has no kernel equivalent; pre-tokenized ids/masks are taken directly.
    B, Lt = input_ids.shape
    Lv = feats.shape[1]
    H = params["word_emb"].shape[1]

    # Text embeddings: word + position + segment (plain-JAX gathers), then LN.
    tok = jnp.take(params["word_emb"], input_ids, axis=0)           # (B, Lt, H)
    pos = params["pos_emb"][:Lt][None, :, :]                        # (1, Lt, H)
    seg = jnp.take(params["seg_emb"], segment_ids, axis=0)          # (B, Lt, H)
    txt = layer_norm_2d((tok + pos + seg).reshape(B * Lt, H),
                        params["txt_ln_g"], params["txt_ln_b"])

    # Visual embeddings: feat-proj + box-proj + LayerNorm fused in one kernel.
    vis = visual_embed(feats.reshape(B * Lv, -1), boxes.reshape(B * Lv, -1), params)

    # Concatenate streams: image tokens first, then text (mask ordering).
    x = jnp.concatenate([vis.reshape(B, Lv, H), txt.reshape(B, Lt, H)], axis=1)
    S = Lv + Lt

    image_mask = jnp.ones((B, Lv), jnp.float32)                     # ones((B, 36))
    multimodal_mask = jnp.concatenate(
        [image_mask, input_mask.astype(jnp.float32)], axis=-1)      # (B, S)
    mask_bias = ((1.0 - multimodal_mask) * -10000.0).reshape(B, 1, S)

    # Transformer layers: one fused pallas_call per layer.
    for lw in params["layers"]:
        x = transformer_layer(x, mask_bias, lw, n_heads)

    seq_out = x
    # TODO(synk): BertPooler here pools token 0 of the concatenated stream (the
    # first visual region, since image tokens are placed first); verify which
    # token the reference InterBERT pools.
    pooled = dense(seq_out[:, 0, :], params["pool_w"], params["pool_b"], act="tanh")
    return seq_out, pooled


# ----------------------------------------------------------------------------
if __name__ == "__main__":
    key = jax.random.PRNGKey(0)
    k_ids, k_feat, k_box, k_par = jax.random.split(key, 4)

    # Small shapes consistent with the module: 36 visual regions (fixed by
    # image_mask = ones((B, 36))), short text.  Hidden padded to 128 so all
    # kernel outputs are lane-dense.
    B, Lt, Lv = 2, 12, 36
    VOCAB, H, NH, INTER, LAYERS = 100, 128, 4, 512, 2
    VIS_DIM, BOX_DIM = 32, 4

    params = init_params(
        k_par, vocab=VOCAB, hidden=H, inter=INTER, n_layers=LAYERS,
        vis_dim=VIS_DIM, box_dim=BOX_DIM, max_pos=64, n_seg=2)

    input_ids = jax.random.randint(k_ids, (B, Lt), 0, VOCAB, dtype=jnp.int32)
    segment_ids = jnp.zeros((B, Lt), jnp.int32)
    # simulate padding: last 2 text tokens are padding
    input_mask = jnp.concatenate(
        [jnp.ones((B, Lt - 2), jnp.int32), jnp.zeros((B, 2), jnp.int32)], axis=-1)
    feats = jax.random.normal(k_feat, (B, Lv, VIS_DIM), dtype=jnp.float32)
    boxes = jax.random.uniform(k_box, (B, Lv, BOX_DIM), dtype=jnp.float32)

    seq_out, pooled = interbert_forward(
        params, input_ids, segment_ids, input_mask, feats, boxes, n_heads=NH)
    jax.block_until_ready((seq_out, pooled))

    assert seq_out.shape == (B, Lv + Lt, H)
    assert pooled.shape == (B, H)
    assert bool(jnp.all(jnp.isfinite(seq_out))) and bool(jnp.all(jnp.isfinite(pooled)))
    print("KERNEL_OK")
</pallas_src>

<mosaic_0001>
module attributes {stable_mosaic.version = 11 : i64} {
  func.func @_vis_embed_kernel(%arg0: i32, %arg1: memref<72x32xf32, #tpu.memory_space<vmem>>, %arg2: memref<72x4xf32, #tpu.memory_space<vmem>>, %arg3: memref<32x128xbf16, #tpu.memory_space<vmem>>, %arg4: memref<1x128xf32, #tpu.memory_space<vmem>>, %arg5: memref<4x128xbf16, #tpu.memory_space<vmem>>, %arg6: memref<1x128xf32, #tpu.memory_space<vmem>>, %arg7: memref<1x128xf32, #tpu.memory_space<vmem>>, %arg8: memref<1x128xf32, #tpu.memory_space<vmem>>, %arg9: memref<72x128xf32, #tpu.memory_space<vmem>>) attributes {dimension_semantics = [#tpu.dimension_semantics<arbitrary>], iteration_bounds = array<i64: 1>, scalar_prefetch = 0 : i64, scratch_operands = 0 : i64, tpu.core_type = #tpu.core_type<tc>, window_params = [{pipeline_mode = #tpu.pipeline_mode<synchronous>, transform_indices = @transform_0, window_bounds = array<i64: 72, 32>}, {pipeline_mode = #tpu.pipeline_mode<synchronous>, transform_indices = @transform_1, window_bounds = array<i64: 72, 4>}, {pipeline_mode = #tpu.pipeline_mode<synchronous>, transform_indices = @transform_2, window_bounds = array<i64: 32, 128>}, {pipeline_mode = #tpu.pipeline_mode<synchronous>, transform_indices = @transform_3, window_bounds = array<i64: 1, 128>}, {pipeline_mode = #tpu.pipeline_mode<synchronous>, transform_indices = @transform_4, window_bounds = array<i64: 4, 128>}, {pipeline_mode = #tpu.pipeline_mode<synchronous>, transform_indices = @transform_5, window_bounds = array<i64: 1, 128>}, {pipeline_mode = #tpu.pipeline_mode<synchronous>, transform_indices = @transform_6, window_bounds = array<i64: 1, 128>}, {pipeline_mode = #tpu.pipeline_mode<synchronous>, transform_indices = @transform_7, window_bounds = array<i64: 1, 128>}, {pipeline_mode = #tpu.pipeline_mode<synchronous>, transform_indices = @transform_8, window_bounds = array<i64: 72, 128>}]} {
    %c0 = arith.constant 0 : index
    %c0_0 = arith.constant 0 : index
    %0 = vector.load %arg1[%c0, %c0_0] : memref<72x32xf32, #tpu.memory_space<vmem>>, vector<72x32xf32>
    %c0_1 = arith.constant 0 : index
    %c0_2 = arith.constant 0 : index
    %1 = vector.load %arg3[%c0_1, %c0_2] : memref<32x128xbf16, #tpu.memory_space<vmem>>, vector<32x128xbf16>
    %2 = arith.truncf %0 : vector<72x32xf32> to vector<72x32xbf16>
    %cst = arith.constant dense<0.000000e+00> : vector<72x128xf32>
    %3 = tpu.matmul %2, %1, %cst {dimension_numbers = #tpu.dot_dimension_numbers<[1], [0], [0], [1], [0, 0, 1, 1], [], []>} : vector<72x32xbf16>, vector<32x128xbf16>, vector<72x128xf32> -> vector<72x128xf32>
    %c0_3 = arith.constant 0 : index
    %c0_4 = arith.constant 0 : index
    %4 = vector.load %arg4[%c0_3, %c0_4] : memref<1x128xf32, #tpu.memory_space<vmem>>, vector<1x128xf32>
    %5 = vector.broadcast %4 : vector<1x128xf32> to vector<72x128xf32>
    %6 = arith.addf %3, %5 : vector<72x128xf32>
    %c0_5 = arith.constant 0 : index
    %c0_6 = arith.constant 0 : index
    %7 = vector.load %arg2[%c0_5, %c0_6] : memref<72x4xf32, #tpu.memory_space<vmem>>, vector<72x4xf32>
    %c0_7 = arith.constant 0 : index
    %c0_8 = arith.constant 0 : index
    %8 = vector.load %arg5[%c0_7, %c0_8] : memref<4x128xbf16, #tpu.memory_space<vmem>>, vector<4x128xbf16>
    %9 = arith.truncf %7 : vector<72x4xf32> to vector<72x4xbf16>
    %cst_9 = arith.constant dense<0.000000e+00> : vector<72x128xf32>
    %10 = tpu.matmul %9, %8, %cst_9 {dimension_numbers = #tpu.dot_dimension_numbers<[1], [0], [0], [1], [0, 0, 1, 1], [], []>} : vector<72x4xbf16>, vector<4x128xbf16>, vector<72x128xf32> -> vector<72x128xf32>
    %c0_10 = arith.constant 0 : index
    %c0_11 = arith.constant 0 : index
    %11 = vector.load %arg6[%c0_10, %c0_11] : memref<1x128xf32, #tpu.memory_space<vmem>>, vector<1x128xf32>
    %12 = vector.broadcast %11 : vector<1x128xf32> to vector<72x128xf32>
    %13 = arith.addf %10, %12 : vector<72x128xf32>
    %14 = arith.addf %6, %13 : vector<72x128xf32>
    %c0_12 = arith.constant 0 : index
    %c0_13 = arith.constant 0 : index
    %15 = vector.load %arg7[%c0_12, %c0_13] : memref<1x128xf32, #tpu.memory_space<vmem>>, vector<1x128xf32>
    %c0_14 = arith.constant 0 : index
    %c0_15 = arith.constant 0 : index
    %16 = vector.load %arg8[%c0_14, %c0_15] : memref<1x128xf32, #tpu.memory_space<vmem>>, vector<1x128xf32>
    %cst_16 = arith.constant dense<0.000000e+00> : vector<72xf32>
    %17 = vector.multi_reduction <add>, %14, %cst_16 [1] : vector<72x128xf32> to vector<72xf32>
    %18 = vector.shape_cast %17 : vector<72xf32> to vector<72x1xf32>
    %cst_17 = arith.constant 1.280000e+02 : f32
    %19 = vector.broadcast %cst_17 : f32 to vector<72x1xf32>
    %20 = arith.divf %18, %19 : vector<72x1xf32>
    %21 = vector.broadcast %20 : vector<72x1xf32> to vector<72x128xf32>
    %22 = arith.subf %14, %21 : vector<72x128xf32>
    %23 = arith.mulf %22, %22 : vector<72x128xf32>
    %cst_18 = arith.constant dense<0.000000e+00> : vector<72xf32>
    %24 = vector.multi_reduction <add>, %23, %cst_18 [1] : vector<72x128xf32> to vector<72xf32>
    %25 = vector.shape_cast %24 : vector<72xf32> to vector<72x1xf32>
    %cst_19 = arith.constant 1.280000e+02 : f32
    %26 = vector.broadcast %cst_19 : f32 to vector<72x1xf32>
    %27 = arith.divf %25, %26 : vector<72x1xf32>
    %28 = vector.broadcast %20 : vector<72x1xf32> to vector<72x128xf32>
    %29 = arith.subf %14, %28 : vector<72x128xf32>
    %cst_20 = arith.constant 9.99999996E-13 : f32
    %30 = vector.broadcast %cst_20 : f32 to vector<72x1xf32>
    %31 = arith.addf %27, %30 : vector<72x1xf32>
    %32 = math.rsqrt %31 : vector<72x1xf32>
    %33 = vector.broadcast %32 : vector<72x1xf32> to vector<72x128xf32>
    %34 = arith.mulf %29, %33 : vector<72x128xf32>
    %35 = vector.broadcast %15 : vector<1x128xf32> to vector<72x128xf32>
    %36 = arith.mulf %34, %35 : vector<72x128xf32>
    %37 = vector.broadcast %16 : vector<1x128xf32> to vector<72x128xf32>
    %38 = arith.addf %36, %37 : vector<72x128xf32>
    %c0_21 = arith.constant 0 : index
    %c0_22 = arith.constant 0 : index
    %39 = vector.load %arg9[%c0_21, %c0_22] : memref<72x128xf32, #tpu.memory_space<vmem>>, vector<72x128xf32>
    tpu.vector_store %arg9[%c0_21, %c0_22], %38 {strides = array<i32>} : memref<72x128xf32, #tpu.memory_space<vmem>>, vector<72x128xf32>,
    return
  }
  func.func @transform_0(%arg0: i32) -> (i32, i32) {
    %c0_i32 = arith.constant 0 : i32
    %c0_i32_0 = arith.constant 0 : i32
    %c0_i32_1 = arith.constant 0 : i32
    return %c0_i32, %c0_i32_0 : i32, i32
  }
  func.func @transform_1(%arg0: i32) -> (i32, i32) {
    %c0_i32 = arith.constant 0 : i32
    %c0_i32_0 = arith.constant 0 : i32
    %c0_i32_1 = arith.constant 0 : i32
    return %c0_i32, %c0_i32_0 : i32, i32
  }
  func.func @transform_2(%arg0: i32) -> (i32, i32) {
    %c0_i32 = arith.constant 0 : i32
    %c0_i32_0 = arith.constant 0 : i32
    %c0_i32_1 = arith.constant 0 : i32
    return %c0_i32, %c0_i32_0 : i32, i32
  }
  func.func @transform_3(%arg0: i32) -> (i32, i32) {
    %c0_i32 = arith.constant 0 : i32
    %c0_i32_0 = arith.constant 0 : i32
    %c0_i32_1 = arith.constant 0 : i32
    return %c0_i32, %c0_i32_0 : i32, i32
  }
  func.func @transform_4(%arg0: i32) -> (i32, i32) {
    %c0_i32 = arith.constant 0 : i32
    %c0_i32_0 = arith.constant 0 : i32
    %c0_i32_1 = arith.constant 0 : i32
    return %c0_i32, %c0_i32_0 : i32, i32
  }
  func.func @transform_5(%arg0: i32) -> (i32, i32) {
    %c0_i32 = arith.constant 0 : i32
    %c0_i32_0 = arith.constant 0 : i32
    %c0_i32_1 = arith.constant 0 : i32
    return %c0_i32, %c0_i32_0 : i32, i32
  }
  func.func @transform_6(%arg0: i32) -> (i32, i32) {
    %c0_i32 = arith.constant 0 : i32
    %c0_i32_0 = arith.constant 0 : i32
    %c0_i32_1 = arith.constant 0 : i32
    return %c0_i32, %c0_i32_0 : i32, i32
  }
  func.func @transform_7(%arg0: i32) -> (i32, i32) {
    %c0_i32 = arith.constant 0 : i32
    %c0_i32_0 = arith.constant 0 : i32
    %c0_i32_1 = arith.constant 0 : i32
    return %c0_i32, %c0_i32_0 : i32, i32
  }
  func.func @transform_8(%arg0: i32) -> (i32, i32) {
    %c0_i32 = arith.constant 0 : i32
    %c0_i32_0 = arith.constant 0 : i32
    %c0_i32_1 = arith.constant 0 : i32
    return %c0_i32, %c0_i32_0 : i32, i32
  }
}

module attributes {stable_mosaic.version = 11 : i64} {
  func.func @_ln_kernel(%arg0: i32, %arg1: memref<24x128xf32, #tpu.memory_space<vmem>>, %arg2: memref<1x128xf32, #tpu.memory_space<vmem>>, %arg3: memref<1x128xf32, #tpu.memory_space<vmem>>, %arg4: memref<24x128xf32, #tpu.memory_space<vmem>>) attributes {dimension_semantics = [#tpu.dimension_semantics<arbitrary>], iteration_bounds = array<i64: 1>, scalar_prefetch = 0 : i64, scratch_operands = 0 : i64, tpu.core_type = #tpu.core_type<tc>, window_params = [{pipeline_mode = #tpu.pipeline_mode<synchronous>, transform_indices = @transform_0, window_bounds = array<i64: 24, 128>}, {pipeline_mode = #tpu.pipeline_mode<synchronous>, transform_indices = @transform_1, window_bounds = array<i64: 1, 128>}, {pipeline_mode = #tpu.pipeline_mode<synchronous>, transform_indices = @transform_2, window_bounds = array<i64: 1, 128>}, {pipeline_mode = #tpu.pipeline_mode<synchronous>, transform_indices = @transform_3, window_bounds = array<i64: 24, 128>}]} {
    %c0 = arith.constant 0 : index
    %c0_0 = arith.constant 0 : index
    %0 = vector.load %arg1[%c0, %c0_0] : memref<24x128xf32, #tpu.memory_space<vmem>>, vector<24x128xf32>
    %c0_1 = arith.constant 0 : index
    %c0_2 = arith.constant 0 : index
    %1 = vector.load %arg2[%c0_1, %c0_2] : memref<1x128xf32, #tpu.memory_space<vmem>>, vector<1x128xf32>
    %c0_3 = arith.constant 0 : index
    %c0_4 = arith.constant 0 : index
    %2 = vector.load %arg3[%c0_3, %c0_4] : memref<1x128xf32, #tpu.memory_space<vmem>>, vector<1x128xf32>
    %cst = arith.constant dense<0.000000e+00> : vector<24xf32>
    %3 = vector.multi_reduction <add>, %0, %cst [1] : vector<24x128xf32> to vector<24xf32>
    %4 = vector.shape_cast %3 : vector<24xf32> to vector<24x1xf32>
    %cst_5 = arith.constant 1.280000e+02 : f32
    %5 = vector.broadcast %cst_5 : f32 to vector<24x1xf32>
    %6 = arith.divf %4, %5 : vector<24x1xf32>
    %7 = vector.broadcast %6 : vector<24x1xf32> to vector<24x128xf32>
    %8 = arith.subf %0, %7 : vector<24x128xf32>
    %9 = arith.mulf %8, %8 : vector<24x128xf32>
    %cst_6 = arith.constant dense<0.000000e+00> : vector<24xf32>
    %10 = vector.multi_reduction <add>, %9, %cst_6 [1] : vector<24x128xf32> to vector<24xf32>
    %11 = vector.shape_cast %10 : vector<24xf32> to vector<24x1xf32>
    %cst_7 = arith.constant 1.280000e+02 : f32
    %12 = vector.broadcast %cst_7 : f32 to vector<24x1xf32>
    %13 = arith.divf %11, %12 : vector<24x1xf32>
    %14 = vector.broadcast %6 : vector<24x1xf32> to vector<24x128xf32>
    %15 = arith.subf %0, %14 : vector<24x128xf32>
    %cst_8 = arith.constant 9.99999996E-13 : f32
    %16 = vector.broadcast %cst_8 : f32 to vector<24x1xf32>
    %17 = arith.addf %13, %16 : vector<24x1xf32>
    %18 = math.rsqrt %17 : vector<24x1xf32>
    %19 = vector.broadcast %18 : vector<24x1xf32> to vector<24x128xf32>
    %20 = arith.mulf %15, %19 : vector<24x128xf32>
    %21 = vector.broadcast %1 : vector<1x128xf32> to vector<24x128xf32>
    %22 = arith.mulf %20, %21 : vector<24x128xf32>
    %23 = vector.broadcast %2 : vector<1x128xf32> to vector<24x128xf32>
    %24 = arith.addf %22, %23 : vector<24x128xf32>
    %c0_9 = arith.constant 0 : index
    %c0_10 = arith.constant 0 : index
    %25 = vector.load %arg4[%c0_9, %c0_10] : memref<24x128xf32, #tpu.memory_space<vmem>>, vector<24x128xf32>
    tpu.vector_store %arg4[%c0_9, %c0_10], %24 {strides = array<i32>} : memref<24x128xf32, #tpu.memory_space<vmem>>, vector<24x128xf32>,
    return
  }
  func.func @transform_0(%arg0: i32) -> (i32, i32) {
    %c0_i32 = arith.constant 0 : i32
    %c0_i32_0 = arith.constant 0 : i32
    %c0_i32_1 = arith.constant 0 : i32
    return %c0_i32, %c0_i32_0 : i32, i32
  }
  func.func @transform_1(%arg0: i32) -> (i32, i32) {
    %c0_i32 = arith.constant 0 : i32
    %c0_i32_0 = arith.constant 0 : i32
    %c0_i32_1 = arith.constant 0 : i32
    return %c0_i32, %c0_i32_0 : i32, i32
  }
  func.func @transform_2(%arg0: i32) -> (i32, i32) {
    %c0_i32 = arith.constant 0 : i32
    %c0_i32_0 = arith.constant 0 : i32
    %c0_i32_1 = arith.constant 0 : i32
    return %c0_i32, %c0_i32_0 : i32, i32
  }
  func.func @transform_3(%arg0: i32) -> (i32, i32) {
    %c0_i32 = arith.constant 0 : i32
    %c0_i32_0 = arith.constant 0 : i32
    %c0_i32_1 = arith.constant 0 : i32
    return %c0_i32, %c0_i32_0 : i32, i32
  }
}

module attributes {stable_mosaic.version = 11 : i64} {
  func.func @_dense_act_kernel(%arg0: i32, %arg1: memref<2x128xf32, #tpu.memory_space<vmem>>, %arg2: memref<128x128xbf16, #tpu.memory_space<vmem>>, %arg3: memref<1x128xf32, #tpu.memory_space<vmem>>, %arg4: memref<2x128xf32, #tpu.memory_space<vmem>>) attributes {dimension_semantics = [#tpu.dimension_semantics<arbitrary>], iteration_bounds = array<i64: 1>, scalar_prefetch = 0 : i64, scratch_operands = 0 : i64, tpu.core_type = #tpu.core_type<tc>, window_params = [{pipeline_mode = #tpu.pipeline_mode<synchronous>, transform_indices = @transform_0, window_bounds = array<i64: 2, 128>}, {pipeline_mode = #tpu.pipeline_mode<synchronous>, transform_indices = @transform_1, window_bounds = array<i64: 128, 128>}, {pipeline_mode = #tpu.pipeline_mode<synchronous>, transform_indices = @transform_2, window_bounds = array<i64: 1, 128>}, {pipeline_mode = #tpu.pipeline_mode<synchronous>, transform_indices = @transform_3, window_bounds = array<i64: 2, 128>}]} {
    %c0 = arith.constant 0 : index
    %c0_0 = arith.constant 0 : index
    %0 = vector.load %arg1[%c0, %c0_0] : memref<2x128xf32, #tpu.memory_space<vmem>>, vector<2x128xf32>
    %c0_1 = arith.constant 0 : index
    %c0_2 = arith.constant 0 : index
    %1 = vector.load %arg2[%c0_1, %c0_2] : memref<128x128xbf16, #tpu.memory_space<vmem>>, vector<128x128xbf16>
    %2 = arith.truncf %0 : vector<2x128xf32> to vector<2x128xbf16>
    %cst = arith.constant dense<0.000000e+00> : vector<2x128xf32>
    %3 = tpu.matmul %2, %1, %cst {dimension_numbers = #tpu.dot_dimension_numbers<[1], [0], [0], [1], [0, 0, 1, 1], [], []>} : vector<2x128xbf16>, vector<128x128xbf16>, vector<2x128xf32> -> vector<2x128xf32>
    %c0_3 = arith.constant 0 : index
    %c0_4 = arith.constant 0 : index
    %4 = vector.load %arg3[%c0_3, %c0_4] : memref<1x128xf32, #tpu.memory_space<vmem>>, vector<1x128xf32>
    %5 = vector.broadcast %4 : vector<1x128xf32> to vector<2x128xf32>
    %6 = arith.addf %3, %5 : vector<2x128xf32>
    %7 = math.tanh %6 : vector<2x128xf32>
    %c0_5 = arith.constant 0 : index
    %c0_6 = arith.constant 0 : index
    %8 = vector.load %arg4[%c0_5, %c0_6] : memref<2x128xf32, #tpu.memory_space<vmem>>, vector<2x128xf32>
    tpu.vector_store %arg4[%c0_5, %c0_6], %7 {strides = array<i32>} : memref<2x128xf32, #tpu.memory_space<vmem>>, vector<2x128xf32>,
    return
  }
  func.func @transform_0(%arg0: i32) -> (i32, i32) {
    %c0_i32 = arith.constant 0 : i32
    %c0_i32_0 = arith.constant 0 : i32
    %c0_i32_1 = arith.constant 0 : i32
    return %c0_i32, %c0_i32_0 : i32, i32
  }
  func.func @transform_1(%arg0: i32) -> (i32, i32) {
    %c0_i32 = arith.constant 0 : i32
    %c0_i32_0 = arith.constant 0 : i32
    %c0_i32_1 = arith.constant 0 : i32
    return %c0_i32, %c0_i32_0 : i32, i32
  }
  func.func @transform_2(%arg0: i32) -> (i32, i32) {
    %c0_i32 = arith.constant 0 : i32
    %c0_i32_0 = arith.constant 0 : i32
    %c0_i32_1 = arith.constant 0 : i32
    return %c0_i32, %c0_i32_0 : i32, i32
  }
  func.func @transform_3(%arg0: i32) -> (i32, i32) {
    %c0_i32 = arith.constant 0 : i32
    %c0_i32_0 = arith.constant 0 : i32
    %c0_i32_1 = arith.constant 0 : i32
    return %c0_i32, %c0_i32_0 : i32, i32
  }
}

module attributes {stable_mosaic.version = 11 : i64} {
  func.func @_layer_kernel(%arg0: i32, %arg1: memref<1x48x128xf32, #tpu.memory_space<vmem>>, %arg2: memref<1x1x48xf32, #tpu.memory_space<vmem>>, %arg3: memref<128x384xbf16, #tpu.memory_space<vmem>>, %arg4: memref<1x384xf32, #tpu.memory_space<vmem>>, %arg5: memref<128x128xbf16, #tpu.memory_space<vmem>>, %arg6: memref<1x128xf32, #tpu.memory_space<vmem>>, %arg7: memref<1x128xf32, #tpu.memory_space<vmem>>, %arg8: memref<1x128xf32, #tpu.memory_space<vmem>>, %arg9: memref<128x512xbf16, #tpu.memory_space<vmem>>, %arg10: memref<1x512xf32, #tpu.memory_space<vmem>>, %arg11: memref<512x128xbf16, #tpu.memory_space<vmem>>, %arg12: memref<1x128xf32, #tpu.memory_space<vmem>>, %arg13: memref<1x128xf32, #tpu.memory_space<vmem>>, %arg14: memref<1x128xf32, #tpu.memory_space<vmem>>, %arg15: memref<1x48x128xf32, #tpu.memory_space<vmem>>) attributes {dimension_semantics = [#tpu.dimension_semantics<parallel>], iteration_bounds = array<i64: 2>, scalar_prefetch = 0 : i64, scratch_operands = 0 : i64, tpu.core_type = #tpu.core_type<tc>, window_params = [{transform_indices = @transform_0, window_bounds = array<i64: 1, 48, 128>}, {transform_indices = @transform_1, window_bounds = array<i64: 1, 1, 48>}, {pipeline_mode = #tpu.pipeline_mode<synchronous>, transform_indices = @transform_2, window_bounds = array<i64: 128, 384>}, {pipeline_mode = #tpu.pipeline_mode<synchronous>, transform_indices = @transform_3, window_bounds = array<i64: 1, 384>}, {pipeline_mode = #tpu.pipeline_mode<synchronous>, transform_indices = @transform_4, window_bounds = array<i64: 128, 128>}, {pipeline_mode = #tpu.pipeline_mode<synchronous>, transform_indices = @transform_5, window_bounds = array<i64: 1, 128>}, {pipeline_mode = #tpu.pipeline_mode<synchronous>, transform_indices = @transform_6, window_bounds = array<i64: 1, 128>}, {pipeline_mode = #tpu.pipeline_mode<synchronous>, transform_indices = @transform_7, window_bounds = array<i64: 1, 128>}, {pipeline_mode = #tpu.pipeline_mode<synchronous>, transform_indices = @transform_8, window_bounds = array<i64: 128, 512>}, {pipeline_mode = #tpu.pipeline_mode<synchronous>, transform_indices = @transform_9, window_bounds = array<i64: 1, 512>}, {pipeline_mode = #tpu.pipeline_mode<synchronous>, transform_indices = @transform_10, window_bounds = array<i64: 512, 128>}, {pipeline_mode = #tpu.pipeline_mode<synchronous>, transform_indices = @transform_11, window_bounds = array<i64: 1, 128>}, {pipeline_mode = #tpu.pipeline_mode<synchronous>, transform_indices = @transform_12, window_bounds = array<i64: 1, 128>}, {pipeline_mode = #tpu.pipeline_mode<synchronous>, transform_indices = @transform_13, window_bounds = array<i64: 1, 128>}, {transform_indices = @transform_14, window_bounds = array<i64: 1, 48, 128>}]} {
    %c0 = arith.constant 0 : index
    %c0_0 = arith.constant 0 : index
    %c0_1 = arith.constant 0 : index
    %0 = vector.load %arg1[%c0, %c0_0, %c0_1] : memref<1x48x128xf32, #tpu.memory_space<vmem>>, vector<1x48x128xf32>
    %1 = vector.shape_cast %0 : vector<1x48x128xf32> to vector<48x128xf32>
    %c0_2 = arith.constant 0 : index
    %c0_3 = arith.constant 0 : index
    %c0_4 = arith.constant 0 : index
    %2 = vector.load %arg2[%c0_2, %c0_3, %c0_4] : memref<1x1x48xf32, #tpu.memory_space<vmem>>, vector<1x1x48xf32>
    %3 = vector.shape_cast %2 : vector<1x1x48xf32> to vector<1x48xf32>
    %c0_5 = arith.constant 0 : index
    %c0_6 = arith.constant 0 : index
    %4 = vector.load %arg3[%c0_5, %c0_6] : memref<128x384xbf16, #tpu.memory_space<vmem>>, vector<128x384xbf16>
    %5 = arith.truncf %1 : vector<48x128xf32> to vector<48x128xbf16>
    %cst = arith.constant dense<0.000000e+00> : vector<48x384xf32>
    %6 = tpu.matmul %5, %4, %cst {dimension_numbers = #tpu.dot_dimension_numbers<[1], [0], [0], [1], [0, 0, 1, 1], [], []>} : vector<48x128xbf16>, vector<128x384xbf16>, vector<48x384xf32> -> vector<48x384xf32>
    %c0_7 = arith.constant 0 : index
    %c0_8 = arith.constant 0 : index
    %7 = vector.load %arg4[%c0_7, %c0_8] : memref<1x384xf32, #tpu.memory_space<vmem>>, vector<1x384xf32>
    %8 = vector.broadcast %7 : vector<1x384xf32> to vector<48x384xf32>
    %9 = arith.addf %6, %8 : vector<48x384xf32>
    %10 = vector.extract_strided_slice %9 {offsets = [0, 0], sizes = [48, 128], strides = [1, 1]} : vector<48x384xf32> to vector<48x128xf32>
    %11 = vector.extract_strided_slice %9 {offsets = [0, 128], sizes = [48, 128], strides = [1, 1]} : vector<48x384xf32> to vector<48x128xf32>
    %12 = vector.extract_strided_slice %9 {offsets = [0, 256], sizes = [48, 128], strides = [1, 1]} : vector<48x384xf32> to vector<48x128xf32>
    %13 = vector.extract_strided_slice %10 {offsets = [0, 0], sizes = [48, 32], strides = [1, 1]} : vector<48x128xf32> to vector<48x32xf32>
    %14 = arith.truncf %13 : vector<48x32xf32> to vector<48x32xbf16>
    %15 = vector.extract_strided_slice %11 {offsets = [0, 0], sizes = [48, 32], strides = [1, 1]} : vector<48x128xf32> to vector<48x32xf32>
    %16 = arith.truncf %15 : vector<48x32xf32> to vector<48x32xbf16>
    %17 = vector.extract_strided_slice %12 {offsets = [0, 0], sizes = [48, 32], strides = [1, 1]} : vector<48x128xf32> to vector<48x32xf32>
    %18 = arith.truncf %17 : vector<48x32xf32> to vector<48x32xbf16>
    %cst_9 = arith.constant dense<0.000000e+00> : vector<48x48xf32>
    %19 = tpu.matmul %14, %16, %cst_9 {dimension_numbers = #tpu.dot_dimension_numbers<[1], [1], [0], [0], [0, 0, 1, 0], [], []>} : vector<48x32xbf16>, vector<48x32xbf16>, vector<48x48xf32> -> vector<48x48xf32>
    %cst_10 = arith.constant 0.176776692 : f32
    %20 = vector.broadcast %cst_10 : f32 to vector<48x48xf32>
    %21 = arith.mulf %19, %20 : vector<48x48xf32>
    %22 = vector.broadcast %3 : vector<1x48xf32> to vector<48x48xf32>
    %23 = arith.addf %21, %22 : vector<48x48xf32>
    %cst_11 = arith.constant dense<0xFF800000> : vector<48xf32>
    %24 = vector.multi_reduction <maximumf>, %23, %cst_11 [1] : vector<48x48xf32> to vector<48xf32>
    %25 = vector.shape_cast %24 : vector<48xf32> to vector<48x1xf32>
    %26 = vector.broadcast %25 : vector<48x1xf32> to vector<48x48xf32>
    %27 = arith.subf %23, %26 : vector<48x48xf32>
    %28 = math.exp %27 : vector<48x48xf32>
    %cst_12 = arith.constant dense<0.000000e+00> : vector<48xf32>
    %29 = vector.multi_reduction <add>, %28, %cst_12 [1] : vector<48x48xf32> to vector<48xf32>
    %30 = vector.shape_cast %29 : vector<48xf32> to vector<48x1xf32>
    %31 = tpu.reciprocal %30 {approx = true} : vector<48x1xf32> -> vector<48x1xf32>
    %32 = vector.broadcast %31 : vector<48x1xf32> to vector<48x48xf32>
    %33 = arith.mulf %28, %32 : vector<48x48xf32>
    %34 = arith.truncf %33 : vector<48x48xf32> to vector<48x48xbf16>
    %cst_13 = arith.constant dense<0.000000e+00> : vector<48x32xf32>
    %35 = tpu.matmul %34, %18, %cst_13 {dimension_numbers = #tpu.dot_dimension_numbers<[1], [0], [0], [1], [0, 0, 1, 1], [], []>} : vector<48x48xbf16>, vector<48x32xbf16>, vector<48x32xf32> -> vector<48x32xf32>
    %36 = vector.extract_strided_slice %10 {offsets = [0, 32], sizes = [48, 32], strides = [1, 1]} : vector<48x128xf32> to vector<48x32xf32>
    %37 = arith.truncf %36 : vector<48x32xf32> to vector<48x32xbf16>
    %38 = vector.extract_strided_slice %11 {offsets = [0, 32], sizes = [48, 32], strides = [1, 1]} : vector<48x128xf32> to vector<48x32xf32>
    %39 = arith.truncf %38 : vector<48x32xf32> to vector<48x32xbf16>
    %40 = vector.extract_strided_slice %12 {offsets = [0, 32], sizes = [48, 32], strides = [1, 1]} : vector<48x128xf32> to vector<48x32xf32>
    %41 = arith.truncf %40 : vector<48x32xf32> to vector<48x32xbf16>
    %cst_14 = arith.constant dense<0.000000e+00> : vector<48x48xf32>
    %42 = tpu.matmul %37, %39, %cst_14 {dimension_numbers = #tpu.dot_dimension_numbers<[1], [1], [0], [0], [0, 0, 1, 0], [], []>} : vector<48x32xbf16>, vector<48x32xbf16>, vector<48x48xf32> -> vector<48x48xf32>
    %cst_15 = arith.constant 0.176776692 : f32
    %43 = vector.broadcast %cst_15 : f32 to vector<48x48xf32>
    %44 = arith.mulf %42, %43 : vector<48x48xf32>
    %45 = vector.broadcast %3 : vector<1x48xf32> to vector<48x48xf32>
    %46 = arith.addf %44, %45 : vector<48x48xf32>
    %cst_16 = arith.constant dense<0xFF800000> : vector<48xf32>
    %47 = vector.multi_reduction <maximumf>, %46, %cst_16 [1] : vector<48x48xf32> to vector<48xf32>
    %48 = vector.shape_cast %47 : vector<48xf32> to vector<48x1xf32>
    %49 = vector.broadcast %48 : vector<48x1xf32> to vector<48x48xf32>
    %50 = arith.subf %46, %49 : vector<48x48xf32>
    %51 = math.exp %50 : vector<48x48xf32>
    %cst_17 = arith.constant dense<0.000000e+00> : vector<48xf32>
    %52 = vector.multi_reduction <add>, %51, %cst_17 [1] : vector<48x48xf32> to vector<48xf32>
    %53 = vector.shape_cast %52 : vector<48xf32> to vector<48x1xf32>
    %54 = tpu.reciprocal %53 {approx = true} : vector<48x1xf32> -> vector<48x1xf32>
    %55 = vector.broadcast %54 : vector<48x1xf32> to vector<48x48xf32>
    %56 = arith.mulf %51, %55 : vector<48x48xf32>
    %57 = arith.truncf %56 : vector<48x48xf32> to vector<48x48xbf16>
    %cst_18 = arith.constant dense<0.000000e+00> : vector<48x32xf32>
    %58 = tpu.matmul %57, %41, %cst_18 {dimension_numbers = #tpu.dot_dimension_numbers<[1], [0], [0], [1], [0, 0, 1, 1], [], []>} : vector<48x48xbf16>, vector<48x32xbf16>, vector<48x32xf32> -> vector<48x32xf32>
    %59 = vector.extract_strided_slice %10 {offsets = [0, 64], sizes = [48, 32], strides = [1, 1]} : vector<48x128xf32> to vector<48x32xf32>
    %60 = arith.truncf %59 : vector<48x32xf32> to vector<48x32xbf16>
    %61 = vector.extract_strided_slice %11 {offsets = [0, 64], sizes = [48, 32], strides = [1, 1]} : vector<48x128xf32> to vector<48x32xf32>
    %62 = arith.truncf %61 : vector<48x32xf32> to vector<48x32xbf16>
    %63 = vector.extract_strided_slice %12 {offsets = [0, 64], sizes = [48, 32], strides = [1, 1]} : vector<48x128xf32> to vector<48x32xf32>
    %64 = arith.truncf %63 : vector<48x32xf32> to vector<48x32xbf16>
    %cst_19 = arith.constant dense<0.000000e+00> : vector<48x48xf32>
    %65 = tpu.matmul %60, %62, %cst_19 {dimension_numbers = #tpu.dot_dimension_numbers<[1], [1], [0], [0], [0, 0, 1, 0], [], []>} : vector<48x32xbf16>, vector<48x32xbf16>, vector<48x48xf32> -> vector<48x48xf32>
    %cst_20 = arith.constant 0.176776692 : f32
    %66 = vector.broadcast %cst_20 : f32 to vector<48x48xf32>
    %67 = arith.mulf %65, %66 : vector<48x48xf32>
    %68 = vector.broadcast %3 : vector<1x48xf32> to vector<48x48xf32>
    %69 = arith.addf %67, %68 : vector<48x48xf32>
    %cst_21 = arith.constant dense<0xFF800000> : vector<48xf32>
    %70 = vector.multi_reduction <maximumf>, %69, %cst_21 [1] : vector<48x48xf32> to vector<48xf32>
    %71 = vector.shape_cast %70 : vector<48xf32> to vector<48x1xf32>
    %72 = vector.broadcast %71 : vector<48x1xf32> to vector<48x48xf32>
    %73 = arith.subf %69, %72 : vector<48x48xf32>
    %74 = math.exp %73 : vector<48x48xf32>
    %cst_22 = arith.constant dense<0.000000e+00> : vector<48xf32>
    %75 = vector.multi_reduction <add>, %74, %cst_22 [1] : vector<48x48xf32> to vector<48xf32>
    %76 = vector.shape_cast %75 : vector<48xf32> to vector<48x1xf32>
    %77 = tpu.reciprocal %76 {approx = true} : vector<48x1xf32> -> vector<48x1xf32>
    %78 = vector.broadcast %77 : vector<48x1xf32> to vector<48x48xf32>
    %79 = arith.mulf %74, %78 : vector<48x48xf32>
    %80 = arith.truncf %79 : vector<48x48xf32> to vector<48x48xbf16>
    %cst_23 = arith.constant dense<0.000000e+00> : vector<48x32xf32>
    %81 = tpu.matmul %80, %64, %cst_23 {dimension_numbers = #tpu.dot_dimension_numbers<[1], [0], [0], [1], [0, 0, 1, 1], [], []>} : vector<48x48xbf16>, vector<48x32xbf16>, vector<48x32xf32> -> vector<48x32xf32>
    %82 = vector.extract_strided_slice %10 {offsets = [0, 96], sizes = [48, 32], strides = [1, 1]} : vector<48x128xf32> to vector<48x32xf32>
    %83 = arith.truncf %82 : vector<48x32xf32> to vector<48x32xbf16>
    %84 = vector.extract_strided_slice %11 {offsets = [0, 96], sizes = [48, 32], strides = [1, 1]} : vector<48x128xf32> to vector<48x32xf32>
    %85 = arith.truncf %84 : vector<48x32xf32> to vector<48x32xbf16>
    %86 = vector.extract_strided_slice %12 {offsets = [0, 96], sizes = [48, 32], strides = [1, 1]} : vector<48x128xf32> to vector<48x32xf32>
    %87 = arith.truncf %86 : vector<48x32xf32> to vector<48x32xbf16>
    %cst_24 = arith.constant dense<0.000000e+00> : vector<48x48xf32>
    %88 = tpu.matmul %83, %85, %cst_24 {dimension_numbers = #tpu.dot_dimension_numbers<[1], [1], [0], [0], [0, 0, 1, 0], [], []>} : vector<48x32xbf16>, vector<48x32xbf16>, vector<48x48xf32> -> vector<48x48xf32>
    %cst_25 = arith.constant 0.176776692 : f32
    %89 = vector.broadcast %cst_25 : f32 to vector<48x48xf32>
    %90 = arith.mulf %88, %89 : vector<48x48xf32>
    %91 = vector.broadcast %3 : vector<1x48xf32> to vector<48x48xf32>
    %92 = arith.addf %90, %91 : vector<48x48xf32>
    %cst_26 = arith.constant dense<0xFF800000> : vector<48xf32>
    %93 = vector.multi_reduction <maximumf>, %92, %cst_26 [1] : vector<48x48xf32> to vector<48xf32>
    %94 = vector.shape_cast %93 : vector<48xf32> to vector<48x1xf32>
    %95 = vector.broadcast %94 : vector<48x1xf32> to vector<48x48xf32>
    %96 = arith.subf %92, %95 : vector<48x48xf32>
    %97 = math.exp %96 : vector<48x48xf32>
    %cst_27 = arith.constant dense<0.000000e+00> : vector<48xf32>
    %98 = vector.multi_reduction <add>, %97, %cst_27 [1] : vector<48x48xf32> to vector<48xf32>
    %99 = vector.shape_cast %98 : vector<48xf32> to vector<48x1xf32>
    %100 = tpu.reciprocal %99 {approx = true} : vector<48x1xf32> -> vector<48x1xf32>
    %101 = vector.broadcast %100 : vector<48x1xf32> to vector<48x48xf32>
    %102 = arith.mulf %97, %101 : vector<48x48xf32>
    %103 = arith.truncf %102 : vector<48x48xf32> to vector<48x48xbf16>
    %cst_28 = arith.constant dense<0.000000e+00> : vector<48x32xf32>
    %104 = tpu.matmul %103, %87, %cst_28 {dimension_numbers = #tpu.dot_dimension_numbers<[1], [0], [0], [1], [0, 0, 1, 1], [], []>} : vector<48x48xbf16>, vector<48x32xbf16>, vector<48x32xf32> -> vector<48x32xf32>
    %105 = tpu.concatenate %35, %58, %81, %104 in 1 : vector<48x32xf32>, vector<48x32xf32>, vector<48x32xf32>, vector<48x32xf32> -> vector<48x128xf32>
    %c0_29 = arith.constant 0 : index
    %c0_30 = arith.constant 0 : index
    %106 = vector.load %arg5[%c0_29, %c0_30] : memref<128x128xbf16, #tpu.memory_space<vmem>>, vector<128x128xbf16>
    %107 = arith.truncf %105 : vector<48x128xf32> to vector<48x128xbf16>
    %cst_31 = arith.constant dense<0.000000e+00> : vector<48x128xf32>
    %108 = tpu.matmul %107, %106, %cst_31 {dimension_numbers = #tpu.dot_dimension_numbers<[1], [0], [0], [1], [0, 0, 1, 1], [], []>} : vector<48x128xbf16>, vector<128x128xbf16>, vector<48x128xf32> -> vector<48x128xf32>
    %c0_32 = arith.constant 0 : index
    %c0_33 = arith.constant 0 : index
    %109 = vector.load %arg6[%c0_32, %c0_33] : memref<1x128xf32, #tpu.memory_space<vmem>>, vector<1x128xf32>
    %110 = vector.broadcast %109 : vector<1x128xf32> to vector<48x128xf32>
    %111 = arith.addf %108, %110 : vector<48x128xf32>
    %112 = arith.addf %111, %1 : vector<48x128xf32>
    %c0_34 = arith.constant 0 : index
    %c0_35 = arith.constant 0 : index
    %113 = vector.load %arg7[%c0_34, %c0_35] : memref<1x128xf32, #tpu.memory_space<vmem>>, vector<1x128xf32>
    %c0_36 = arith.constant 0 : index
    %c0_37 = arith.constant 0 : index
    %114 = vector.load %arg8[%c0_36, %c0_37] : memref<1x128xf32, #tpu.memory_space<vmem>>, vector<1x128xf32>
    %cst_38 = arith.constant dense<0.000000e+00> : vector<48xf32>
    %115 = vector.multi_reduction <add>, %112, %cst_38 [1] : vector<48x128xf32> to vector<48xf32>
    %116 = vector.shape_cast %115 : vector<48xf32> to vector<48x1xf32>
    %cst_39 = arith.constant 1.280000e+02 : f32
    %117 = vector.broadcast %cst_39 : f32 to vector<48x1xf32>
    %118 = arith.divf %116, %117 : vector<48x1xf32>
    %119 = vector.broadcast %118 : vector<48x1xf32> to vector<48x128xf32>
    %120 = arith.subf %112, %119 : vector<48x128xf32>
    %121 = arith.mulf %120, %120 : vector<48x128xf32>
    %cst_40 = arith.constant dense<0.000000e+00> : vector<48xf32>
    %122 = vector.multi_reduction <add>, %121, %cst_40 [1] : vector<48x128xf32> to vector<48xf32>
    %123 = vector.shape_cast %122 : vector<48xf32> to vector<48x1xf32>
    %cst_41 = arith.constant 1.280000e+02 : f32
    %124 = vector.broadcast %cst_41 : f32 to vector<48x1xf32>
    %125 = arith.divf %123, %124 : vector<48x1xf32>
    %126 = vector.broadcast %118 : vector<48x1xf32> to vector<48x128xf32>
    %127 = arith.subf %112, %126 : vector<48x128xf32>
    %cst_42 = arith.constant 9.99999996E-13 : f32
    %128 = vector.broadcast %cst_42 : f32 to vector<48x1xf32>
    %129 = arith.addf %125, %128 : vector<48x1xf32>
    %130 = math.rsqrt %129 : vector<48x1xf32>
    %131 = vector.broadcast %130 : vector<48x1xf32> to vector<48x128xf32>
    %132 = arith.mulf %127, %131 : vector<48x128xf32>
    %133 = vector.broadcast %113 : vector<1x128xf32> to vector<48x128xf32>
    %134 = arith.mulf %132, %133 : vector<48x128xf32>
    %135 = vector.broadcast %114 : vector<1x128xf32> to vector<48x128xf32>
    %136 = arith.addf %134, %135 : vector<48x128xf32>
    %c0_43 = arith.constant 0 : index
    %c0_44 = arith.constant 0 : index
    %137 = vector.load %arg9[%c0_43, %c0_44] : memref<128x512xbf16, #tpu.memory_space<vmem>>, vector<128x512xbf16>
    %138 = arith.truncf %136 : vector<48x128xf32> to vector<48x128xbf16>
    %cst_45 = arith.constant dense<0.000000e+00> : vector<48x512xf32>
    %139 = tpu.matmul %138, %137, %cst_45 {dimension_numbers = #tpu.dot_dimension_numbers<[1], [0], [0], [1], [0, 0, 1, 1], [], []>} : vector<48x128xbf16>, vector<128x512xbf16>, vector<48x512xf32> -> vector<48x512xf32>
    %c0_46 = arith.constant 0 : index
    %c0_47 = arith.constant 0 : index
    %140 = vector.load %arg10[%c0_46, %c0_47] : memref<1x512xf32, #tpu.memory_space<vmem>>, vector<1x512xf32>
    %141 = vector.broadcast %140 : vector<1x512xf32> to vector<48x512xf32>
    %142 = arith.addf %139, %141 : vector<48x512xf32>
    %cst_48 = arith.constant 5.000000e-01 : f32
    %143 = vector.broadcast %cst_48 : f32 to vector<48x512xf32>
    %144 = arith.mulf %143, %142 : vector<48x512xf32>
    %cst_49 = arith.constant 4.471500e-02 : f32
    %145 = vector.broadcast %cst_49 : f32 to vector<48x512xf32>
    %146 = arith.mulf %145, %142 : vector<48x512xf32>
    %147 = arith.mulf %146, %142 : vector<48x512xf32>
    %148 = arith.mulf %147, %142 : vector<48x512xf32>
    %149 = arith.addf %142, %148 : vector<48x512xf32>
    %cst_50 = arith.constant 0.797884583 : f32
    %150 = vector.broadcast %cst_50 : f32 to vector<48x512xf32>
    %151 = arith.mulf %150, %149 : vector<48x512xf32>
    %152 = math.tanh %151 : vector<48x512xf32>
    %cst_51 = arith.constant 1.000000e+00 : f32
    %153 = vector.broadcast %cst_51 : f32 to vector<48x512xf32>
    %154 = arith.addf %153, %152 : vector<48x512xf32>
    %155 = arith.mulf %144, %154 : vector<48x512xf32>
    %c0_52 = arith.constant 0 : index
    %c0_53 = arith.constant 0 : index
    %156 = vector.load %arg11[%c0_52, %c0_53] : memref<512x128xbf16, #tpu.memory_space<vmem>>, vector<512x128xbf16>
    %157 = arith.truncf %155 : vector<48x512xf32> to vector<48x512xbf16>
    %cst_54 = arith.constant dense<0.000000e+00> : vector<48x128xf32>
    %158 = tpu.matmul %157, %156, %cst_54 {dimension_numbers = #tpu.dot_dimension_numbers<[1], [0], [0], [1], [0, 0, 1, 1], [], []>} : vector<48x512xbf16>, vector<512x128xbf16>, vector<48x128xf32> -> vector<48x128xf32>
    %c0_55 = arith.constant 0 : index
    %c0_56 = arith.constant 0 : index
    %159 = vector.load %arg12[%c0_55, %c0_56] : memref<1x128xf32, #tpu.memory_space<vmem>>, vector<1x128xf32>
    %160 = vector.broadcast %159 : vector<1x128xf32> to vector<48x128xf32>
    %161 = arith.addf %158, %160 : vector<48x128xf32>
    %162 = arith.addf %161, %136 : vector<48x128xf32>
    %c0_57 = arith.constant 0 : index
    %c0_58 = arith.constant 0 : index
    %163 = vector.load %arg13[%c0_57, %c0_58] : memref<1x128xf32, #tpu.memory_space<vmem>>, vector<1x128xf32>
    %c0_59 = arith.constant 0 : index
    %c0_60 = arith.constant 0 : index
    %164 = vector.load %arg14[%c0_59, %c0_60] : memref<1x128xf32, #tpu.memory_space<vmem>>, vector<1x128xf32>
    %cst_61 = arith.constant dense<0.000000e+00> : vector<48xf32>
    %165 = vector.multi_reduction <add>, %162, %cst_61 [1] : vector<48x128xf32> to vector<48xf32>
    %166 = vector.shape_cast %165 : vector<48xf32> to vector<48x1xf32>
    %cst_62 = arith.constant 1.280000e+02 : f32
    %167 = vector.broadcast %cst_62 : f32 to vector<48x1xf32>
    %168 = arith.divf %166, %167 : vector<48x1xf32>
    %169 = vector.broadcast %168 : vector<48x1xf32> to vector<48x128xf32>
    %170 = arith.subf %162, %169 : vector<48x128xf32>
    %171 = arith.mulf %170, %170 : vector<48x128xf32>
    %cst_63 = arith.constant dense<0.000000e+00> : vector<48xf32>
    %172 = vector.multi_reduction <add>, %171, %cst_63 [1] : vector<48x128xf32> to vector<48xf32>
    %173 = vector.shape_cast %172 : vector<48xf32> to vector<48x1xf32>
    %cst_64 = arith.constant 1.280000e+02 : f32
    %174 = vector.broadcast %cst_64 : f32 to vector<48x1xf32>
    %175 = arith.divf %173, %174 : vector<48x1xf32>
    %176 = vector.broadcast %168 : vector<48x1xf32> to vector<48x128xf32>
    %177 = arith.subf %162, %176 : vector<48x128xf32>
    %cst_65 = arith.constant 9.99999996E-13 : f32
    %178 = vector.broadcast %cst_65 : f32 to vector<48x1xf32>
    %179 = arith.addf %175, %178 : vector<48x1xf32>
    %180 = math.rsqrt %179 : vector<48x1xf32>
    %181 = vector.broadcast %180 : vector<48x1xf32> to vector<48x128xf32>
    %182 = arith.mulf %177, %181 : vector<48x128xf32>
    %183 = vector.broadcast %163 : vector<1x128xf32> to vector<48x128xf32>
    %184 = arith.mulf %182, %183 : vector<48x128xf32>
    %185 = vector.broadcast %164 : vector<1x128xf32> to vector<48x128xf32>
    %186 = arith.addf %184, %185 : vector<48x128xf32>
    %c0_66 = arith.constant 0 : index
    %c0_67 = arith.constant 0 : index
    %c0_68 = arith.constant 0 : index
    %187 = vector.load %arg15[%c0_66, %c0_67, %c0_68] : memref<1x48x128xf32, #tpu.memory_space<vmem>>, vector<1x48x128xf32>
    %188 = vector.shape_cast %187 : vector<1x48x128xf32> to vector<48x128xf32>
    %189 = vector.shape_cast %186 : vector<48x128xf32> to vector<1x48x128xf32>
    tpu.vector_store %arg15[%c0_66, %c0_67, %c0_68], %189 {strides = array<i32>} : memref<1x48x128xf32, #tpu.memory_space<vmem>>, vector<1x48x128xf32>,
    return
  }
  func.func @transform_0(%arg0: i32) -> (i32, i32, i32) {
    %c0_i32 = arith.constant 0 : i32
    %c0_i32_0 = arith.constant 0 : i32
    %c0_i32_1 = arith.constant 0 : i32
    return %arg0, %c0_i32, %c0_i32_0 : i32, i32, i32
  }
  func.func @transform_1(%arg0: i32) -> (i32, i32, i32) {
    %c0_i32 = arith.constant 0 : i32
    %c0_i32_0 = arith.constant 0 : i32
    %c0_i32_1 = arith.constant 0 : i32
    return %arg0, %c0_i32, %c0_i32_0 : i32, i32, i32
  }
  func.func @transform_2(%arg0: i32) -> (i32, i32) {
    %c0_i32 = arith.constant 0 : i32
    %c0_i32_0 = arith.constant 0 : i32
    %c0_i32_1 = arith.constant 0 : i32
    return %c0_i32, %c0_i32_0 : i32, i32
  }
  func.func @transform_3(%arg0: i32) -> (i32, i32) {
    %c0_i32 = arith.constant 0 : i32
    %c0_i32_0 = arith.constant 0 : i32
    %c0_i32_1 = arith.constant 0 : i32
    return %c0_i32, %c0_i32_0 : i32, i32
  }
  func.func @transform_4(%arg0: i32) -> (i32, i32) {
    %c0_i32 = arith.constant 0 : i32
    %c0_i32_0 = arith.constant 0 : i32
    %c0_i32_1 = arith.constant 0 : i32
    return %c0_i32, %c0_i32_0 : i32, i32
  }
  func.func @transform_5(%arg0: i32) -> (i32, i32) {
    %c0_i32 = arith.constant 0 : i32
    %c0_i32_0 = arith.constant 0 : i32
    %c0_i32_1 = arith.constant 0 : i32
    return %c0_i32, %c0_i32_0 : i32, i32
  }
  func.func @transform_6(%arg0: i32) -> (i32, i32) {
    %c0_i32 = arith.constant 0 : i32
    %c0_i32_0 = arith.constant 0 : i32
    %c0_i32_1 = arith.constant 0 : i32
    return %c0_i32, %c0_i32_0 : i32, i32
  }
  func.func @transform_7(%arg0: i32) -> (i32, i32) {
    %c0_i32 = arith.constant 0 : i32
    %c0_i32_0 = arith.constant 0 : i32
    %c0_i32_1 = arith.constant 0 : i32
    return %c0_i32, %c0_i32_0 : i32, i32
  }
  func.func @transform_8(%arg0: i32) -> (i32, i32) {
    %c0_i32 = arith.constant 0 : i32
    %c0_i32_0 = arith.constant 0 : i32
    %c0_i32_1 = arith.constant 0 : i32
    return %c0_i32, %c0_i32_0 : i32, i32
  }
  func.func @transform_9(%arg0: i32) -> (i32, i32) {
    %c0_i32 = arith.constant 0 : i32
    %c0_i32_0 = arith.constant 0 : i32
    %c0_i32_1 = arith.constant 0 : i32
    return %c0_i32, %c0_i32_0 : i32, i32
  }
  func.func @transform_10(%arg0: i32) -> (i32, i32) {
    %c0_i32 = arith.constant 0 : i32
    %c0_i32_0 = arith.constant 0 : i32
    %c0_i32_1 = arith.constant 0 : i32
    return %c0_i32, %c0_i32_0 : i32, i32
  }
  func.func @transform_11(%arg0: i32) -> (i32, i32) {
    %c0_i32 = arith.constant 0 : i32
    %c0_i32_0 = arith.constant 0 : i32
    %c0_i32_1 = arith.constant 0 : i32
    return %c0_i32, %c0_i32_0 : i32, i32
  }
  func.func @transform_12(%arg0: i32) -> (i32, i32) {
    %c0_i32 = arith.constant 0 : i32
    %c0_i32_0 = arith.constant 0 : i32
    %c0_i32_1 = arith.constant 0 : i32
    return %c0_i32, %c0_i32_0 : i32, i32
  }
  func.func @transform_13(%arg0: i32) -> (i32, i32) {
    %c0_i32 = arith.constant 0 : i32
    %c0_i32_0 = arith.constant 0 : i32
    %c0_i32_1 = arith.constant 0 : i32
    return %c0_i32, %c0_i32_0 : i32, i32
  }
  func.func @transform_14(%arg0: i32) -> (i32, i32, i32) {
    %c0_i32 = arith.constant 0 : i32
    %c0_i32_0 = arith.constant 0 : i32
    %c0_i32_1 = arith.constant 0 : i32
    return %arg0, %c0_i32, %c0_i32_0 : i32, i32, i32
  }
}

</mosaic_0001>

<bundles_post_ra>
// kernel: interbert_forward.5
= control target key start
LH: loop header
LB: loop body
LE: loop exit
PB: predicated region body
PF: predicated region fallthrough
CT: control target
= control target key end

     0   :  { %s130_s0 = inlined_call_operand.vmem [shape: f32[24,128], index: 0, kind: input, shape index: {}]   ;;  %s131_s1 = inlined_call_operand.vmem [shape: f32[1,128], index: 1, kind: input, shape index: {}]   ;;  %s132_s2 = inlined_call_operand.vmem [shape: f32[1,128], index: 2, kind: input, shape index: {}]   ;;  %s133_s3 = inlined_call_operand.vmem [shape: f32[24,128], index: 3, kind: output, shape index: {}]  }
   0x1   :  { %v14_v0 = vld [vmem:[%s130_s0] sm:$0xff]  ;;  %v16_v1 = vld [vmem:[%s130_s0 + $0x10] sm:$0xff]  ;;  %v15_v2 = vld [vmem:[%s130_s0 + $0x8] sm:$0xff] }
   0x2   :  { %19 = vadd.xlane.f32.xlu0 %v14_v0  ;;  %23 = vadd.xlane.f32.xlu1 %v16_v1  ;;  %v78_v25 = vld [vmem:[%s131_s1] ss:$0 sm:$0xff] }
   0x3   :  { %v79_v27 = vld [vmem:[%s132_s2] ss:$0 sm:$0xff] }
   0x6   :  { %21 = vadd.xlane.f32.xlu0 %v15_v2 }
  0x8f   :  { %v20_v3 = vpop.xlane.xlu0 %19  ;;  %v24_v4 = vpop.xlane.xlu1 %23 }
  0x90   :  { %v26_v5 = vmul.f32 0.0078125, %v20_v3  ;;  %v28_v6 = vmul.f32 0.0078125, %v24_v4 }
  0x92   :  { %v29_v7 = vsub.f32 %v14_v0, %v26_v5  ;;  %v31_v8 = vsub.f32 %v16_v1, %v28_v6 }
  0x93   :  { %v22_v9 = vpop.xlane.xlu0 %21 }
  0x94   :  { %v27_v10 = vmul.f32 0.0078125, %v22_v9  ;;  %v32_v11 = vmul.f32 %v29_v7, %v29_v7  ;;  %v34_v13 = vmul.f32 %v31_v8, %v31_v8 }
  0x96   :  { %v30_v12 = vsub.f32 %v15_v2, %v27_v10  ;;  %35 = vadd.xlane.f32.xlu1 %v32_v11 }
  0x98   :  { %v33_v14 = vmul.f32 %v30_v12, %v30_v12 }
  0x9a   :  { %39 = vadd.xlane.f32.xlu1 %v34_v13  ;;  %37 = vadd.xlane.f32.xlu0 %v33_v14 }
 0x123   :  { %v36_v15 = vpop.xlane.xlu1 %35 }
 0x124   :  { %v41_v16 = vmul.f32 0.0078125, %v36_v15 }
 0x126   :  { %v44_v17 = vadd.f32 1e-12, %v41_v16 }
 0x127   :  { %v40_v18 = vpop.xlane.xlu1 %39  ;;  %v38_v19 = vpop.xlane.xlu0 %37 }
 0x128   :  { %80 = vrsqrt.f32 %v44_v17  ;;  %v43_v20 = vmul.f32 0.0078125, %v40_v18  ;;  %v42_v21 = vmul.f32 0.0078125, %v38_v19 }
 0x12a   :  { %v46_v22 = vadd.f32 1e-12, %v43_v20  ;;  %v45_v23 = vadd.f32 1e-12, %v42_v21 }
 0x12c   :  { %82 = vrsqrt.f32 %v46_v22 }
 0x12d   :  { %84 = vrsqrt.f32 %v45_v23 }
 0x132   :  { %v81_v24 = vpop.eup %80 }
 0x133   :  { %v50_v26 = vmul.f32 %v81_v24, %v29_v7 }
 0x135   :  { %v59_v28 = vmul.f32 %v78_v25, %v50_v26 }
 0x136   :  { %v83_v29 = vpop.eup %82 }
 0x137   :  { %v85_v30 = vpop.eup %84  ;;  %v68_v31 = vadd.f32 %v79_v27, %v59_v28  ;;  %v52_v32 = vmul.f32 %v83_v29, %v31_v8 }
 0x138   :  { %v51_v33 = vmul.f32 %v85_v30, %v30_v12 }
 0x139   :  { %71 = vst [vmem:[%s133_s3] sm:$0xff] %v68_v31  ;;  %v61_v34 = vmul.f32 %v78_v25, %v52_v32 }
 0x13a   :  { %v60_v35 = vmul.f32 %v78_v25, %v51_v33 }
 0x13b   :  { %v70_v36 = vadd.f32 %v79_v27, %v61_v34 }
 0x13c   :  { %v69_v37 = vadd.f32 %v79_v27, %v60_v35 }
 0x13d   :  { %73 = vst [vmem:[%s133_s3 + $0x10] sm:$0xff] %v70_v36 }
 0x13e   :  { %72 = vst [vmem:[%s133_s3 + $0x8] sm:$0xff] %v69_v37 }

// kernel: interbert_forward.6
= control target key start
LH: loop header
LB: loop body
LE: loop exit
PB: predicated region body
PF: predicated region fallthrough
CT: control target
= control target key end

     0   :  { %v547_v0 = vmov 0.0   ;;  %vm193_vm0 = vcmask 1041408   ;;  %vm548_vm1 = vmmov 0   ;;  %vm177_vm2 = vcmask 31744   ;;  %s808_s2 = inlined_call_operand.vmem [shape: bf16[32,128], index: 2, kind: input, shape index: {}]   ;;  %s809_s4 = inlined_call_operand.vmem [shape: bf16[4,128], index: 4, kind: input, shape index: {}]   ;;  %s810_s0 = inlined_call_operand.vmem [shape: f32[72,32], index: 0, kind: input, shape index: {}]   ;;  %s811_s1 = inlined_call_operand.vmem [shape: f32[72,4], index: 1, kind: input, shape index: {}]   ;;  %s812_s3 = inlined_call_operand.vmem [shape: f32[1,128], index: 3, kind: input, shape index: {}]   ;;  %s813_s5 = inlined_call_operand.vmem [shape: f32[1,128], index: 5, kind: input, shape index: {}]   ;;  %s814_s6 = inlined_call_operand.vmem [shape: f32[1,128], index: 6, kind: input, shape index: {}]   ;;  %s815_s7 = inlined_call_operand.vmem [shape: f32[1,128], index: 7, kind: input, shape index: {}]   ;;  %s816_s8 = inlined_call_operand.vmem [shape: f32[72,128], index: 8, kind: output, shape index: {}]  }
   0x1   :  { %452 = vmatprep.subr.bf16.mxu1 %v547_v0  ;;  %v527_v1 = vld [vmem:[%s808_s2] sm:$0xff]   ;;  %476 = vmatprep.subr.bf16.mxu0 %v547_v0  ;;  %v528_v2 = vld [vmem:[%s808_s2 + $0x8] sm:$0xff]   ;;  %vm67_vm3 = vcmask 261120   ;;  %v157_v11 = vld [vmem:[%s811_s1 + $0x10] sm:$0xff] }
   0x2   :  { %456 = vmatprep.mubr.msk.bf16.mxu1 %vm548_vm1, %v547_v0  ;;  %478 = vmatprep.mubr.msk.bf16.mxu0 %vm548_vm1, %v547_v0  ;;  %v164_v3 = vld [vmem:[%s809_s4] sm:$0x3]  ;;  %v31_v5 = vld [vmem:[%s810_s0 + $0x8] sm:$0xff]  ;;  %v158_v12 = vld [vmem:[%s811_s1 + $0x18] sm:$0xff] }
   0x3   :  { %453 = vmatpush3.bf16.msra.mxu1 %v527_v1  ;;  %v30_v4 = vld [vmem:[%s810_s0] sm:$0xff]  ;;  %v195_v6 = vsel %vm193_vm0, %v164_v3, 0  ;;  %v156_v8 = vld [vmem:[%s811_s1 + $0x8] sm:$0xff]  ;;  %v32_v13 = vld [vmem:[%s810_s0 + $0x10] sm:$0xff]  ;;  %v166_v15 = vpack.c.bf16 %v158_v12, %v157_v11 }
   0x4   :  { %454 = vmatprep.subr.bf16.mxu1 %v547_v0  ;;  %v155_v7 = vld [vmem:[%s811_s1] sm:$0xff]  ;;  %477 = vmatpush3.bf16.msra.mxu0 %v195_v6  ;;  %v43_v10 = vpack.c.bf16 %v31_v5, %v30_v4  ;;  %v33_v14 = vld [vmem:[%s810_s0 + $0x18] sm:$0xff]  ;;  %v160_v18 = vld [vmem:[%s811_s1 + $0x28] sm:$0xff] }
   0x5   :  { %v165_v9 = vpack.c.bf16 %v156_v8, %v155_v7  ;;  %v44_v16 = vpack.c.bf16 %v33_v14, %v32_v13  ;;  %v159_v17 = vld [vmem:[%s811_s1 + $0x20] sm:$0xff]  ;;  %v35_v20 = vld [vmem:[%s810_s0 + $0x28] sm:$0xff]  ;;  %v161_v23 = vld [vmem:[%s811_s1 + $0x30] sm:$0xff] }
   0x6   :  { %v34_v19 = vld [vmem:[%s810_s0 + $0x20] sm:$0xff]  ;;  %v167_v21 = vpack.c.bf16 %v160_v18, %v159_v17  ;;  %v162_v24 = vld [vmem:[%s811_s1 + $0x38] sm:$0xff]  ;;  %v36_v25 = vld [vmem:[%s810_s0 + $0x30] sm:$0xff] }
   0x7   :  { %455 = vmatpush3.bf16.msra.mxu1 %v528_v2  ;;  %479 = vmatmul.mubr.msk.bf16.vlgmr.msra.gmra.mrb[0].mxu0 %vm177_vm2, %v165_v9  ;;  %v45_v22 = vpack.c.bf16 %v35_v20, %v34_v19  ;;  %v37_v26 = vld [vmem:[%s810_s0 + $0x38] sm:$0xff]  ;;  %v168_v27 = vpack.c.bf16 %v162_v24, %v161_v23  ;;  %v163_v29 = vld [vmem:[%s811_s1 + $0x40] sm:$0xff] }
   0x8   :  { %482 = vmatprep.mubr.msk.bf16.mxu0 %vm548_vm1, %v547_v0  ;;  %v46_v28 = vpack.c.bf16 %v37_v26, %v36_v25  ;;  %v38_v30 = vld [vmem:[%s810_s0 + $0x40] sm:$0xff]  ;;  %v169_v31 = vpack.c.bf16 %v163_v29, %v163_v29 }
   0x9   :  { %v47_v32 = vpack.c.bf16 %v38_v30, %v38_v30  ;;  %v680_v33 = vld [vmem:[%s812_s3] ss:$0 sm:$0xff] }
   0xa   :  { %457 = vmatmul.mubr.msk.bf16.vlgmr.msra.gmra.mrb[0].mxu1 %vm67_vm3, %v43_v10  ;;  %v685_v37 = vld [vmem:[%s813_s5] ss:$0 sm:$0xff] }
   0xb   :  { %460 = vmatprep.mubr.msk.bf16.mxu1 %vm548_vm1, %v547_v0 }
   0xf   :  { %483 = vmatmul.mubr.msk.bf16.gmra.mrb[4].mxu0 %vm177_vm2, %v166_v15 }
  0x10   :  { %486 = vmatprep.mubr.msk.bf16.mxu0 %vm548_vm1, %v547_v0 }
  0x12   :  { %461 = vmatmul.mubr.msk.bf16.gmra.mrb[4].mxu1 %vm67_vm3, %v44_v16 }
  0x13   :  { %464 = vmatprep.mubr.msk.bf16.mxu1 %vm548_vm1, %v547_v0 }
  0x17   :  { %487 = vmatmul.mubr.msk.bf16.gmra.mrb[8].mxu0 %vm177_vm2, %v167_v21 }
  0x18   :  { %490 = vmatprep.mubr.msk.bf16.mxu0 %vm548_vm1, %v547_v0 }
  0x1a   :  { %465 = vmatmul.mubr.msk.bf16.gmra.mrb[8].mxu1 %vm67_vm3, %v45_v22 }
  0x1b   :  { %468 = vmatprep.mubr.msk.bf16.mxu1 %vm548_vm1, %v547_v0 }
  0x1f   :  { %491 = vmatmul.mubr.msk.bf16.gmra.mrb[12].mxu0 %vm177_vm2, %v168_v27 }
  0x20   :  { %494 = vmatprep.mubr.msk.bf16.mxu0 %vm548_vm1, %v547_v0 }
  0x22   :  { %469 = vmatmul.mubr.msk.bf16.gmra.mrb[12].mxu1 %vm67_vm3, %v46_v28 }
  0x23   :  { %472 = vmatprep.mubr.msk.bf16.mxu1 %vm548_vm1, %v547_v0 }
  0x27   :  { %495 = vmatmul.mubr.msk.bf16.gmra.mrb[16].mxu0 %vm177_vm2, %v169_v31 }
  0x2a   :  { %473 = vmatmul.mubr.msk.bf16.gmra.mrb[16].mxu1 %vm67_vm3, %v47_v32 }
  0xda   :  { %v231_v34 = vpop.f32.mrb[0].mxu0 }
  0xdb   :  { %v480_v35 = vpop.f32.mrb[1].mxu0 }
  0xdc   :  { %v234_v38 = vpop.f32.mrb[2].mxu0 }
  0xdd   :  { %v117_v36 = vpop.f32.mrb[0].mxu1  ;;  %v481_v41 = vpop.f32.mrb[3].mxu0 }
  0xde   :  { %v118_v39 = vadd.f32 %v680_v33, %v117_v36  ;;  %v458_v40 = vpop.f32.mrb[1].mxu1 }
  0xdf   :  { %v120_v42 = vpop.f32.mrb[2].mxu1 }
  0xe0   :  { %v499_v43 = vadd.f32 %v685_v37, %v118_v39  ;;  %v121_v44 = vadd.f32 %v680_v33, %v120_v42  ;;  %v459_v45 = vpop.f32.mrb[3].mxu1 }
  0xe2   :  { %v690_v46 = vadd.f32 %v499_v43, %v231_v34  ;;  %v502_v47 = vadd.f32 %v685_v37, %v121_v44  ;;  %v239_v48 = vpop.f32.mrb[4].mxu0 }
  0xe3   :  { %v484_v50 = vpop.f32.mrb[5].mxu0 }
  0xe4   :  { %v693_v49 = vadd.f32 %v502_v47, %v234_v38  ;;  %280 = vadd.xlane.f32.xlu0 %v690_v46  ;;  %v242_v52 = vpop.f32.mrb[6].mxu0 }
  0xe5   :  { %v125_v51 = vpop.f32.mrb[4].mxu1  ;;  %v485_v55 = vpop.f32.mrb[7].mxu0 }
  0xe6   :  { %v126_v53 = vadd.f32 %v680_v33, %v125_v51  ;;  %v462_v54 = vpop.f32.mrb[5].mxu1 }
  0xe7   :  { %v128_v56 = vpop.f32.mrb[6].mxu1 }
  0xe8   :  { %v505_v57 = vadd.f32 %v685_v37, %v126_v53  ;;  %v129_v58 = vadd.f32 %v680_v33, %v128_v56  ;;  %282 = vadd.xlane.f32.xlu0 %v693_v49  ;;  %v463_v59 = vpop.f32.mrb[7].mxu1 }
  0xea   :  { %v506_v60 = vadd.f32 %v505_v57, %v239_v48  ;;  %v508_v61 = vadd.f32 %v685_v37, %v129_v58  ;;  %v247_v62 = vpop.f32.mrb[8].mxu0 }
  0xeb   :  { %v488_v0 = vpop.f32.mrb[9].mxu0 }
  0xec   :  { %v509_v63 = vadd.f32 %v508_v61, %v242_v52  ;;  %284 = vadd.xlane.f32.xlu1 %v506_v60  ;;  %v250_v2 = vpop.f32.mrb[10].mxu0 }
  0xed   :  { %v133_v1 = vpop.f32.mrb[8].mxu1  ;;  %v489_v5 = vpop.f32.mrb[11].mxu0 }
  0xee   :  { %v134_v3 = vadd.f32 %v680_v33, %v133_v1  ;;  %v466_v4 = vpop.f32.mrb[9].mxu1 }
  0xef   :  { %v136_v6 = vpop.f32.mrb[10].mxu1 }
  0xf0   :  { %v511_v7 = vadd.f32 %v685_v37, %v134_v3  ;;  %v137_v8 = vadd.f32 %v680_v33, %v136_v6  ;;  %286 = vadd.xlane.f32.xlu1 %v509_v63  ;;  %v467_v9 = vpop.f32.mrb[11].mxu1 }
  0xf2   :  { %v512_v10 = vadd.f32 %v511_v7, %v247_v62  ;;  %v514_v11 = vadd.f32 %v685_v37, %v137_v8  ;;  %v255_v12 = vpop.f32.mrb[12].mxu0 }
  0xf3   :  { %v492_v14 = vpop.f32.mrb[13].mxu0 }
  0xf4   :  { %v515_v13 = vadd.f32 %v514_v11, %v250_v2  ;;  %288 = vadd.xlane.f32.xlu0 %v512_v10  ;;  %v258_v16 = vpop.f32.mrb[14].mxu0 }
  0xf5   :  { %v141_v15 = vpop.f32.mrb[12].mxu1  ;;  %v493_v19 = vpop.f32.mrb[15].mxu0 }
  0xf6   :  { %v142_v17 = vadd.f32 %v680_v33, %v141_v15  ;;  %290 = vadd.xlane.f32.xlu1 %v515_v13  ;;  %v470_v18 = vpop.f32.mrb[13].mxu1 }
  0xf7   :  { %v144_v20 = vpop.f32.mrb[14].mxu1 }
  0xf8   :  { %v517_v21 = vadd.f32 %v685_v37, %v142_v17  ;;  %v145_v22 = vadd.f32 %v680_v33, %v144_v20  ;;  %v471_v23 = vpop.f32.mrb[15].mxu1 }
  0xfa   :  { %v518_v24 = vadd.f32 %v517_v21, %v255_v12  ;;  %v520_v25 = vadd.f32 %v685_v37, %v145_v22  ;;  %v263_v26 = vpop.f32.mrb[16].mxu0  ;;  %v748_v22 = vld [vmem:[%s814_s6] ss:$0 sm:$0xff] }
  0xfb   :  { %v496_v28 = vpop.f32.mrb[17].mxu0 }
  0xfc   :  { %v521_v27 = vadd.f32 %v520_v25, %v258_v16  ;;  %292 = vadd.xlane.f32.xlu0 %v518_v24  ;;  %v266_v30 = vpop.f32.mrb[18].mxu0 }
  0xfd   :  { %v149_v29 = vpop.f32.mrb[16].mxu1  ;;  %v497_v34 = vpop.f32.mrb[19].mxu0 }
  0xfe   :  { %v150_v31 = vadd.f32 %v680_v33, %v149_v29  ;;  %294 = vadd.xlane.f32.xlu1 %v521_v27  ;;  %v474_v32 = vpop.f32.mrb[17].mxu1 }
  0xff   :  { %v152_v35 = vpop.f32.mrb[18].mxu1 }
 0x100   :  { %v523_v36 = vadd.f32 %v685_v37, %v150_v31  ;;  %v475_v38 = vpop.f32.mrb[19].mxu1 }
 0x102   :  { %v524_v39 = vadd.f32 %v523_v36, %v263_v26  ;;  %v753_v26 = vld [vmem:[%s815_s7] ss:$0 sm:$0xff] }
 0x104   :  { %296 = vadd.xlane.f32.xlu0 %v524_v39 }
 0x171   :  { %v281_v40 = vpop.xlane.xlu0 %280 }
 0x172   :  { %v299_v41 = vmul.f32 0.0078125, %v281_v40 }
 0x174   :  { %v308_v42 = vsub.f32 %v690_v46, %v299_v41 }
 0x175   :  { %v283_v43 = vpop.xlane.xlu0 %282 }
 0x176   :  { %v300_v44 = vmul.f32 0.0078125, %v283_v43  ;;  %v317_v45 = vmul.f32 %v308_v42, %v308_v42 }
 0x178   :  { %v713_v47 = vsub.f32 %v693_v49, %v300_v44  ;;  %326 = vadd.xlane.f32.xlu1 %v317_v45 }
 0x179   :  { %v285_v33 = vpop.xlane.xlu1 %284 }
 0x17a   :  { %v301_v48 = vmul.f32 0.0078125, %v285_v33  ;;  %v318_v50 = vmul.f32 %v713_v47, %v713_v47 }
 0x17c   :  { %v717_v37 = vsub.f32 %v506_v60, %v301_v48  ;;  %328 = vadd.xlane.f32.xlu0 %v318_v50 }
 0x17d   :  { %v287_v51 = vpop.xlane.xlu1 %286 }
 0x17e   :  { %v302_v52 = vmul.f32 0.0078125, %v287_v51  ;;  %v319_v46 = vmul.f32 %v717_v37, %v717_v37 }
 0x180   :  { %v721_v53 = vsub.f32 %v509_v63, %v302_v52  ;;  %330 = vadd.xlane.f32.xlu1 %v319_v46 }
 0x181   :  { %v289_v54 = vpop.xlane.xlu0 %288 }
 0x182   :  { %v303_v49 = vmul.f32 0.0078125, %v289_v54  ;;  %v320_v55 = vmul.f32 %v721_v53, %v721_v53 }
 0x183   :  { %v291_v56 = vpop.xlane.xlu1 %290 }
 0x184   :  { %v725_v57 = vsub.f32 %v512_v10, %v303_v49  ;;  %v304_v58 = vmul.f32 0.0078125, %v291_v56  ;;  %332 = vadd.xlane.f32.xlu0 %v320_v55 }
 0x186   :  { %v727_v59 = vsub.f32 %v515_v13, %v304_v58  ;;  %v321_v60 = vmul.f32 %v725_v57, %v725_v57 }
 0x188   :  { %334 = vadd.xlane.f32.xlu1 %v321_v60  ;;  %v322_v61 = vmul.f32 %v727_v59, %v727_v59 }
 0x189   :  { %v293_v62 = vpop.xlane.xlu0 %292 }
 0x18a   :  { %v305_v63 = vmul.f32 0.0078125, %v293_v62  ;;  %336 = vadd.xlane.f32.xlu0 %v322_v61 }
 0x18b   :  { %v295_v0 = vpop.xlane.xlu1 %294 }
 0x18c   :  { %v733_v1 = vsub.f32 %v518_v24, %v305_v63  ;;  %v306_v2 = vmul.f32 0.0078125, %v295_v0 }
 0x18e   :  { %v735_v3 = vsub.f32 %v521_v27, %v306_v2  ;;  %v323_v4 = vmul.f32 %v733_v1, %v733_v1 }
 0x190   :  { %338 = vadd.xlane.f32.xlu1 %v323_v4  ;;  %v324_v5 = vmul.f32 %v735_v3, %v735_v3 }
 0x191   :  { %v297_v6 = vpop.xlane.xlu0 %296 }
 0x192   :  { %v307_v7 = vmul.f32 0.0078125, %v297_v6  ;;  %340 = vadd.xlane.f32.xlu0 %v324_v5 }
 0x194   :  { %v741_v8 = vsub.f32 %v524_v39, %v307_v7 }
 0x196   :  { %v325_v9 = vmul.f32 %v741_v8, %v741_v8 }
 0x198   :  { %342 = vadd.xlane.f32.xlu1 %v325_v9 }
 0x205   :  { %v327_v10 = vpop.xlane.xlu1 %326 }
 0x206   :  { %v344_v11 = vmul.f32 0.0078125, %v327_v10 }
 0x208   :  { %v353_v12 = vadd.f32 1e-12, %v344_v11 }
 0x209   :  { %v329_v13 = vpop.xlane.xlu0 %328 }
 0x20a   :  { %529 = vrsqrt.f32 %v353_v12  ;;  %v345_v14 = vmul.f32 0.0078125, %v329_v13 }
 0x20c   :  { %v354_v15 = vadd.f32 1e-12, %v345_v14 }
 0x20d   :  { %v331_v16 = vpop.xlane.xlu1 %330 }
 0x20e   :  { %531 = vrsqrt.f32 %v354_v15  ;;  %v346_v17 = vmul.f32 0.0078125, %v331_v16 }
 0x210   :  { %v355_v18 = vadd.f32 1e-12, %v346_v17 }
 0x211   :  { %v333_v19 = vpop.xlane.xlu0 %332 }
 0x212   :  { %533 = vrsqrt.f32 %v355_v18  ;;  %v347_v20 = vmul.f32 0.0078125, %v333_v19 }
 0x214   :  { %v530_v21 = vpop.eup %529  ;;  %v356_v23 = vadd.f32 1e-12, %v347_v20 }
 0x215   :  { %v371_v24 = vmul.f32 %v530_v21, %v308_v42  ;;  %v335_v25 = vpop.xlane.xlu1 %334 }
 0x216   :  { %535 = vrsqrt.f32 %v356_v23  ;;  %v348_v27 = vmul.f32 0.0078125, %v335_v25 }
 0x217   :  { %v386_v28 = vmul.f32 %v748_v22, %v371_v24  ;;  %v337_v29 = vpop.xlane.xlu0 %336 }
 0x218   :  { %v532_v30 = vpop.eup %531  ;;  %v357_v31 = vadd.f32 1e-12, %v348_v27  ;;  %v349_v32 = vmul.f32 0.0078125, %v337_v29 }
 0x219   :  { %v401_v34 = vadd.f32 %v753_v26, %v386_v28  ;;  %v372_v35 = vmul.f32 %v532_v30, %v713_v47 }
 0x21a   :  { %537 = vrsqrt.f32 %v357_v31  ;;  %v358_v36 = vadd.f32 1e-12, %v349_v32 }
 0x21b   :  { %410 = vst [vmem:[%s816_s8] sm:$0xff] %v401_v34  ;;  %v387_v38 = vmul.f32 %v748_v22, %v372_v35 }
 0x21c   :  { %v534_v39 = vpop.eup %533  ;;  %539 = vrsqrt.f32 %v358_v36 }
 0x21d   :  { %v402_v40 = vadd.f32 %v753_v26, %v387_v38  ;;  %v373_v41 = vmul.f32 %v534_v39, %v717_v37  ;;  %v339_v42 = vpop.xlane.xlu1 %338 }
 0x21e   :  { %v350_v43 = vmul.f32 0.0078125, %v339_v42 }
 0x21f   :  { %411 = vst [vmem:[%s816_s8 + $0x8] sm:$0xff] %v402_v40  ;;  %v388_v44 = vmul.f32 %v748_v22, %v373_v41  ;;  %v341_v45 = vpop.xlane.xlu0 %340 }
 0x220   :  { %v536_v47 = vpop.eup %535  ;;  %v359_v33 = vadd.f32 1e-12, %v350_v43  ;;  %v351_v48 = vmul.f32 0.0078125, %v341_v45 }
 0x221   :  { %v403_v50 = vadd.f32 %v753_v26, %v388_v44  ;;  %v374_v51 = vmul.f32 %v536_v47, %v721_v53 }
 0x222   :  { %541 = vrsqrt.f32 %v359_v33  ;;  %v360_v52 = vadd.f32 1e-12, %v351_v48 }
 0x223   :  { %412 = vst [vmem:[%s816_s8 + $0x10] sm:$0xff] %v403_v50  ;;  %v389_v37 = vmul.f32 %v748_v22, %v374_v51 }
 0x224   :  { %v538_v46 = vpop.eup %537  ;;  %543 = vrsqrt.f32 %v360_v52 }
 0x225   :  { %v404_v54 = vadd.f32 %v753_v26, %v389_v37  ;;  %v375_v49 = vmul.f32 %v538_v46, %v725_v57  ;;  %v343_v55 = vpop.xlane.xlu1 %342 }
 0x226   :  { %v540_v56 = vpop.eup %539  ;;  %v352_v58 = vmul.f32 0.0078125, %v343_v55 }
 0x227   :  { %413 = vst [vmem:[%s816_s8 + $0x18] sm:$0xff] %v404_v54  ;;  %v390_v53 = vmul.f32 %v748_v22, %v375_v49  ;;  %v376_v60 = vmul.f32 %v540_v56, %v727_v59 }
 0x228   :  { %v361_v61 = vadd.f32 1e-12, %v352_v58 }
 0x229   :  { %v405_v62 = vadd.f32 %v753_v26, %v390_v53  ;;  %v391_v63 = vmul.f32 %v748_v22, %v376_v60 }
 0x22a   :  { %545 = vrsqrt.f32 %v361_v61 }
 0x22b   :  { %414 = vst [vmem:[%s816_s8 + $0x20] sm:$0xff] %v405_v62  ;;  %v406_v57 = vadd.f32 %v753_v26, %v391_v63 }
 0x22c   :  { %v542_v0 = vpop.eup %541 }
 0x22d   :  { %415 = vst [vmem:[%s816_s8 + $0x28] sm:$0xff] %v406_v57  ;;  %v377_v2 = vmul.f32 %v542_v0, %v733_v1 }
 0x22e   :  { %v544_v59 = vpop.eup %543 }
 0x22f   :  { %v392_v4 = vmul.f32 %v748_v22, %v377_v2  ;;  %v378_v5 = vmul.f32 %v544_v59, %v735_v3 }
 0x231   :  { %v407_v6 = vadd.f32 %v753_v26, %v392_v4  ;;  %v393_v7 = vmul.f32 %v748_v22, %v378_v5 }
 0x233   :  { %416 = vst [vmem:[%s816_s8 + $0x30] sm:$0xff] %v407_v6  ;;  %v408_v9 = vadd.f32 %v753_v26, %v393_v7 }
 0x234   :  { %v546_v10 = vpop.eup %545 }
 0x235   :  { %417 = vst [vmem:[%s816_s8 + $0x38] sm:$0xff] %v408_v9  ;;  %v379_v1 = vmul.f32 %v546_v10, %v741_v8 }
 0x237   :  { %v394_v11 = vmul.f32 %v748_v22, %v379_v1 }
 0x239   :  { %v409_v3 = vadd.f32 %v753_v26, %v394_v11 }
 0x23b   :  { %418 = vst [vmem:[%s816_s8 + $0x40] sm:$0xff] %v409_v3 }

// kernel: interbert_forward.9
= control target key start
LH: loop header
LB: loop body
LE: loop exit
PB: predicated region body
PF: predicated region fallthrough
CT: control target
= control target key end

     0   :  { %v220_v1 = vmov 0.0   ;;  %vm221_vm0 = vmmov 0   ;;  %s285_s0 = inlined_call_operand.vmem [shape: f32[2,128], index: 0, kind: input, shape index: {}]   ;;  %s286_s1 = inlined_call_operand.vmem [shape: bf16[128,128], index: 1, kind: input, shape index: {}]   ;;  %s287_s2 = inlined_call_operand.vmem [shape: f32[1,128], index: 2, kind: input, shape index: {}]   ;;  %s288_s3 = inlined_call_operand.hbm [shape: f32[2,128], index: 3, kind: output, shape index: {}]  }
   0x1   :  { %v186_v0 = vld [vmem:[%s286_s1] sm:$0xff]   ;;  %163 = vmatprep.subr.bf16.mxu0 %v220_v1  ;;  %v187_v2 = vld [vmem:[%s286_s1 + $0x8] sm:$0xff]   ;;  %179 = vmatprep.mubr.msk.bf16.mxu0 %vm221_vm0, %v220_v1  ;;  %v188_v3 = vld [vmem:[%s286_s1 + $0x10] sm:$0xff]  }
   0x2   :  { %164 = vmatpush3.bf16.msra.mxu0 %v186_v0 }
   0x3   :  { %165 = vmatprep.subr.bf16.mxu0 %v220_v1 }
   0x6   :  { %166 = vmatpush3.bf16.msra.mxu0 %v187_v2 }
   0x7   :  { %167 = vmatprep.subr.bf16.mxu0 %v220_v1 }
   0x8   :  { %8 = vsyncpa [#allocation3], 0  ;;  %v189_v4 = vld [vmem:[%s286_s1 + $0x18] sm:$0xff]   ;;  %v190_v5 = vld [vmem:[%s286_s1 + $0x20] sm:$0xff]   ;;  %s222_s5 = smov [#allocation2]  }
   0x9   :  { %v191_v6 = vld [vmem:[%s286_s1 + $0x28] sm:$0xff]   ;;  %v192_v7 = vld [vmem:[%s286_s1 + $0x30] sm:$0xff]   ;;  %v193_v8 = vld [vmem:[%s286_s1 + $0x38] sm:$0xff]   ;;  %s137_s1 = sshll.u32 %s222_s5, 4  ;;  %s138_s1 = int_to_ptr.vmem [resolvable:$true] %s137_s1 }
   0xa   :  { %168 = vmatpush3.bf16.msra.mxu0 %v188_v3  ;;  %v16_v9 = vld [vmem:[%s285_s0] sm:$0x3]  ;;  %s196_s0 = scalar_lea.vmem %s138_s1, 32  ;;  %p201_p1 = scmp.lt.s32.totalorder %s138_s1, %s138_s1 }
   0xb   :  { %169 = vmatprep.subr.bf16.mxu0 %v220_v1  ;;  %v33_v10 = vpack.c.bf16 %v16_v9, %v16_v9  ;;  %v145_v11 = vld [vmem:[%s287_s2] ss:$0 sm:$0xff]  ;;  %p197_p0 = scmp.ne.s32.totalorder %s138_s1, %s196_s0  ;;  %p202_p2 = scmp.lt.s32.totalorder %s196_s0, %s196_s0 }
   0xd   :  { %p203_p3 = por %p202_p2, %p201_p1 }
   0xe   :  { %170 = vmatpush3.bf16.msra.mxu0 %v189_v4 }
   0xf   :  { %171 = vmatprep.subr.bf16.mxu0 %v220_v1  ;;  %p204_p4 = pnand %p203_p3, %p197_p0 }
  0x12   :  { %172 = vmatpush3.bf16.msra.mxu0 %v190_v5 }
  0x13   :  { %173 = vmatprep.subr.bf16.mxu0 %v220_v1 }
  0x16   :  { %174 = vmatpush3.bf16.msra.mxu0 %v191_v6 }
  0x17   :  { %175 = vmatprep.subr.bf16.mxu0 %v220_v1 }
  0x1a   :  { %176 = vmatpush3.bf16.msra.mxu0 %v192_v7 }
  0x1b   :  { %177 = vmatprep.subr.bf16.mxu0 %v220_v1 }
  0x1e   :  { %178 = vmatpush3.bf16.msra.mxu0 %v193_v8 }
  0x21   :  { %180 = vmatmul.mubr.bf16.vlgmr.msra.gmra.mrb[0].mxu0 %v33_v10 }
  0xf4   :  { %v123_v12 = vpop.f32.mrb[0].mxu0 }
  0xf5   :  { %v124_v13 = vadd.f32 %v145_v11, %v123_v12  ;;  %v181_v14 = vpop.f32.mrb[1].mxu0 }
  0xf6   :  { %v126_v15 = vpop.f32.mrb[2].mxu0 }
  0xf7   :  { %194 = vtanh.f32 %v124_v13  ;;  %v182_v16 = vpop.f32.mrb[3].mxu0 }
 0x101   :  { %v195_v17 = vpop.eup %194 }
 0x102   :  { %130 = vst [vmem:[#allocation2] sm:$0x3] %v195_v17 }
 0x103   :  { %207 = shalt.err (!%p204_p4)
}
 0x104   :  { %s208_s7 = scalar_lea.hbm %s288_s3, 32 }
 0x105   :  { %p209_p5 = scmp.ne.s32.totalorder %s288_s3, %s208_s7  ;;  %p212_p6 = scmp.lt.u32.totalorder %s208_s7, %s288_s3 }
 0x107   :  { %p214_p7 = pnand %p212_p6, %p209_p5 }
 0x109   :  { %217 = shalt.err (!%p214_p7)
}
 0x10a   :  { %140 = dma.vmem_to_hbm [thread:$0]  %s138_s1, 32, %s288_s3, [#allocation3]  }
 0x10b   :  { %218 = dma.done.wait [#allocation3], 32  }
 0x10c   :  { %219 = vsyncadd [#allocation3], 4294967264 }
 0x10d   :  { %144 = vsyncpa [#allocation3], 1 }

// kernel: interbert_forward.7
= control target key start
LH: loop header
LB: loop body
LE: loop exit
PB: predicated region body
PF: predicated region fallthrough
CT: control target
= control target key end

     0   :  { %s4122_s29 = smov 0   ;;  %s5306_s0 = inlined_call_operand.vmem [shape: f32[2,48,128], index: 0, kind: input, shape index: {}]   ;;  %s5307_s1 = inlined_call_operand.vmem [shape: f32[2,1,48], index: 1, kind: input, shape index: {}]   ;;  %s5308_s2 = inlined_call_operand.vmem [shape: bf16[128,384], index: 2, kind: input, shape index: {}]   ;;  %s5309_s3 = inlined_call_operand.vmem [shape: f32[1,384], index: 3, kind: input, shape index: {}]   ;;  %s5310_s4 = inlined_call_operand.vmem [shape: bf16[128,128], index: 4, kind: input, shape index: {}]   ;;  %s5311_s5 = inlined_call_operand.vmem [shape: f32[1,128], index: 5, kind: input, shape index: {}]   ;;  %s5312_s6 = inlined_call_operand.vmem [shape: f32[1,128], index: 6, kind: input, shape index: {}]   ;;  %s5313_s7 = inlined_call_operand.vmem [shape: f32[1,128], index: 7, kind: input, shape index: {}]   ;;  %s5314_s8 = inlined_call_operand.vmem [shape: bf16[128,512], index: 8, kind: input, shape index: {}]   ;;  %s5315_s9 = inlined_call_operand.vmem [shape: f32[1,512], index: 9, kind: input, shape index: {}]   ;;  %s5316_s10 = inlined_call_operand.vmem [shape: bf16[512,128], index: 10, kind: input, shape index: {}]   ;;  %s5317_s11 = inlined_call_operand.vmem [shape: f32[1,128], index: 11, kind: input, shape index: {}]   ;;  %s5318_s12 = inlined_call_operand.vmem [shape: f32[1,128], index: 12, kind: input, shape index: {}]   ;;  %s5319_s13 = inlined_call_operand.vmem [shape: f32[1,128], index: 13, kind: input, shape index: {}]   ;;  %s5320_s14 = inlined_call_operand.vmem [shape: f32[2,48,128], index: 14, kind: output, shape index: {}]  }
   0x1 LB: > { %s3205_s30 = sadd.s32 4294967295, %s4039_s29   ;;  %p3209_p0 = scmp.ge.s32.totalorder %s4039_s29, 1  ;;  %s4039_s29 = sphi %s4122_s29, %s24_s29  }
   0x2   : > { %p420_p1 = scmp.lt.s32.totalorder %s4039_s29, 3 }
   0x4   : > { %p421_p2 = pnand %p3209_p0, %p420_p1 }
   0x5   : > { %v3739_v0 = vld [vmem:[%s5308_s2 + $0x4] ss:$12 sps:$4 sm:$0xff] (!%p421_p2)   ;;  %v3741_v1 = vld [vmem:[%s5308_s2] ss:$12 sps:$4 sm:$0xff] (!%p421_p2)   ;;  %v4041_v2 = vmov (!%p421_p2), 0   ;;  %v4042_v4 = vmov (!%p421_p2), 0.0   ;;  %v527_v35 = vlaneseq (!%p421_p2) }
   0x6   : > { %424 = sbr.rel (%p421_p2) target bundleno = 2723 (0xaa3), region = 76  ;;  %702 = vmatprep.mubr.bf16.mxu0 (!%p421_p2), %v4041_v2  ;;  %670 = vmatprep.subr.bf16.mxu0 (!%p421_p2), %v3739_v0  ;;  %v3742_v3 = vld [vmem:[%s5308_s2 + $0x1c] ss:$12 sps:$4 sm:$0xff] (!%p421_p2)   ;;  %v3744_v5 = vld [vmem:[%s5308_s2 + $0x18] ss:$12 sps:$4 sm:$0xff] (!%p421_p2)   ;;  %vm4043_vm0 = vmmov (!%p421_p2), 0  }
   0x7   : > { %3479 = vmatprep.subr.bf16.mxu1 (!%p421_p2), %v4042_v4  ;;  %671 = vmatpush1.bf16.msra.mxu0 (!%p421_p2), %v3741_v1  ;;  %v3745_v6 = vld [vmem:[%s5308_s2 + $0x34] ss:$12 sps:$4 sm:$0xff] (!%p421_p2)   ;;  %v3747_v7 = vld [vmem:[%s5308_s2 + $0x30] ss:$12 sps:$4 sm:$0xff] (!%p421_p2)   ;;  %v3748_v8 = vld [vmem:[%s5308_s2 + $0x4c] ss:$12 sps:$4 sm:$0xff] (!%p421_p2)  }
   0x8   : > { %3495 = vmatprep.mubr.msk.bf16.mxu1 (!%p421_p2), %vm4043_vm0, %v4042_v4  ;;  %672 = vmatprep.subr.bf16.mxu0 (!%p421_p2), %v3742_v3  ;;  %p469_p3 = scmp.lt.s32.totalorder (!%p421_p2), %s3205_s30, 1  ;;  %v3750_v9 = vld [vmem:[%s5308_s2 + $0x48] ss:$12 sps:$4 sm:$0xff] (!%p421_p2)   ;;  %v3751_v10 = vld [vmem:[%s5308_s2 + $0x64] ss:$12 sps:$4 sm:$0xff] (!%p421_p2)   ;;  %v4241_v36 = vshrl.u32 (!%p421_p2), %v527_v35, 7 }
   0x9   : > { %v3763_v11 = vld [vmem:[%s5308_s2 + $0x8] ss:$12 sps:$4 sm:$0xff] (!%p421_p2)   ;;  %v3753_v12 = vld [vmem:[%s5308_s2 + $0x60] ss:$12 sps:$4 sm:$0xff] (!%p421_p2)   ;;  %v3756_v15 = vld [vmem:[%s5308_s2 + $0x78] ss:$12 sps:$4 sm:$0xff] (!%p421_p2)  }
   0xa   : > { %3480 = vmatpush3.bf16.msra.mxu1 (!%p421_p2), %v3763_v11  ;;  %v3764_v13 = vld [vmem:[%s5308_s2 + $0x20] ss:$12 sps:$4 sm:$0xff] (!%p421_p2)   ;;  %v3754_v14 = vld [vmem:[%s5308_s2 + $0x7c] ss:$12 sps:$4 sm:$0xff] (!%p421_p2)   ;;  %v3765_v16 = vld [vmem:[%s5308_s2 + $0x38] ss:$12 sps:$4 sm:$0xff] (!%p421_p2)  }
   0xb   : > { %673 = vmatpush1.bf16.msra.mxu0 (!%p421_p2), %v3744_v5  ;;  %3481 = vmatprep.subr.bf16.mxu1 (!%p421_p2), %v4042_v4  ;;  %v3757_v17 = vld [vmem:[%s5308_s2 + $0x94] ss:$12 sps:$4 sm:$0xff] (!%p421_p2)   ;;  %v3759_v18 = vld [vmem:[%s5308_s2 + $0x90] ss:$12 sps:$4 sm:$0xff] (!%p421_p2)   ;;  %v3760_v20 = vld [vmem:[%s5308_s2 + $0xac] ss:$12 sps:$4 sm:$0xff] (!%p421_p2)  }
   0xc   : > { %674 = vmatprep.subr.bf16.mxu0 (!%p421_p2), %v3745_v6  ;;  %v3766_v19 = vld [vmem:[%s5308_s2 + $0x50] ss:$12 sps:$4 sm:$0xff] (!%p421_p2)   ;;  %v3762_v21 = vld [vmem:[%s5308_s2 + $0xa8] ss:$12 sps:$4 sm:$0xff] (!%p421_p2)   ;;  %v3768_v25 = vld [vmem:[%s5308_s2 + $0x80] ss:$12 sps:$4 sm:$0xff] (!%p421_p2)  }
   0xd   : > { %s5322_s30 = smov (!%p469_p3, %s3205_s30), 1  ;;  %v3767_v24 = vld [vmem:[%s5308_s2 + $0x68] ss:$12 sps:$4 sm:$0xff]   ;;  %v3769_v29 = vld [vmem:[%s5308_s2 + $0x98] ss:$12 sps:$4 sm:$0xff]   ;;  %v529_v37 = vsub.s32 0, %v4241_v36 }
   0xe   : > { %s3679_s27 = smul.u32 48, %s5322_s30  ;;  %3482 = vmatpush3.bf16.msra.mxu1 %v3764_v13  ;;  %v3770_v30 = vld [vmem:[%s5308_s2 + $0xb0] ss:$12 sps:$4 sm:$0xff]   ;;  %v4247_v38 = vld [vmem:[%s5309_s3] sm:$0x7]  ;;  %v533_v39 = vsub.s32 1, %v4241_v36  ;;  %s476_s21 = scalar_lea.vmem %s5307_s1, %s5322_s30 }
   0xf   : > { %675 = vmatpush1.bf16.msra.mxu0 %v3747_v7  ;;  %3483 = vmatprep.subr.bf16.mxu1 %v4042_v4  ;;  %v530_v40 = vrot.slane %v4247_v38, %v529_v37  ;;  %vm799_vm1 = vcmask 261120   ;;  %s4044_s16 = smov 96   ;;  %s4045_s17 = smov 64   ;;  %v537_v13 = vsub.s32 2, %v4241_v36  ;;  %vm893_vm2 = vcmask 392192  }
  0x10   : > { %676 = vmatprep.subr.bf16.mxu0 %v3748_v8  ;;  %s4201_s15 = scalar_lea.vmem %s5306_s0, %s3679_s27  ;;  %v534_v42 = vrot.slane %v4247_v38, %v533_v39  ;;  %s4046_s18 = smov 32   ;;  %vm1845_vm3 = vcmask 523264   ;;  %vm1852_vm4 = vcmask 785408  }
  0x11   : > { %v483_v22 = vld [vmem:[%s4201_s15] sm:$0xff]  ;;  %v484_v23 = vld [vmem:[%s4201_s15 + $0x8] sm:$0xff]  ;;  %v485_v27 = vld [vmem:[%s4201_s15 + $0x10] sm:$0xff] }
  0x12   : > { %3484 = vmatpush3.bf16.msra.mxu1 %v3765_v16  ;;  %v522_v26 = vpack.c.bf16 %v484_v23, %v483_v22  ;;  %v486_v28 = vld [vmem:[%s4201_s15 + $0x18] sm:$0xff]  ;;  %v487_v32 = vld [vmem:[%s4201_s15 + $0x20] sm:$0xff]  ;;  %v488_v33 = vld [vmem:[%s4201_s15 + $0x28] sm:$0xff]  ;;  %v538_v16 = vrot.slane %v4247_v38, %v537_v13 }
  0x13   : > { %677 = vmatpush1.bf16.msra.mxu0 %v3750_v9  ;;  %3485 = vmatprep.subr.bf16.mxu1 %v4042_v4  ;;  %v523_v31 = vpack.c.bf16 %v486_v28, %v485_v27  ;;  %v524_v34 = vpack.c.bf16 %v488_v33, %v487_v32 }
  0x14   : > { %678 = vmatprep.subr.bf16.mxu0 %v3751_v10 }
  0x16   : > { %3486 = vmatpush3.bf16.msra.mxu1 %v3766_v19 }
  0x17   : > { %679 = vmatpush1.bf16.msra.mxu0 %v3753_v12  ;;  %3487 = vmatprep.subr.bf16.mxu1 %v4042_v4 }
  0x18   : > { %680 = vmatprep.subr.bf16.mxu0 %v3754_v14 }
  0x1a   : > { %3488 = vmatpush3.bf16.msra.mxu1 %v3767_v24 }
  0x1b   : > { %681 = vmatpush1.bf16.msra.mxu0 %v3756_v15  ;;  %3489 = vmatprep.subr.bf16.mxu1 %v4042_v4 }
  0x1c   : > { %682 = vmatprep.subr.bf16.mxu0 %v3757_v17 }
  0x1e   : > { %3490 = vmatpush3.bf16.msra.mxu1 %v3768_v25 }
  0x1f   : > { %683 = vmatpush1.bf16.msra.mxu0 %v3759_v18  ;;  %3491 = vmatprep.subr.bf16.mxu1 %v4042_v4 }
  0x20   : > { %684 = vmatprep.subr.bf16.mxu0 %v3760_v20 }
  0x22   : > { %3492 = vmatpush3.bf16.msra.mxu1 %v3769_v29 }
  0x23   : > { %685 = vmatpush1.bf16.msra.mxu0 %v3762_v21  ;;  %3493 = vmatprep.subr.bf16.mxu1 %v4042_v4 }
  0x24   : > { %3543 = vmatprep.subr.bf16.mxu0 %v4042_v4 }
  0x26   : > { %703 = vmatmul.mubr.bf16.vlgmr.msra.gmra.mrb[0].mxu0 %v522_v26  ;;  %3494 = vmatpush3.bf16.msra.mxu1 %v3770_v30 }
  0x27   : > { %712 = vmatprep.mubr.bf16.mxu0 %v4041_v2  ;;  %3507 = vmatprep.subr.bf16.mxu1 %v4042_v4 }
  0x29   : > { %3496 = vmatmul.mubr.bf16.vlgmr.msra.gmra.mrb[0].mxu1 %v522_v26 }
  0x2a   : > { %3499 = vmatprep.mubr.msk.bf16.mxu1 %vm4043_vm0, %v4042_v4 }
  0x2e   : > { %713 = vmatmul.mubr.bf16.gmra.mrb[4].mxu0 %v523_v31 }
  0x2f   : > { %722 = vmatprep.mubr.bf16.mxu0 %v4041_v2 }
  0x31   : > { %3500 = vmatmul.mubr.bf16.gmra.mrb[4].mxu1 %v523_v31 }
  0x32   : > { %3503 = vmatprep.mubr.msk.bf16.mxu1 %vm4043_vm0, %v4042_v4 }
  0x36   : > { %723 = vmatmul.mubr.bf16.gmra.mrb[8].mxu0 %v524_v34 }
  0x37   : > { %3549 = vmatprep.mubr.msk.bf16.mxu0 %vm4043_vm0, %v4042_v4 }
  0x39   : > { %3504 = vmatmul.mubr.bf16.gmra.mrb[8].mxu1 %v524_v34 }
  0x3a   : > { %3513 = vmatprep.mubr.msk.bf16.mxu1 %vm4043_vm0, %v4042_v4 }
  0xf9   : > { %v704_v41 = vpop.f32.mrb[0].mxu0 }
  0xfa   : > { %v706_v43 = vpop.f32.mrb[1].mxu0  ;;  %v705_v45 = vadd.f32 %v704_v41, %v530_v40 }
  0xfb   : > { %v708_v44 = vpop.f32.mrb[2].mxu0  ;;  %v707_v48 = vadd.f32 %v706_v43, %v534_v42 }
  0xfc   : > { %v709_v46 = vadd.f32 %v708_v44, %v530_v40  ;;  %v710_v47 = vpop.f32.mrb[3].mxu0  ;;  %v767_v14 = vpop.f32.mrb[0].mxu1 }
  0xfd   : > { %v711_v49 = vadd.f32 %v710_v47, %v534_v42  ;;  %v3497_v15 = vpop.f32.mrb[1].mxu1  ;;  %v768_v19 = vadd.f32 %v767_v14, %v538_v16 }
  0xfe   : > { %v790_v50 = vpack.c.bf16 %v709_v46, %v705_v45  ;;  %v770_v17 = vpop.f32.mrb[2].mxu1 }
  0xff   : > { %v793_v51 = vpack.c.bf16 %v711_v49, %v707_v48  ;;  %v3498_v18 = vpop.f32.mrb[3].mxu1  ;;  %v771_v20 = vadd.f32 %v770_v17, %v538_v16 }
 0x101   : > { %v714_v52 = vpop.f32.mrb[4].mxu0  ;;  %1041 = vrot.lane.b32.xlu0 %v793_v51, %s4044_s16  ;;  %v810_v53 = vsel %vm799_vm1, %v793_v51, 0  ;;  %v4293_v21 = vpack.c.bf16 %v771_v20, %v768_v19 }
 0x102   : > { %v716_v54 = vpop.f32.mrb[5].mxu0  ;;  %3508 = vmatpush3.bf16.xpose.msra.mxu1 %v810_v53  ;;  %v715_v56 = vadd.f32 %v714_v52, %v530_v40 }
 0x103   : > { %v718_v55 = vpop.f32.mrb[6].mxu0  ;;  %3509 = vmatprep.subr.bf16.mxu1 %v4042_v4  ;;  %v717_v59 = vadd.f32 %v716_v54, %v534_v42 }
 0x104   : > { %v719_v57 = vadd.f32 %v718_v55, %v530_v40  ;;  %v720_v58 = vpop.f32.mrb[7].mxu0  ;;  %v775_v22 = vpop.f32.mrb[4].mxu1 }
 0x105   : > { %v721_v60 = vadd.f32 %v720_v58, %v534_v42  ;;  %v776_v23 = vadd.f32 %v775_v22, %v538_v16  ;;  %v3501_v24 = vpop.f32.mrb[5].mxu1 }
 0x106   : > { %v791_v61 = vpack.c.bf16 %v719_v57, %v715_v56  ;;  %v778_v25 = vpop.f32.mrb[6].mxu1 }
 0x107   : > { %v794_v62 = vpack.c.bf16 %v721_v60, %v717_v59  ;;  %v779_v26 = vadd.f32 %v778_v25, %v538_v16  ;;  %v3502_v27 = vpop.f32.mrb[7].mxu1 }
 0x109   : > { %v724_v63 = vpop.f32.mrb[8].mxu0  ;;  %1043 = vrot.lane.b32.xlu0 %v794_v62, %s4044_s16  ;;  %v813_v0 = vsel %vm799_vm1, %v794_v62, 0  ;;  %v4299_v28 = vpack.c.bf16 %v779_v26, %v776_v23 }
 0x10a   : > { %v726_v1 = vpop.f32.mrb[9].mxu0  ;;  %3510 = vmatpush3.bf16.xpose.msra.mxu1 %v813_v0  ;;  %v725_v5 = vadd.f32 %v724_v63, %v530_v40 }
 0x10b   : > { %v728_v3 = vpop.f32.mrb[10].mxu0  ;;  %3511 = vmatprep.subr.bf16.mxu1 %v4042_v4  ;;  %v727_v8 = vadd.f32 %v726_v1, %v534_v42 }
 0x10c   : > { %v729_v6 = vadd.f32 %v728_v3, %v530_v40  ;;  %v730_v7 = vpop.f32.mrb[11].mxu0  ;;  %v783_v29 = vpop.f32.mrb[8].mxu1  ;;  %v4360_v3 = vld [vmem:[%s476_s21] ss:$0 sm:$0xff] }
 0x10d   : > { %v731_v9 = vadd.f32 %v730_v7, %v534_v42  ;;  %1287 = vrot.lane.b32.xlu0 %v793_v51, %s4045_s17  ;;  %v784_v30 = vadd.f32 %v783_v29, %v538_v16  ;;  %v3505_v31 = vpop.f32.mrb[9].mxu1 }
 0x10e   : > { %v792_v10 = vpack.c.bf16 %v729_v6, %v725_v5  ;;  %v786_v32 = vpop.f32.mrb[10].mxu1 }
 0x10f   : > { %v795_v11 = vpack.c.bf16 %v731_v9, %v727_v8  ;;  %v787_v33 = vadd.f32 %v786_v32, %v538_v16  ;;  %v3506_v34 = vpop.f32.mrb[11].mxu1 }
 0x111   : > { %1045 = vrot.lane.b32.xlu1 %v795_v11, %s4044_s16  ;;  %1289 = vrot.lane.b32.xlu0 %v794_v62, %s4045_s17  ;;  %v816_v12 = vsel %vm799_vm1, %v795_v11, 0  ;;  %v4305_v35 = vpack.c.bf16 %v787_v33, %v784_v30 }
 0x112   : > { %3512 = vmatpush3.bf16.xpose.msra.mxu1 %v816_v12 }
 0x113   : > { %3525 = vmatprep.subr.bf16.mxu1 %v4042_v4 }
 0x115   : > { %1291 = vrot.lane.b32.xlu0 %v795_v11, %s4045_s17  ;;  %1032 = vrot.lane.b32.xlu1 %v790_v50, %s4044_s16 }
 0x119   : > { %1530 = vrot.lane.b32.xlu0 %v793_v51, %s4046_s18  ;;  %1034 = vrot.lane.b32.xlu1 %v791_v61, %s4044_s16 }
 0x11a   : > { %3514 = vmatmul.mubr.msk.bf16.vlgmr.msra.gmra.mrb[12].mxu1 %vm799_vm1, %v790_v50 }
 0x11b   : > { %3517 = vmatprep.mubr.msk.bf16.mxu1 %vm4043_vm0, %v4042_v4  ;;  %3526 = vmatpush3.bf16.msra.mxu1 %v4293_v21 }
 0x11c   : > { %3527 = vmatprep.subr.bf16.mxu1 %v4042_v4 }
 0x11d   : > { %1532 = vrot.lane.b32.xlu0 %v794_v62, %s4046_s18  ;;  %1036 = vrot.lane.b32.xlu1 %v792_v10, %s4044_s16 }
 0x11f   : > { %3528 = vmatpush3.bf16.msra.mxu1 %v4299_v28 }
 0x120   : > { %3529 = vmatprep.subr.bf16.mxu1 %v4042_v4 }
 0x121   : > { %1534 = vrot.lane.b32.xlu0 %v795_v11, %s4046_s18  ;;  %1281 = vrot.lane.b32.xlu1 %v790_v50, %s4045_s17 }
 0x122   : > { %3518 = vmatmul.mubr.msk.bf16.gmra.mrb[16].mxu1 %vm799_vm1, %v791_v61 }
 0x123   : > { %3521 = vmatprep.mubr.msk.bf16.mxu1 %vm4043_vm0, %v4042_v4  ;;  %3530 = vmatpush3.bf16.msra.mxu1 %v4305_v35 }
 0x124   : > { %3561 = vmatprep.subr.bf16.mxu1 %v4042_v4 }
 0x125   : > { %1526 = vrot.lane.b32.xlu0 %v791_v61, %s4046_s18  ;;  %1283 = vrot.lane.b32.xlu1 %v791_v61, %s4045_s17 }
 0x129   : > { %1285 = vrot.lane.b32.xlu1 %v792_v10, %s4045_s17  ;;  %1208 = vrot.lane.b32.xlu0 %v4299_v28, %s4044_s16 }
 0x12a   : > { %3522 = vmatmul.mubr.msk.bf16.gmra.mrb[20].mxu1 %vm799_vm1, %v792_v10 }
 0x12b   : > { %3531 = vmatprep.mubr.msk.bf16.mxu1 %vm4043_vm0, %v4042_v4 }
 0x12d   : > { %1524 = vrot.lane.b32.xlu1 %v790_v50, %s4046_s18 }
 0x131   : > { %1528 = vrot.lane.b32.xlu1 %v792_v10, %s4046_s18 }
 0x135   : > { %1206 = vrot.lane.b32.xlu1 %v4293_v21, %s4044_s16 }
 0x139   : > { %1210 = vrot.lane.b32.xlu1 %v4305_v35, %s4044_s16 }
 0x173   : > { %v1042_v38 = vpop.permute.xlu0 %1041 }
 0x174   : > { %v1057_v40 = vsel %vm799_vm1, %v1042_v38, 0 }
 0x175   : > { %3544 = vmatpush3.bf16.xpose.msra.mxu0 %v1057_v40 }
 0x176   : > { %3545 = vmatprep.subr.bf16.mxu0 %v4042_v4 }
 0x17b   : > { %v1044_v41 = vpop.permute.xlu0 %1043 }
 0x17c   : > { %v1060_v42 = vsel %vm799_vm1, %v1044_v41, 0 }
 0x17d   : > { %3546 = vmatpush3.bf16.xpose.msra.mxu0 %v1060_v42 }
 0x17e   : > { %3547 = vmatprep.subr.bf16.mxu0 %v4042_v4 }
 0x17f   : > { %v1288_v45 = vpop.permute.xlu0 %1287 }
 0x180   : > { %v1303_v47 = vsel %vm799_vm1, %v1288_v45, 0 }
 0x183   : > { %v1046_v43 = vpop.permute.xlu1 %1045  ;;  %v1290_v48 = vpop.permute.xlu0 %1289 }
 0x184   : > { %v1063_v44 = vsel %vm799_vm1, %v1046_v43, 0  ;;  %v1306_v50 = vsel %vm799_vm1, %v1290_v48, 0 }
 0x185   : > { %3548 = vmatpush3.bf16.xpose.msra.mxu0 %v1063_v44 }
 0x186   : > { %3579 = vmatprep.subr.bf16.mxu0 %v4042_v4 }
 0x187   : > { %v1033_v46 = vpop.permute.xlu1 %1032  ;;  %v1292_v51 = vpop.permute.xlu0 %1291 }
 0x188   : > { %v1309_v53 = vsel %vm799_vm1, %v1292_v51, 0 }
 0x18b   : > { %v1035_v49 = vpop.permute.xlu1 %1034  ;;  %v1531_v54 = vpop.permute.xlu0 %1530 }
 0x18c   : > { %3550 = vmatmul.mubr.msk.bf16.vlgmr.msra.gmra.mrb[12].mxu0 %vm799_vm1, %v1033_v46  ;;  %v1546_v56 = vsel %vm799_vm1, %v1531_v54, 0 }
 0x18d   : > { %3580 = vmatpush3.bf16.xpose.msra.mxu0 %v1303_v47  ;;  %3553 = vmatprep.mubr.msk.bf16.mxu0 %vm4043_vm0, %v4042_v4 }
 0x18e   : > { %3581 = vmatprep.subr.bf16.mxu0 %v4042_v4 }
 0x18f   : > { %v1037_v52 = vpop.permute.xlu1 %1036  ;;  %v1533_v57 = vpop.permute.xlu0 %1532 }
 0x190   : > { %v1549_v59 = vsel %vm799_vm1, %v1533_v57, 0 }
 0x193   : > { %v1282_v55 = vpop.permute.xlu1 %1281  ;;  %v1535_v60 = vpop.permute.xlu0 %1534 }
 0x194   : > { %3554 = vmatmul.mubr.msk.bf16.gmra.mrb[16].mxu0 %vm799_vm1, %v1035_v49  ;;  %v1552_v62 = vsel %vm799_vm1, %v1535_v60, 0 }
 0x195   : > { %3582 = vmatpush3.bf16.xpose.msra.mxu0 %v1306_v50  ;;  %3557 = vmatprep.mubr.msk.bf16.mxu0 %vm4043_vm0, %v4042_v4 }
 0x196   : > { %3583 = vmatprep.subr.bf16.mxu0 %v4042_v4 }
 0x197   : > { %v1284_v58 = vpop.permute.xlu1 %1283  ;;  %v1527_v0 = vpop.permute.xlu0 %1526 }
 0x19b   : > { %v1286_v61 = vpop.permute.xlu1 %1285 }
 0x19c   : > { %3558 = vmatmul.mubr.msk.bf16.gmra.mrb[20].mxu0 %vm799_vm1, %v1037_v52 }
 0x19d   : > { %3584 = vmatpush3.bf16.xpose.msra.mxu0 %v1309_v53  ;;  %3585 = vmatprep.mubr.msk.bf16.mxu0 %vm4043_vm0, %v4042_v4 }
 0x19e   : > { %3615 = vmatprep.subr.bf16.mxu0 %v4042_v4 }
 0x19f   : > { %v1525_v63 = vpop.permute.xlu1 %1524 }
 0x1a3   : > { %v1529_v1 = vpop.permute.xlu1 %1528 }
 0x1a4   : > { %3586 = vmatmul.mubr.msk.bf16.vlgmr.msra.gmra.mrb[24].mxu0 %vm799_vm1, %v1282_v55 }
 0x1a5   : > { %3616 = vmatpush3.bf16.xpose.msra.mxu0 %v1546_v56  ;;  %3589 = vmatprep.mubr.msk.bf16.mxu0 %vm4043_vm0, %v4042_v4 }
 0x1a6   : > { %3617 = vmatprep.subr.bf16.mxu0 %v4042_v4 }
 0x1ac   : > { %3590 = vmatmul.mubr.msk.bf16.gmra.mrb[28].mxu0 %vm799_vm1, %v1284_v58 }
 0x1ad   : > { %3618 = vmatpush3.bf16.xpose.msra.mxu0 %v1549_v59  ;;  %3593 = vmatprep.mubr.msk.bf16.mxu0 %vm4043_vm0, %v4042_v4 }
 0x1ae   : > { %3619 = vmatprep.subr.bf16.mxu0 %v4042_v4 }
 0x1b4   : > { %3594 = vmatmul.mubr.msk.bf16.gmra.mrb[32].mxu0 %vm799_vm1, %v1286_v61 }
 0x1b5   : > { %3620 = vmatpush3.bf16.xpose.msra.mxu0 %v1552_v62  ;;  %3621 = vmatprep.mubr.msk.bf16.mxu0 %vm4043_vm0, %v4042_v4 }
 0x1b6   : > { %3651 = vmatprep.subr.bf16.mxu0 %v4042_v4 }
 0x1bc   : > { %3622 = vmatmul.mubr.msk.bf16.vlgmr.msra.gmra.mrb[36].mxu0 %vm799_vm1, %v1525_v63 }
 0x1bd   : > { %3625 = vmatprep.mubr.msk.bf16.mxu0 %vm4043_vm0, %v4042_v4 }
 0x1c4   : > { %3626 = vmatmul.mubr.msk.bf16.gmra.mrb[40].mxu0 %vm799_vm1, %v1527_v0 }
 0x1c5   : > { %3629 = vmatprep.mubr.msk.bf16.mxu0 %vm4043_vm0, %v4042_v4 }
 0x1cc   : > { %3630 = vmatmul.mubr.msk.bf16.gmra.mrb[44].mxu0 %vm799_vm1, %v1529_v1 }
 0x1cd   : > { %3667 = vmatprep.mubr.msk.bf16.mxu0 %vm4043_vm0, %v4042_v4 }
 0x1ed   : > { %v852_v5 = vpop.f32.mrb[12].mxu1 }
 0x1ee   : > { %v875_v6 = vmul.f32 0.17677669, %v852_v5  ;;  %v3515_v7 = vpop.f32.mrb[13].mxu1 }
 0x1ef   : > { %v855_v8 = vpop.f32.mrb[14].mxu1 }
 0x1f0   : > { %v876_v9 = vmul.f32 0.17677669, %v855_v8  ;;  %v3516_v10 = vpop.f32.mrb[15].mxu1  ;;  %v4363_v11 = vadd.f32 %v4360_v3, %v875_v6 }
 0x1f2   : > { %v894_v12 = vsel %vm893_vm2, %v4363_v11, -inf  ;;  %v4368_v14 = vadd.f32 %v4360_v3, %v876_v9 }
 0x1f3   : > { %895 = vmax.xlane.f32.xlu0 %v894_v12 }
 0x1f4   : > { %v897_v15 = vsel %vm893_vm2, %v4368_v14, -inf }
 0x1f5   : > { %898 = vmax.xlane.f32.xlu1 %v897_v15  ;;  %v860_v16 = vpop.f32.mrb[16].mxu1 }
 0x1f6   : > { %v877_v17 = vmul.f32 0.17677669, %v860_v16  ;;  %v3519_v18 = vpop.f32.mrb[17].mxu1 }
 0x1f7   : > { %v863_v19 = vpop.f32.mrb[18].mxu1  ;;  %v4422_v18 = vpop.permute.xlu1 %1206 }
 0x1f8   : > { %v878_v20 = vmul.f32 0.17677669, %v863_v19  ;;  %v3520_v22 = vpop.f32.mrb[19].mxu1  ;;  %v4373_v23 = vadd.f32 %v4360_v3, %v877_v17 }
 0x1fa   : > { %v900_v24 = vsel %vm893_vm2, %v4373_v23, -inf  ;;  %v4378_v25 = vadd.f32 %v4360_v3, %v878_v20 }
 0x1fb   : > { %901 = vmax.xlane.f32.xlu0 %v900_v24  ;;  %v4427_v24 = vpop.permute.xlu0 %1208 }
 0x1fc   : > { %v903_v30 = vsel %vm893_vm2, %v4378_v25, -inf }
 0x1fd   : > { %v868_v26 = vpop.f32.mrb[20].mxu1 }
 0x1fe   : > { %v879_v27 = vmul.f32 0.17677669, %v868_v26  ;;  %v3523_v29 = vpop.f32.mrb[21].mxu1 }
 0x1ff   : > { %904 = vmax.xlane.f32.xlu0 %v903_v30  ;;  %v871_v31 = vpop.f32.mrb[22].mxu1  ;;  %v4434_v29 = vpop.permute.xlu1 %1210 }
 0x200   : > { %v880_v32 = vmul.f32 0.17677669, %v871_v31  ;;  %v3524_v33 = vpop.f32.mrb[23].mxu1  ;;  %v4383_v34 = vadd.f32 %v4360_v3, %v879_v27 }
 0x202   : > { %v906_v38 = vsel %vm893_vm2, %v4383_v34, -inf  ;;  %v4388_v40 = vadd.f32 %v4360_v3, %v880_v32 }
 0x203   : > { %907 = vmax.xlane.f32.xlu1 %v906_v38 }
 0x204   : > { %v909_v41 = vsel %vm893_vm2, %v4388_v40, -inf }
 0x205   : > { %910 = vmax.xlane.f32.xlu0 %v909_v41 }
 0x25f   : > { %v1099_v42 = vpop.f32.mrb[12].mxu0 }
 0x260   : > { %v1122_v43 = vmul.f32 0.17677669, %v1099_v42  ;;  %v3551_v44 = vpop.f32.mrb[13].mxu0 }
 0x261   : > { %v1102_v45 = vpop.f32.mrb[14].mxu0 }
 0x262   : > { %v1123_v46 = vmul.f32 0.17677669, %v1102_v45  ;;  %v3552_v47 = vpop.f32.mrb[15].mxu0  ;;  %v4393_v48 = vadd.f32 %v4360_v3, %v1122_v43 }
 0x264   : > { %v1134_v49 = vsel %vm893_vm2, %v4393_v48, -inf  ;;  %v4398_v50 = vadd.f32 %v4360_v3, %v1123_v46 }
 0x265   : > { %1135 = vmax.xlane.f32.xlu1 %v1134_v49 }
 0x266   : > { %v1137_v51 = vsel %vm893_vm2, %v4398_v50, -inf }
 0x267   : > { %v1107_v52 = vpop.f32.mrb[16].mxu0  ;;  %1138 = vmax.xlane.f32.xlu0 %v1137_v51 }
 0x268   : > { %v1124_v53 = vmul.f32 0.17677669, %v1107_v52  ;;  %v3555_v54 = vpop.f32.mrb[17].mxu0 }
 0x269   : > { %v1110_v55 = vpop.f32.mrb[18].mxu0 }
 0x26a   : > { %v1125_v56 = vmul.f32 0.17677669, %v1110_v55  ;;  %v3556_v57 = vpop.f32.mrb[19].mxu0  ;;  %v4403_v58 = vadd.f32 %v4360_v3, %v1124_v53 }
 0x26c   : > { %v1140_v59 = vsel %vm893_vm2, %v4403_v58, -inf  ;;  %v4408_v60 = vadd.f32 %v4360_v3, %v1125_v56 }
 0x26d   : > { %1141 = vmax.xlane.f32.xlu1 %v1140_v59 }
 0x26e   : > { %v1143_v61 = vsel %vm893_vm2, %v4408_v60, -inf }
 0x26f   : > { %v1115_v62 = vpop.f32.mrb[20].mxu0  ;;  %1144 = vmax.xlane.f32.xlu0 %v1143_v61 }
 0x270   : > { %v1126_v63 = vmul.f32 0.17677669, %v1115_v62  ;;  %v3559_v0 = vpop.f32.mrb[21].mxu0 }
 0x271   : > { %v1118_v1 = vpop.f32.mrb[22].mxu0 }
 0x272   : > { %v1127_v5 = vmul.f32 0.17677669, %v1118_v1  ;;  %v3560_v6 = vpop.f32.mrb[23].mxu0  ;;  %v4413_v7 = vadd.f32 %v4360_v3, %v1126_v63 }
 0x274   : > { %v1146_v8 = vsel %vm893_vm2, %v4413_v7, -inf  ;;  %v4418_v9 = vadd.f32 %v4360_v3, %v1127_v5 }
 0x275   : > { %1147 = vmax.xlane.f32.xlu1 %v1146_v8 }
 0x276   : > { %v1149_v10 = vsel %vm893_vm2, %v4418_v9, -inf }
 0x277   : > { %v1345_v12 = vpop.f32.mrb[24].mxu0  ;;  %1150 = vmax.xlane.f32.xlu0 %v1149_v10 }
 0x278   : > { %v1368_v15 = vmul.f32 0.17677669, %v1345_v12  ;;  %v3587_v16 = vpop.f32.mrb[25].mxu0 }
 0x279   : > { %v1348_v17 = vpop.f32.mrb[26].mxu0 }
 0x27a   : > { %v1369_v19 = vmul.f32 0.17677669, %v1348_v17  ;;  %v3588_v20 = vpop.f32.mrb[27].mxu0  ;;  %v4425_v22 = vadd.f32 %v4360_v3, %v1368_v15 }
 0x27c   : > { %v1380_v26 = vsel %vm893_vm2, %v4425_v22, -inf  ;;  %v4432_v27 = vadd.f32 %v4360_v3, %v1369_v19 }
 0x27d   : > { %1381 = vmax.xlane.f32.xlu1 %v1380_v26 }
 0x27e   : > { %v1383_v30 = vsel %vm893_vm2, %v4432_v27, -inf }
 0x27f   : > { %v1353_v31 = vpop.f32.mrb[28].mxu0  ;;  %1384 = vmax.xlane.f32.xlu0 %v1383_v30 }
 0x280   : > { %v1370_v32 = vmul.f32 0.17677669, %v1353_v31  ;;  %v896_v33 = vpop.xlane.xlu0 %895  ;;  %v3591_v38 = vpop.f32.mrb[29].mxu0 }
 0x281   : > { %v912_v41 = vsub.f32 %v4363_v11, %v896_v33  ;;  %v1356_v42 = vpop.f32.mrb[30].mxu0 }
 0x282   : > { %v1371_v43 = vmul.f32 0.17677669, %v1356_v42  ;;  %v899_v44 = vpop.xlane.xlu1 %898  ;;  %v3592_v45 = vpop.f32.mrb[31].mxu0  ;;  %v4440_v46 = vadd.f32 %v4360_v3, %v1370_v32 }
 0x283   : > { %v918_v47 = vmul.f32 1.442695, %v912_v41  ;;  %v913_v49 = vsub.f32 %v4368_v14, %v899_v44 }
 0x284   : > { %v1386_v51 = vsel %vm893_vm2, %v4440_v46, -inf  ;;  %v4446_v52 = vadd.f32 %v4360_v3, %v1371_v43 }
 0x285   : > { %3859 = vpow2.f32 %v918_v47  ;;  %v920_v53 = vmul.f32 1.442695, %v913_v49  ;;  %1387 = vmax.xlane.f32.xlu1 %v1386_v51 }
 0x286   : > { %v1389_v11 = vsel %vm893_vm2, %v4446_v52, -inf }
 0x287   : > { %3861 = vpow2.f32 %v920_v53  ;;  %v1361_v54 = vpop.f32.mrb[32].mxu0  ;;  %1390 = vmax.xlane.f32.xlu0 %v1389_v11 }
 0x288   : > { %v1372_v55 = vmul.f32 0.17677669, %v1361_v54  ;;  %v902_v56 = vpop.xlane.xlu0 %901  ;;  %v3595_v57 = vpop.f32.mrb[33].mxu0 }
 0x289   : > { %v914_v14 = vsub.f32 %v4373_v23, %v902_v56  ;;  %v1364_v59 = vpop.f32.mrb[34].mxu0 }
 0x28a   : > { %v1373_v61 = vmul.f32 0.17677669, %v1364_v59  ;;  %v3596_v62 = vpop.f32.mrb[35].mxu0  ;;  %v4452_v63 = vadd.f32 %v4360_v3, %v1372_v55 }
 0x28b   : > { %v922_v0 = vmul.f32 1.442695, %v914_v14 }
 0x28c   : > { %v905_v1 = vpop.xlane.xlu0 %904  ;;  %v1392_v5 = vsel %vm893_vm2, %v4452_v63, -inf  ;;  %v4457_v6 = vadd.f32 %v4360_v3, %v1373_v61 }
 0x28d   : > { %3863 = vpow2.f32 %v922_v0  ;;  %v915_v8 = vsub.f32 %v4378_v25, %v905_v1  ;;  %1393 = vmax.xlane.f32.xlu1 %v1392_v5 }
 0x28e   : > { %v1395_v23 = vsel %vm893_vm2, %v4457_v6, -inf }
 0x28f   : > { %v4462_v10 = vpop.eup %3859  ;;  %v924_v12 = vmul.f32 1.442695, %v915_v8  ;;  %v1588_v15 = vpop.f32.mrb[36].mxu0  ;;  %1396 = vmax.xlane.f32.xlu0 %v1395_v23 }
 0x290   : > { %v1611_v16 = vmul.f32 0.17677669, %v1588_v15  ;;  %v908_v17 = vpop.xlane.xlu1 %907  ;;  %v3623_v19 = vpop.f32.mrb[37].mxu0  ;;  %v930_v20 = vsel %vm893_vm2, %v4462_v10, 0.0 }
 0x291   : > { %v4466_v26 = vpop.eup %3861  ;;  %3865 = vpow2.f32 %v924_v12  ;;  %v916_v25 = vsub.f32 %v4383_v34, %v908_v17  ;;  %v1591_v30 = vpop.f32.mrb[38].mxu0  ;;  %931 = vadd.xlane.f32.xlu1 %v930_v20 }
 0x292   : > { %v1612_v31 = vmul.f32 0.17677669, %v1591_v30  ;;  %v911_v32 = vpop.xlane.xlu0 %910  ;;  %v3624_v33 = vpop.f32.mrb[39].mxu0  ;;  %v933_v38 = vsel %vm893_vm2, %v4466_v26, 0.0  ;;  %v4472_v41 = vadd.f32 %v4360_v3, %v1611_v16 }
 0x293   : > { %v926_v42 = vmul.f32 1.442695, %v916_v25  ;;  %v917_v43 = vsub.f32 %v4388_v40, %v911_v32  ;;  %934 = vadd.xlane.f32.xlu0 %v933_v38 }
 0x294   : > { %v1623_v44 = vsel %vm893_vm2, %v4472_v41, -inf  ;;  %v4478_v34 = vadd.f32 %v4360_v3, %v1612_v31 }
 0x295   : > { %3867 = vpow2.f32 %v926_v42  ;;  %v928_v45 = vmul.f32 1.442695, %v917_v43  ;;  %1624 = vmax.xlane.f32.xlu1 %v1623_v44 }
 0x296   : > { %v1626_v47 = vsel %vm893_vm2, %v4478_v34, -inf }
 0x297   : > { %v4482_v49 = vpop.eup %3863  ;;  %3869 = vpow2.f32 %v928_v45  ;;  %v1596_v51 = vpop.f32.mrb[40].mxu0  ;;  %1627 = vmax.xlane.f32.xlu0 %v1626_v47 }
 0x298   : > { %v1613_v53 = vmul.f32 0.17677669, %v1596_v51  ;;  %v3627_v40 = vpop.f32.mrb[41].mxu0  ;;  %v936_v11 = vsel %vm893_vm2, %v4482_v49, 0.0 }
 0x299   : > { %v1599_v54 = vpop.f32.mrb[42].mxu0  ;;  %937 = vadd.xlane.f32.xlu1 %v936_v11 }
 0x29a   : > { %v1614_v55 = vmul.f32 0.17677669, %v1599_v54  ;;  %v3628_v56 = vpop.f32.mrb[43].mxu0  ;;  %v4487_v57 = vadd.f32 %v4360_v3, %v1613_v53 }
 0x29b   : > { %v4489_v14 = vpop.eup %3865 }
 0x29c   : > { %v939_v59 = vsel %vm893_vm2, %v4489_v14, 0.0  ;;  %v1629_v61 = vsel %vm893_vm2, %v4487_v57, -inf  ;;  %v4496_v62 = vadd.f32 %v4360_v3, %v1614_v55 }
 0x29d   : > { %940 = vadd.xlane.f32.xlu0 %v939_v59  ;;  %1630 = vmax.xlane.f32.xlu1 %v1629_v61 }
 0x29e   : > { %v1632_v0 = vsel %vm893_vm2, %v4496_v62, -inf }
 0x29f   : > { %v4500_v1 = vpop.eup %3867  ;;  %v1604_v5 = vpop.f32.mrb[44].mxu0 }
 0x2a0   : > { %v1615_v8 = vmul.f32 0.17677669, %v1604_v5  ;;  %v3631_v23 = vpop.f32.mrb[45].mxu0  ;;  %v942_v12 = vsel %vm893_vm2, %v4500_v1, 0.0 }
 0x2a1   : > { %v4504_v15 = vpop.eup %3869  ;;  %1633 = vmax.xlane.f32.xlu0 %v1632_v0  ;;  %v1607_v16 = vpop.f32.mrb[46].mxu0  ;;  %943 = vadd.xlane.f32.xlu1 %v942_v12 }
 0x2a2   : > { %v3632_v17 = vpop.f32.mrb[47].mxu0  ;;  %v4507_v19 = vadd.f32 %v4360_v3, %v1615_v8  ;;  %v945_v20 = vsel %vm893_vm2, %v4504_v15, 0.0  ;;  %v1616_v30 = vmul.f32 0.17677669, %v1607_v16 }
 0x2a4   : > { %v1635_v25 = vsel %vm893_vm2, %v4507_v19, -inf  ;;  %v4518_v31 = vadd.f32 %v4360_v3, %v1616_v30 }
 0x2a5   : > { %946 = vadd.xlane.f32.xlu0 %v945_v20  ;;  %1636 = vmax.xlane.f32.xlu1 %v1635_v25 }
 0x2a6   : > { %v1638_v32 = vsel %vm893_vm2, %v4518_v31, -inf }
 0x2b6   : > { %1449 = vrot.lane.b32.xlu1 %v4293_v21, %s4045_s17 }
 0x2bb   : > { %1451 = vrot.lane.b32.xlu0 %v4299_v28, %s4045_s17 }
 0x2da   : > { %1639 = vmax.xlane.f32.xlu0 %v1638_v32 }
 0x2f2   : > { %v1136_v33 = vpop.xlane.xlu1 %1135 }
 0x2f3   : > { %v1152_v38 = vsub.f32 %v4393_v48, %v1136_v33 }
 0x2f4   : > { %v1139_v42 = vpop.xlane.xlu0 %1138 }
 0x2f5   : > { %v1158_v43 = vmul.f32 1.442695, %v1152_v38  ;;  %v1153_v44 = vsub.f32 %v4398_v50, %v1139_v42 }
 0x2f7   : > { %3871 = vpow2.f32 %v1158_v43  ;;  %v1160_v45 = vmul.f32 1.442695, %v1153_v44 }
 0x2f9   : > { %3873 = vpow2.f32 %v1160_v45 }
 0x2fa   : > { %v1142_v47 = vpop.xlane.xlu1 %1141 }
 0x2fb   : > { %v1154_v51 = vsub.f32 %v4403_v58, %v1142_v47 }
 0x2fc   : > { %v1145_v53 = vpop.xlane.xlu0 %1144 }
 0x2fd   : > { %v1162_v3 = vmul.f32 1.442695, %v1154_v51  ;;  %v1155_v40 = vsub.f32 %v4408_v60, %v1145_v53 }
 0x2ff   : > { %3875 = vpow2.f32 %v1162_v3  ;;  %v1164_v11 = vmul.f32 1.442695, %v1155_v40 }
 0x301   : > { %v4526_v54 = vpop.eup %3871  ;;  %3877 = vpow2.f32 %v1164_v11 }
 0x302   : > { %v1148_v48 = vpop.xlane.xlu1 %1147  ;;  %v1170_v55 = vsel %vm893_vm2, %v4526_v54, 0.0 }
 0x303   : > { %v4530_v50 = vpop.eup %3873  ;;  %v1156_v56 = vsub.f32 %v4413_v7, %v1148_v48  ;;  %1171 = vadd.xlane.f32.xlu1 %v1170_v55 }
 0x304   : > { %v1151_v59 = vpop.xlane.xlu0 %1150  ;;  %v1173_v58 = vsel %vm893_vm2, %v4530_v50, 0.0 }
 0x305   : > { %v1166_v61 = vmul.f32 1.442695, %v1156_v56  ;;  %v1157_v60 = vsub.f32 %v4418_v9, %v1151_v59  ;;  %1174 = vadd.xlane.f32.xlu0 %v1173_v58 }
 0x307   : > { %3879 = vpow2.f32 %v1166_v61  ;;  %v1168_v0 = vmul.f32 1.442695, %v1157_v60 }
 0x309   : > { %v4536_v5 = vpop.eup %3875  ;;  %3881 = vpow2.f32 %v1168_v0 }
 0x30a   : > { %v1382_v8 = vpop.xlane.xlu1 %1381  ;;  %v1176_v23 = vsel %vm893_vm2, %v4536_v5, 0.0 }
 0x30b   : > { %v4540_v12 = vpop.eup %3877  ;;  %v1398_v7 = vsub.f32 %v4425_v22, %v1382_v8  ;;  %1177 = vadd.xlane.f32.xlu1 %v1176_v23 }
 0x30c   : > { %v1385_v16 = vpop.xlane.xlu0 %1384  ;;  %v1179_v17 = vsel %vm893_vm2, %v4540_v12, 0.0 }
 0x30d   : > { %v1404_v9 = vmul.f32 1.442695, %v1398_v7  ;;  %v1399_v20 = vsub.f32 %v4432_v27, %v1385_v16  ;;  %1180 = vadd.xlane.f32.xlu0 %v1179_v17 }
 0x30f   : > { %3883 = vpow2.f32 %v1404_v9  ;;  %v1406_v25 = vmul.f32 1.442695, %v1399_v20 }
 0x311   : > { %v4546_v30 = vpop.eup %3879  ;;  %3885 = vpow2.f32 %v1406_v25 }
 0x312   : > { %v1388_v32 = vpop.xlane.xlu1 %1387  ;;  %v1182_v33 = vsel %vm893_vm2, %v4546_v30, 0.0 }
 0x313   : > { %v4550_v38 = vpop.eup %3881  ;;  %v1400_v22 = vsub.f32 %v4440_v46, %v1388_v32  ;;  %1183 = vadd.xlane.f32.xlu1 %v1182_v33 }
 0x314   : > { %v1391_v42 = vpop.xlane.xlu0 %1390  ;;  %v1185_v43 = vsel %vm893_vm2, %v4550_v38, 0.0 }
 0x315   : > { %v1408_v27 = vmul.f32 1.442695, %v1400_v22  ;;  %v1401_v44 = vsub.f32 %v4446_v52, %v1391_v42  ;;  %1186 = vadd.xlane.f32.xlu0 %v1185_v43 }
 0x317   : > { %3887 = vpow2.f32 %v1408_v27  ;;  %v1410_v45 = vmul.f32 1.442695, %v1401_v44 }
 0x319   : > { %v4556_v47 = vpop.eup %3883  ;;  %3889 = vpow2.f32 %v1410_v45 }
 0x31a   : > { %v1394_v51 = vpop.xlane.xlu1 %1393  ;;  %v1416_v53 = vsel %vm893_vm2, %v4556_v47, 0.0 }
 0x31b   : > { %v4560_v3 = vpop.eup %3885  ;;  %v1402_v46 = vsub.f32 %v4452_v63, %v1394_v51  ;;  %1417 = vadd.xlane.f32.xlu1 %v1416_v53 }
 0x31c   : > { %v1397_v40 = vpop.xlane.xlu0 %1396  ;;  %v1419_v11 = vsel %vm893_vm2, %v4560_v3, 0.0 }
 0x31d   : > { %v1412_v52 = vmul.f32 1.442695, %v1402_v46  ;;  %v1403_v48 = vsub.f32 %v4457_v6, %v1397_v40  ;;  %1420 = vadd.xlane.f32.xlu0 %v1419_v11 }
 0x31e   : > { %v932_v55 = vpop.xlane.xlu1 %931 }
 0x31f   : > { %3891 = vpow2.f32 %v1412_v52  ;;  %v1414_v56 = vmul.f32 1.442695, %v1403_v48 }
 0x320   : > { %3893 = vrcp.f32 %v932_v55  ;;  %v935_v59 = vpop.xlane.xlu0 %934 }
 0x321   : > { %v4566_v58 = vpop.eup %3887  ;;  %3895 = vpow2.f32 %v1414_v56 }
 0x322   : > { %3897 = vrcp.f32 %v935_v59  ;;  %v1625_v61 = vpop.xlane.xlu1 %1624  ;;  %v1422_v63 = vsel %vm893_vm2, %v4566_v58, 0.0 }
 0x323   : > { %v4570_v60 = vpop.eup %3889  ;;  %v1641_v0 = vsub.f32 %v4472_v41, %v1625_v61  ;;  %1423 = vadd.xlane.f32.xlu0 %v1422_v63 }
 0x324   : > { %v1628_v6 = vpop.xlane.xlu0 %1627  ;;  %v1425_v16 = vsel %vm893_vm2, %v4570_v60, 0.0 }
 0x325   : > { %v1647_v8 = vmul.f32 1.442695, %v1641_v0  ;;  %v1642_v23 = vsub.f32 %v4478_v34, %v1628_v6 }
 0x326   : > { %v938_v7 = vpop.xlane.xlu1 %937 }
 0x327   : > { %3899 = vpow2.f32 %v1647_v8  ;;  %v1649_v17 = vmul.f32 1.442695, %v1642_v23  ;;  %1426 = vadd.xlane.f32.xlu0 %v1425_v16 }
 0x328   : > { %3901 = vrcp.f32 %v938_v7 }
 0x329   : > { %v4576_v9 = vpop.eup %3891  ;;  %3903 = vpow2.f32 %v1649_v17 }
 0x32a   : > { %v3894_v20 = vpop.eup %3893  ;;  %v941_v25 = vpop.xlane.xlu0 %940  ;;  %v1428_v41 = vsel %vm893_vm2, %v4576_v9, 0.0 }
 0x32b   : > { %v1631_v32 = vpop.xlane.xlu1 %1630  ;;  %v4580_v33 = vpop.eup %3895  ;;  %3905 = vrcp.f32 %v941_v25  ;;  %1429 = vadd.xlane.f32.xlu0 %v1428_v41  ;;  %v954_v42 = vmul.f32 %v3894_v20, %v4462_v10 }
 0x32c   : > { %v1643_v34 = vsub.f32 %v4487_v57, %v1631_v32  ;;  %v3898_v22 = vpop.eup %3897  ;;  %v1431_v45 = vsel %vm893_vm2, %v4580_v33, 0.0 }
 0x32d   : > { %v955_v43 = vmul.f32 %v3898_v22, %v4466_v26 }
 0x32e   : > { %v1651_v27 = vmul.f32 1.442695, %v1643_v34  ;;  %v1634_v44 = vpop.xlane.xlu0 %1633 }
 0x32f   : > { %v960_v51 = vpack.c.bf16 %v955_v43, %v954_v42  ;;  %v944_v53 = vpop.xlane.xlu1 %943  ;;  %1432 = vadd.xlane.f32.xlu0 %v1431_v45 }
 0x330   : > { %3907 = vpow2.f32 %v1651_v27 }
 0x331   : > { %v4587_v46 = vpop.eup %3899  ;;  %3532 = vmatmul.mubr.msk.bf16.vlgmr.msra.gmra.mrb[24].mxu1 %vm893_vm2, %v960_v51  ;;  %3909 = vrcp.f32 %v944_v53 }
 0x332   : > { %v3902_v57 = vpop.eup %3901  ;;  %3562 = vmatpush3.bf16.msra.mxu1 %v4422_v18  ;;  %v947_v10 = vpop.xlane.xlu0 %946  ;;  %v1659_v26 = vsel %vm893_vm2, %v4587_v46, 0.0  ;;  %3535 = vmatprep.mubr.msk.bf16.mxu1 %vm4043_vm0, %v4042_v4 }
 0x333   : > { %v4595_v40 = vpop.eup %3903  ;;  %1660 = vadd.xlane.f32.xlu1 %v1659_v26  ;;  %3563 = vmatprep.subr.bf16.mxu1 %v4042_v4  ;;  %3911 = vrcp.f32 %v947_v10  ;;  %v956_v18 = vmul.f32 %v3902_v57, %v4482_v49 }
 0x334   : > { %v1662_v11 = vsel %vm893_vm2, %v4595_v40, 0.0 }
 0x335   : > { %v3906_v52 = vpop.eup %3905  ;;  %1663 = vadd.xlane.f32.xlu0 %v1662_v11 }
 0x336   : > { %3564 = vmatpush3.bf16.msra.mxu1 %v4427_v24  ;;  %v957_v48 = vmul.f32 %v3906_v52, %v4489_v14  ;;  %v1452_v8 = vpop.permute.xlu0 %1451 }
 0x337   : > { %3565 = vmatprep.subr.bf16.mxu1 %v4042_v4 }
 0x338   : > { %v961_v55 = vpack.c.bf16 %v957_v48, %v956_v18 }
 0x33a   : > { %v4604_v56 = vpop.eup %3907  ;;  %3566 = vmatpush3.bf16.msra.mxu1 %v4434_v29  ;;  %v1644_v29 = vsub.f32 %v4496_v62, %v1634_v44 }
 0x33b   : > { %v1665_v59 = vsel %vm893_vm2, %v4604_v56, 0.0  ;;  %3536 = vmatmul.mubr.msk.bf16.gmra.mrb[28].mxu1 %vm893_vm2, %v961_v55  ;;  %v3910_v61 = vpop.eup %3909  ;;  %3597 = vmatprep.subr.bf16.mxu1 %v4042_v4 }
 0x33c   : > { %1666 = vadd.xlane.f32.xlu0 %v1665_v59  ;;  %3539 = vmatprep.mubr.msk.bf16.mxu1 %vm4043_vm0, %v4042_v4  ;;  %v958_v49 = vmul.f32 %v3910_v61, %v4500_v1  ;;  %v1653_v1 = vmul.f32 1.442695, %v1644_v29 }
 0x33d   : > { %v3912_v24 = vpop.eup %3911 }
 0x33e   : > { %v959_v14 = vmul.f32 %v3912_v24, %v4504_v15  ;;  %3913 = vpow2.f32 %v1653_v1  ;;  %v1637_v15 = vpop.xlane.xlu1 %1636 }
 0x33f   : > { %v1645_v0 = vsub.f32 %v4507_v19, %v1637_v15 }
 0x340   : > { %v962_v63 = vpack.c.bf16 %v959_v14, %v958_v49 }
 0x341   : > { %v1655_v6 = vmul.f32 1.442695, %v1645_v0 }
 0x342   : > { %v1450_v25 = vpop.permute.xlu1 %1449 }
 0x343   : > { %3540 = vmatmul.mubr.msk.bf16.gmra.mrb[32].mxu1 %vm893_vm2, %v962_v63  ;;  %3915 = vpow2.f32 %v1655_v6 }
 0x344   : > { %1453 = vrot.lane.b32.xlu1 %v4305_v35, %s4045_s17  ;;  %3567 = vmatprep.mubr.msk.bf16.mxu1 %vm4043_vm0, %v4042_v4 }
 0x348   : > { %v4626_v23 = vpop.eup %3913 }
 0x349   : > { %v1668_v16 = vsel %vm893_vm2, %v4626_v23, 0.0 }
 0x352   : > { %1692 = vrot.lane.b32.xlu0 %v4293_v21, %s4046_s18 }
 0x356   : > { %1694 = vrot.lane.b32.xlu0 %v4299_v28, %s4046_s18  ;;  %v4631_v28 = vpop.eup %3915 }
 0x357   : > { %v1671_v17 = vsel %vm893_vm2, %v4631_v28, 0.0 }
 0x367   : > { %v1640_v7 = vpop.xlane.xlu0 %1639 }
 0x368   : > { %v1646_v21 = vsub.f32 %v4518_v31, %v1640_v7  ;;  %1669 = vadd.xlane.f32.xlu1 %v1668_v16 }
 0x36a   : > { %v1657_v62 = vmul.f32 1.442695, %v1646_v21 }
 0x36c   : > { %3917 = vpow2.f32 %v1657_v62 }
 0x375   : > { %1672 = vadd.xlane.f32.xlu0 %v1671_v17 }
 0x376   : > { %v4635_v19 = vpop.eup %3917 }
 0x377   : > { %v1674_v20 = vsel %vm893_vm2, %v4635_v19, 0.0 }
 0x379   : > { %1675 = vadd.xlane.f32.xlu0 %v1674_v20 }
 0x38f   : > { %1696 = vrot.lane.b32.xlu0 %v4305_v35, %s4046_s18 }
 0x390   : > { %v1172_v31 = vpop.xlane.xlu1 %1171 }
 0x391   : > { %3919 = vrcp.f32 %v1172_v31 }
 0x392   : > { %v1175_v32 = vpop.xlane.xlu0 %1174 }
 0x393   : > { %3921 = vrcp.f32 %v1175_v32 }
 0x398   : > { %v1178_v41 = vpop.xlane.xlu1 %1177 }
 0x399   : > { %3923 = vrcp.f32 %v1178_v41 }
 0x39a   : > { %v1181_v34 = vpop.xlane.xlu0 %1180 }
 0x39b   : > { %v3920_v22 = vpop.eup %3919  ;;  %3925 = vrcp.f32 %v1181_v34 }
 0x39c   : > { %v1194_v43 = vmul.f32 %v3920_v22, %v4526_v54 }
 0x39d   : > { %v3922_v42 = vpop.eup %3921 }
 0x39e   : > { %v1195_v27 = vmul.f32 %v3922_v42, %v4530_v50 }
 0x3a0   : > { %v1200_v44 = vpack.c.bf16 %v1195_v27, %v1194_v43  ;;  %v1184_v45 = vpop.xlane.xlu1 %1183 }
 0x3a1   : > { %3927 = vrcp.f32 %v1184_v45 }
 0x3a2   : > { %3568 = vmatmul.mubr.msk.bf16.vlgmr.msra.gmra.mrb[36].mxu1 %vm893_vm2, %v1200_v44  ;;  %v1187_v35 = vpop.xlane.xlu0 %1186 }
 0x3a3   : > { %v3924_v51 = vpop.eup %3923  ;;  %3598 = vmatpush3.bf16.msra.mxu1 %v1450_v25  ;;  %3929 = vrcp.f32 %v1187_v35  ;;  %3571 = vmatprep.mubr.msk.bf16.mxu1 %vm4043_vm0, %v4042_v4 }
 0x3a4   : > { %3599 = vmatprep.subr.bf16.mxu1 %v4042_v4  ;;  %v1196_v57 = vmul.f32 %v3924_v51, %v4536_v5 }
 0x3a5   : > { %v3926_v53 = vpop.eup %3925 }
 0x3a6   : > { %v1197_v54 = vmul.f32 %v3926_v53, %v4540_v12 }
 0x3a7   : > { %3600 = vmatpush3.bf16.msra.mxu1 %v1452_v8 }
 0x3a8   : > { %v1201_v50 = vpack.c.bf16 %v1197_v54, %v1196_v57  ;;  %3601 = vmatprep.subr.bf16.mxu1 %v4042_v4  ;;  %v1418_v12 = vpop.xlane.xlu1 %1417 }
 0x3aa   : > { %3572 = vmatmul.mubr.msk.bf16.gmra.mrb[40].mxu1 %vm893_vm2, %v1201_v50  ;;  %v1421_v26 = vpop.xlane.xlu0 %1420 }
 0x3ab   : > { %v3928_v10 = vpop.eup %3927  ;;  %3575 = vmatprep.mubr.msk.bf16.mxu1 %vm4043_vm0, %v4042_v4  ;;  %3931 = vrcp.f32 %v1421_v26 }
 0x3ac   : > { %v1198_v52 = vmul.f32 %v3928_v10, %v4546_v30  ;;  %3933 = vrcp.f32 %v1418_v12 }
 0x3ad   : > { %v3930_v11 = vpop.eup %3929 }
 0x3ae   : > { %v1199_v18 = vmul.f32 %v3930_v11, %v4550_v38 }
 0x3b0   : > { %v1424_v48 = vpop.xlane.xlu0 %1423  ;;  %v1202_v5 = vpack.c.bf16 %v1199_v18, %v1198_v52 }
 0x3b2   : > { %3576 = vmatmul.mubr.msk.bf16.gmra.mrb[44].mxu1 %vm893_vm2, %v1202_v5 }
 0x3b3   : > { %3603 = vmatprep.mubr.msk.bf16.mxu1 %vm4043_vm0, %v4042_v4 }
 0x3b4   : > { %v1427_v55 = vpop.xlane.xlu0 %1426 }
 0x3b5   : > { %3935 = vrcp.f32 %v1427_v55  ;;  %v3932_v61 = vpop.eup %3931 }
 0x3b6   : > { %3937 = vrcp.f32 %v1424_v48  ;;  %v3934_v30 = vpop.eup %3933  ;;  %v1441_v38 = vmul.f32 %v3932_v61, %v4560_v3 }
 0x3b7   : > { %v1440_v14 = vmul.f32 %v3934_v30, %v4556_v47 }
 0x3b8   : > { %v1430_v59 = vpop.xlane.xlu0 %1429 }
 0x3b9   : > { %v1446_v1 = vpack.c.bf16 %v1441_v38, %v1440_v14 }
 0x3bc   : > { %v1433_v24 = vpop.xlane.xlu0 %1432 }
 0x3bd   : > { %3939 = vrcp.f32 %v1433_v24 }
 0x3be   : > { %3941 = vrcp.f32 %v1430_v59 }
 0x3bf   : > { %v3936_v15 = vpop.eup %3935 }
 0x3c0   : > { %v1661_v49 = vpop.xlane.xlu1 %1660  ;;  %v3938_v6 = vpop.eup %3937  ;;  %v1443_v3 = vmul.f32 %v3936_v15, %v4570_v60 }
 0x3c1   : > { %v1442_v47 = vmul.f32 %v3938_v6, %v4566_v58  ;;  %v3772_v6 = vld [vmem:[%s5310_s4 + $0x8] sm:$0xff]  }
 0x3c2   : > { %v1664_v63 = vpop.xlane.xlu0 %1663 }
 0x3c3   : > { %v1447_v7 = vpack.c.bf16 %v1443_v3, %v1442_v47  ;;  %3943 = vrcp.f32 %v1664_v63 }
 0x3c4   : > { %v1454_v29 = vpop.permute.xlu1 %1453  ;;  %3945 = vrcp.f32 %v1661_v49 }
 0x3c5   : > { %3602 = vmatpush3.bf16.msra.mxu1 %v1454_v29 }
 0x3c6   : > { %3633 = vmatprep.subr.bf16.mxu1 %v4042_v4 }
 0x3c7   : > { %v3940_v16 = vpop.eup %3939 }
 0x3c8   : > { %3604 = vmatmul.mubr.msk.bf16.vlgmr.msra.gmra.mrb[48].mxu1 %vm893_vm2, %v1446_v1  ;;  %v3942_v62 = vpop.eup %3941  ;;  %v1445_v17 = vmul.f32 %v3940_v16, %v4580_v33 }
 0x3c9   : > { %v1667_v0 = vpop.xlane.xlu0 %1666  ;;  %3607 = vmatprep.mubr.msk.bf16.mxu1 %vm4043_vm0, %v4042_v4  ;;  %v1444_v60 = vmul.f32 %v3942_v62, %v4576_v9  ;;  %v3774_v62 = vld [vmem:[%s5310_s4 + $0x18] sm:$0xff]  }
 0x3cb   : > { %v1448_v58 = vpack.c.bf16 %v1445_v17, %v1444_v60  ;;  %v3775_v60 = vld [vmem:[%s5310_s4 + $0x20] sm:$0xff]  }
 0x3cd   : > { %v1693_v8 = vpop.permute.xlu0 %1692  ;;  %v3944_v31 = vpop.eup %3943 }
 0x3ce   : > { %3634 = vmatpush3.bf16.msra.mxu1 %v1693_v8  ;;  %v3946_v34 = vpop.eup %3945  ;;  %v1684_v9 = vmul.f32 %v3944_v31, %v4595_v40  ;;  %v3773_v8 = vld [vmem:[%s5310_s4 + $0x10] sm:$0xff]  }
 0x3cf   : > { %3635 = vmatprep.subr.bf16.mxu1 %v4042_v4  ;;  %v1683_v43 = vmul.f32 %v3946_v34, %v4587_v46  ;;  %v3777_v34 = vld [vmem:[%s5310_s4 + $0x30] sm:$0xff]  }
 0x3d0   : > { %3608 = vmatmul.mubr.msk.bf16.gmra.mrb[52].mxu1 %vm893_vm2, %v1447_v7 }
 0x3d1   : > { %v1695_v21 = vpop.permute.xlu0 %1694  ;;  %3611 = vmatprep.mubr.msk.bf16.mxu1 %vm4043_vm0, %v4042_v4  ;;  %v1689_v44 = vpack.c.bf16 %v1684_v9, %v1683_v43 }
 0x3d2   : > { %3636 = vmatpush3.bf16.msra.mxu1 %v1695_v21 }
 0x3d3   : > { %3637 = vmatprep.subr.bf16.mxu1 %v4042_v4 }
 0x3d8   : > { %3612 = vmatmul.mubr.msk.bf16.gmra.mrb[56].mxu1 %vm893_vm2, %v1448_v58 }
 0x3d9   : > { %3639 = vmatprep.mubr.msk.bf16.mxu1 %vm4043_vm0, %v4042_v4 }
 0x3f5   : > { %v1670_v20 = vpop.xlane.xlu1 %1669 }
 0x3f6   : > { %3947 = vrcp.f32 %v1670_v20 }
 0x3f7   : > { %3949 = vrcp.f32 %v1667_v0  ;;  %v3771_v0 = vld [vmem:[%s5310_s4] sm:$0xff]  }
 0x3f8   : > { %3652 = vmatpush3.bf16.msra.mxu0 %v3771_v0 }
 0x3f9   : > { %3653 = vmatprep.subr.bf16.mxu0 %v4042_v4 }
 0x3fc   : > { %3654 = vmatpush3.bf16.msra.mxu0 %v3772_v6 }
 0x3fd   : > { %3655 = vmatprep.subr.bf16.mxu0 %v4042_v4 }
 0x400   : > { %v3948_v45 = vpop.eup %3947  ;;  %3656 = vmatpush3.bf16.msra.mxu0 %v3773_v8 }
 0x401   : > { %v3950_v35 = vpop.eup %3949  ;;  %v1686_v40 = vmul.f32 %v3948_v45, %v4626_v23  ;;  %3657 = vmatprep.subr.bf16.mxu0 %v4042_v4 }
 0x402   : > { %v1673_v25 = vpop.xlane.xlu0 %1672  ;;  %v1685_v54 = vmul.f32 %v3950_v35, %v4604_v56 }
 0x404   : > { %v4676_v32 = vpop.f32.mrb[24].mxu1  ;;  %v1690_v50 = vpack.c.bf16 %v1686_v40, %v1685_v54  ;;  %3658 = vmatpush3.bf16.msra.mxu0 %v3774_v62 }
 0x405   : > { %v3533_v33 = vpop.f32.mrb[25].mxu1  ;;  %3659 = vmatprep.subr.bf16.mxu0 %v4042_v4 }
 0x406   : > { %v1676_v41 = vpop.xlane.xlu0 %1675  ;;  %v4678_v22 = vpop.f32.mrb[26].mxu1  ;;  %v3776_v33 = vld [vmem:[%s5310_s4 + $0x28] sm:$0xff]  }
 0x407   : > { %v3534_v42 = vpop.f32.mrb[27].mxu1  ;;  %3951 = vrcp.f32 %v1676_v41 }
 0x408   : > { %3953 = vrcp.f32 %v1673_v25  ;;  %3660 = vmatpush3.bf16.msra.mxu0 %v3775_v60 }
 0x409   : > { %3661 = vmatprep.subr.bf16.mxu0 %v4042_v4 }
 0x40a   : > { %v1697_v27 = vpop.permute.xlu0 %1696 }
 0x40b   : > { %3638 = vmatpush3.bf16.msra.mxu1 %v1697_v27 }
 0x40c   : > { %3662 = vmatpush3.bf16.msra.mxu0 %v3776_v33 }
 0x40d   : > { %3663 = vmatprep.subr.bf16.mxu0 %v4042_v4 }
 0x40e   : > { %3640 = vmatmul.mubr.msk.bf16.vlgmr.msra.gmra.mrb[60].mxu1 %vm893_vm2, %v1689_v44  ;;  %v4683_v51 = vpop.f32.mrb[28].mxu1  ;;  %v3778_v44 = vld [vmem:[%s5310_s4 + $0x38] sm:$0xff]  }
 0x40f   : > { %3643 = vmatprep.mubr.msk.bf16.mxu1 %vm4043_vm0, %v4042_v4  ;;  %v3537_v53 = vpop.f32.mrb[29].mxu1 }
 0x410   : > { %v4688_v57 = vpop.f32.mrb[30].mxu1  ;;  %3664 = vmatpush3.bf16.msra.mxu0 %v3777_v34 }
 0x411   : > { %v3538_v46 = vpop.f32.mrb[31].mxu1  ;;  %v3952_v10 = vpop.eup %3951  ;;  %3665 = vmatprep.subr.bf16.mxu0 %v4042_v4 }
 0x412   : > { %v3954_v26 = vpop.eup %3953  ;;  %v1688_v18 = vmul.f32 %v3952_v10, %v4635_v19 }
 0x413   : > { %v1687_v5 = vmul.f32 %v3954_v26, %v4631_v28 }
 0x414   : > { %3666 = vmatpush3.bf16.msra.mxu0 %v3778_v44 }
 0x415   : > { %v1691_v12 = vpack.c.bf16 %v1688_v18, %v1687_v5 }
 0x416   : > { %3644 = vmatmul.mubr.msk.bf16.gmra.mrb[64].mxu1 %vm893_vm2, %v1690_v50  ;;  %v4692_v11 = vpop.f32.mrb[32].mxu1 }
 0x417   : > { %3647 = vmatprep.mubr.msk.bf16.mxu1 %vm4043_vm0, %v4042_v4  ;;  %v3541_v52 = vpop.f32.mrb[33].mxu1 }
 0x418   : > { %v4697_v48 = vpop.f32.mrb[34].mxu1 }
 0x419   : > { %v3542_v23 = vpop.f32.mrb[35].mxu1 }
 0x41e   : > { %3648 = vmatmul.mubr.msk.bf16.gmra.mrb[68].mxu1 %vm893_vm2, %v1691_v12 }
 0x41f   : > { %2338 = vmatprep.mubr.bf16.mxu1 %v4041_v2 }
 0x475   : > { %v1258_v56 = vpop.f32.mrb[36].mxu1 }
 0x476   : > { %v3569_v55 = vpop.f32.mrb[37].mxu1 }
 0x477   : > { %v1261_v59 = vpop.f32.mrb[38].mxu1 }
 0x478   : > { %v3694_v61 = vpack.i.bf16 %v1261_v59, %v1258_v56  ;;  %v3570_v24 = vpop.f32.mrb[39].mxu1 }
 0x47a   : > { %3695 = vrot.lane.b32.xlu1 %v3694_v61, %s4046_s18 }
 0x47d   : > { %v1266_v49 = vpop.f32.mrb[40].mxu1 }
 0x47e   : > { %v3573_v30 = vpop.f32.mrb[41].mxu1 }
 0x47f   : > { %v1269_v19 = vpop.f32.mrb[42].mxu1 }
 0x480   : > { %v3709_v38 = vpack.i.bf16 %v1269_v19, %v1266_v49  ;;  %v3574_v14 = vpop.f32.mrb[43].mxu1 }
 0x485   : > { %v1274_v63 = vpop.f32.mrb[44].mxu1 }
 0x486   : > { %v3577_v29 = vpop.f32.mrb[45].mxu1 }
 0x487   : > { %v1277_v28 = vpop.f32.mrb[46].mxu1 }
 0x488   : > { %v3724_v1 = vpack.i.bf16 %v1277_v28, %v1274_v63  ;;  %v3578_v15 = vpop.f32.mrb[47].mxu1 }
 0x49b   : > { %v1501_v3 = vpop.f32.mrb[48].mxu1 }
 0x49c   : > { %v3605_v47 = vpop.f32.mrb[49].mxu1 }
 0x49d   : > { %v1504_v7 = vpop.f32.mrb[50].mxu1 }
 0x49e   : > { %v3699_v16 = vpack.i.bf16 %v1504_v7, %v1501_v3  ;;  %v3606_v21 = vpop.f32.mrb[51].mxu1 }
 0x4a0   : > { %3700 = vrot.lane.b32.xlu0 %v3699_v16, %s4045_s17 }
 0x4a3   : > { %v1509_v17 = vpop.f32.mrb[52].mxu1 }
 0x4a4   : > { %v3609_v58 = vpop.f32.mrb[53].mxu1 }
 0x4a5   : > { %v1512_v20 = vpop.f32.mrb[54].mxu1 }
 0x4a6   : > { %v3714_v25 = vpack.i.bf16 %v1512_v20, %v1509_v17  ;;  %v3610_v31 = vpop.f32.mrb[55].mxu1 }
 0x4ab   : > { %v1517_v41 = vpop.f32.mrb[56].mxu1 }
 0x4ac   : > { %v3613_v9 = vpop.f32.mrb[57].mxu1 }
 0x4ad   : > { %v1520_v42 = vpop.f32.mrb[58].mxu1 }
 0x4ae   : > { %v3729_v43 = vpack.i.bf16 %v1520_v42, %v1517_v41  ;;  %v3614_v27 = vpop.f32.mrb[59].mxu1 }
 0x4e1   : > { %v1744_v45 = vpop.f32.mrb[60].mxu1 }
 0x4e2   : > { %v3641_v35 = vpop.f32.mrb[61].mxu1 }
 0x4e3   : > { %v1747_v53 = vpop.f32.mrb[62].mxu1 }
 0x4e4   : > { %v3704_v40 = vpack.i.bf16 %v1747_v53, %v1744_v45  ;;  %v3642_v46 = vpop.f32.mrb[63].mxu1 }
 0x4e6   : > { %3705 = vrot.lane.b32.xlu0 %v3704_v40, %s4044_s16 }
 0x4e9   : > { %v1752_v54 = vpop.f32.mrb[64].mxu1 }
 0x4ea   : > { %3710 = vrot.lane.b32.xlu0 %v3709_v38, %s4046_s18  ;;  %v3645_v50 = vpop.f32.mrb[65].mxu1 }
 0x4eb   : > { %v1755_v10 = vpop.f32.mrb[66].mxu1 }
 0x4ec   : > { %v3719_v26 = vpack.i.bf16 %v1755_v10, %v1752_v54  ;;  %v3646_v52 = vpop.f32.mrb[67].mxu1  ;;  %v3696_v55 = vpop.permute.xlu1 %3695 }
 0x4ed   : > { %v3698_v61 = vunpack.i.h.bf16 %v3696_v55  ;;  %v3697_v24 = vunpack.i.l.bf16 %v3696_v55 }
 0x4ee   : > { %3715 = vrot.lane.b32.xlu0 %v3714_v25, %s4045_s17  ;;  %3720 = vrot.lane.b32.xlu1 %v3719_v26, %s4044_s16 }
 0x4ef   : > { %v1840_v38 = vsel %vm799_vm1, %v4678_v22, %v3698_v61  ;;  %v1839_v14 = vsel %vm799_vm1, %v4676_v32, %v3697_v24 }
 0x4f1   : > { %v1760_v18 = vpop.f32.mrb[68].mxu1 }
 0x4f2   : > { %3725 = vrot.lane.b32.xlu0 %v3724_v1, %s4046_s18  ;;  %3730 = vrot.lane.b32.xlu1 %v3729_v43, %s4045_s17  ;;  %v3649_v23 = vpop.f32.mrb[69].mxu1  ;;  %s5295_s17 = scalar_lea.vmem %s5320_s14, %s3679_s27 }
 0x4f3   : > { %v1763_v5 = vpop.f32.mrb[70].mxu1  ;;  %v4027_v23 = vld [vmem:[%s4201_s15] sm:$0xff] }
 0x4f4   : > { %v3734_v12 = vpack.i.bf16 %v1763_v5, %v1760_v18  ;;  %v3650_v56 = vpop.f32.mrb[71].mxu1 }
 0x4f6   : > { %3735 = vrot.lane.b32.xlu0 %v3734_v12, %s4044_s16  ;;  %v4028_v12 = vld [vmem:[%s4201_s15 + $0x8] sm:$0xff] }
 0x512   : > { %v3701_v59 = vpop.permute.xlu0 %3700 }
 0x513   : > { %v3703_v49 = vunpack.i.h.bf16 %v3701_v59  ;;  %v3702_v30 = vunpack.i.l.bf16 %v3701_v59 }
 0x515   : > { %v1847_v28 = vsel %vm1845_vm3, %v1840_v38, %v3703_v49  ;;  %v1846_v1 = vsel %vm1845_vm3, %v1839_v14, %v3702_v30  ;;  %v4029_v49 = vld [vmem:[%s4201_s15 + $0x10] sm:$0xff]  ;;  %v4030_v14 = vld [vmem:[%s4201_s15 + $0x18] sm:$0xff] }
 0x558   : > { %v3706_v19 = vpop.permute.xlu0 %3705 }
 0x559   : > { %v3708_v63 = vunpack.i.h.bf16 %v3706_v19  ;;  %v3707_v29 = vunpack.i.l.bf16 %v3706_v19 }
 0x55b   : > { %v1854_v15 = vsel %vm1852_vm4, %v1847_v28, %v3708_v63  ;;  %v1853_v0 = vsel %vm1852_vm4, %v1846_v1, %v3707_v29 }
 0x55c   : > { %v1875_v6 = vpack.c.bf16 %v1854_v15, %v1853_v0  ;;  %v3711_v3 = vpop.permute.xlu0 %3710  ;;  %v4031_v0 = vld [vmem:[%s4201_s15 + $0x20] sm:$0xff] }
 0x55d   : > { %v3713_v8 = vunpack.i.h.bf16 %v3711_v3  ;;  %v3712_v47 = vunpack.i.l.bf16 %v3711_v3 }
 0x55e   : > { %3668 = vmatmul.mubr.bf16.vlgmr.msra.gmra.mrb[48].mxu0 %v1875_v6 }
 0x55f   : > { %3671 = vmatprep.mubr.msk.bf16.mxu0 %vm4043_vm0, %v4042_v4  ;;  %v1842_v17 = vsel %vm799_vm1, %v4688_v57, %v3713_v8  ;;  %v1841_v60 = vsel %vm799_vm1, %v4683_v51, %v3712_v47  ;;  %v4032_v47 = vld [vmem:[%s4201_s15 + $0x28] sm:$0xff] }
 0x560   : > { %v3716_v22 = vpop.permute.xlu0 %3715  ;;  %v3721_v32 = vpop.permute.xlu1 %3720 }
 0x561   : > { %v3718_v7 = vunpack.i.h.bf16 %v3716_v22  ;;  %v3717_v16 = vunpack.i.l.bf16 %v3716_v22  ;;  %v3723_v21 = vunpack.i.h.bf16 %v3721_v32  ;;  %v3722_v62 = vunpack.i.l.bf16 %v3721_v32  ;;  %v3779_v32 = vld [vmem:[%s5314_s8] ss:$16 sps:$4 sm:$0xff]  }
 0x563   : > { %v1848_v58 = vsel %vm1845_vm3, %v1841_v60, %v3717_v16  ;;  %v1849_v20 = vsel %vm1845_vm3, %v1842_v17, %v3718_v7  ;;  %v3781_v7 = vld [vmem:[%s5314_s8 + $0x4] ss:$16 sps:$4 sm:$0xff]   ;;  %v3782_v16 = vld [vmem:[%s5314_s8 + $0x8] ss:$16 sps:$4 sm:$0xff]   ;;  %v3790_v17 = vld [vmem:[%s5314_s8 + $0x2c] ss:$16 sps:$4 sm:$0xff]  }
 0x564   : > { %v3726_v25 = vpop.permute.xlu0 %3725  ;;  %v3731_v31 = vpop.permute.xlu1 %3730  ;;  %v1855_v33 = vsel %vm1852_vm4, %v1848_v58, %v3722_v62  ;;  %v1856_v41 = vsel %vm1852_vm4, %v1849_v20, %v3723_v21  ;;  %v3784_v21 = vld [vmem:[%s5314_s8 + $0xc] ss:$16 sps:$4 sm:$0xff]   ;;  %v3787_v62 = vld [vmem:[%s5314_s8 + $0x24] ss:$16 sps:$4 sm:$0xff]   ;;  %2306 = vmatprep.subr.bf16.mxu1 %v3781_v7  ;;  %v3785_v60 = vld [vmem:[%s5314_s8 + $0x20] ss:$16 sps:$4 sm:$0xff]  }
 0x565   : > { %v3728_v34 = vunpack.i.h.bf16 %v3726_v25  ;;  %v3727_v9 = vunpack.i.l.bf16 %v3726_v25  ;;  %v3733_v42 = vunpack.i.h.bf16 %v3731_v31  ;;  %v3732_v43 = vunpack.i.l.bf16 %v3731_v31  ;;  %2369 = vmatprep.subr.bf16.mxu0 %v3784_v21  ;;  %2307 = vmatpush1.bf16.msra.mxu1 %v3779_v32  ;;  %v3788_v58 = vld [vmem:[%s5314_s8 + $0x28] ss:$16 sps:$4 sm:$0xff]  }
 0x566   : > { %v1876_v27 = vpack.c.bf16 %v1856_v41, %v1855_v33  ;;  %2370 = vmatpush1.bf16.msra.mxu0 %v3782_v16  ;;  %2308 = vmatprep.subr.bf16.mxu1 %v3787_v62 }
 0x567   : > { %v1844_v57 = vsel %vm799_vm1, %v4697_v48, %v3728_v34  ;;  %v1843_v51 = vsel %vm799_vm1, %v4692_v11, %v3727_v9  ;;  %v3261_v11 = vld [vmem:[%s5311_s5] ss:$0 sm:$0xff]  ;;  %2371 = vmatprep.subr.bf16.mxu0 %v3790_v17 }
 0x568   : > { %3672 = vmatmul.mubr.bf16.gmra.mrb[52].mxu0 %v1876_v27  ;;  %v3736_v44 = vpop.permute.xlu0 %3735  ;;  %v1851_v53 = vsel %vm1845_vm3, %v1844_v57, %v3733_v42  ;;  %v1850_v40 = vsel %vm1845_vm3, %v1843_v51, %v3732_v43 }
 0x569   : > { %v3738_v45 = vunpack.i.h.bf16 %v3736_v44  ;;  %v3737_v35 = vunpack.i.l.bf16 %v3736_v44  ;;  %3675 = vmatprep.mubr.msk.bf16.mxu0 %vm4043_vm0, %v4042_v4  ;;  %2309 = vmatpush1.bf16.msra.mxu1 %v3785_v60 }
 0x56a   : > { %2372 = vmatpush1.bf16.msra.mxu0 %v3788_v58 }
 0x56b   : > { %v1857_v46 = vsel %vm1852_vm4, %v1850_v40, %v3737_v35  ;;  %v1858_v48 = vsel %vm1852_vm4, %v1851_v53, %v3738_v45 }
 0x56c   : > { %v1877_v54 = vpack.c.bf16 %v1858_v48, %v1857_v46 }
 0x570   : > { %3676 = vmatmul.mubr.bf16.gmra.mrb[56].mxu0 %v1877_v54 }
 0x571   : > { %2401 = vmatprep.mubr.bf16.mxu0 %v4041_v2 }
 0x631   : > { %v1967_v50 = vpop.f32.mrb[48].mxu0 }
 0x632   : > { %v1968_v4 = vadd.f32 %v3261_v11, %v1967_v50  ;;  %v3669_v10 = vpop.f32.mrb[49].mxu0  ;;  %v3793_v50 = vld [vmem:[%s5314_s8 + $0x44] ss:$16 sps:$4 sm:$0xff]  }
 0x633   : > { %v1970_v26 = vpop.f32.mrb[50].mxu0  ;;  %2310 = vmatprep.subr.bf16.mxu1 %v3793_v50 }
 0x634   : > { %v1971_v52 = vadd.f32 %v3261_v11, %v1970_v26  ;;  %v3670_v18 = vpop.f32.mrb[51].mxu0  ;;  %v1990_v5 = vadd.f32 %v4027_v23, %v1968_v4  ;;  %v3796_v4 = vld [vmem:[%s5314_s8 + $0x4c] ss:$16 sps:$4 sm:$0xff]  }
 0x635   : > { %v3794_v18 = vld [vmem:[%s5314_s8 + $0x48] ss:$16 sps:$4 sm:$0xff]   ;;  %2373 = vmatprep.subr.bf16.mxu0 %v3796_v4 }
 0x636   : > { %1998 = vadd.xlane.f32.xlu1 %v1990_v5  ;;  %v1991_v56 = vadd.f32 %v4028_v12, %v1971_v52  ;;  %v3791_v52 = vld [vmem:[%s5314_s8 + $0x40] ss:$16 sps:$4 sm:$0xff]   ;;  %2374 = vmatpush1.bf16.msra.mxu0 %v3794_v18  ;;  %v3802_v12 = vld [vmem:[%s5314_s8 + $0x6c] ss:$16 sps:$4 sm:$0xff]  }
 0x637   : > { %2311 = vmatpush1.bf16.msra.mxu1 %v3791_v52  ;;  %2375 = vmatprep.subr.bf16.mxu0 %v3802_v12 }
 0x638   : > { %2000 = vadd.xlane.f32.xlu0 %v1991_v56 }
 0x63b   : > { %v1975_v55 = vpop.f32.mrb[52].mxu0 }
 0x63c   : > { %v1976_v59 = vadd.f32 %v3261_v11, %v1975_v55  ;;  %v3673_v61 = vpop.f32.mrb[53].mxu0  ;;  %v3800_v55 = vld [vmem:[%s5314_s8 + $0x68] ss:$16 sps:$4 sm:$0xff]  }
 0x63d   : > { %v1978_v24 = vpop.f32.mrb[54].mxu0  ;;  %2376 = vmatpush1.bf16.msra.mxu0 %v3800_v55  ;;  %v3808_v61 = vld [vmem:[%s5314_s8 + $0x8c] ss:$16 sps:$4 sm:$0xff]  }
 0x63e   : > { %v1992_v30 = vadd.f32 %v4029_v49, %v1976_v59  ;;  %v1979_v19 = vadd.f32 %v3261_v11, %v1978_v24  ;;  %v3674_v38 = vpop.f32.mrb[55].mxu0  ;;  %v3805_v59 = vld [vmem:[%s5314_s8 + $0x84] ss:$16 sps:$4 sm:$0xff]   ;;  %v3803_v24 = vld [vmem:[%s5314_s8 + $0x80] ss:$16 sps:$4 sm:$0xff]   ;;  %2377 = vmatprep.subr.bf16.mxu0 %v3808_v61 }
 0x63f   : > { %v3806_v49 = vld [vmem:[%s5314_s8 + $0x88] ss:$16 sps:$4 sm:$0xff]   ;;  %v3809_v38 = vld [vmem:[%s5314_s8 + $0xa0] ss:$16 sps:$4 sm:$0xff]  }
 0x640   : > { %2002 = vadd.xlane.f32.xlu0 %v1992_v30  ;;  %v1993_v63 = vadd.f32 %v4030_v14, %v1979_v19  ;;  %v3814_v19 = vld [vmem:[%s5314_s8 + $0xac] ss:$16 sps:$4 sm:$0xff]   ;;  %v3812_v14 = vld [vmem:[%s5314_s8 + $0xa8] ss:$16 sps:$4 sm:$0xff]  }
 0x641   : > { %2378 = vmatpush1.bf16.msra.mxu0 %v3806_v49 }
 0x642   : > { %2004 = vadd.xlane.f32.xlu1 %v1993_v63  ;;  %2379 = vmatprep.subr.bf16.mxu0 %v3814_v19 }
 0x643   : > { %v1983_v29 = vpop.f32.mrb[56].mxu0 }
 0x644   : > { %v1984_v28 = vadd.f32 %v3261_v11, %v1983_v29  ;;  %v3677_v1 = vpop.f32.mrb[57].mxu0  ;;  %v3820_v29 = vld [vmem:[%s5314_s8 + $0xcc] ss:$16 sps:$4 sm:$0xff]  }
 0x645   : > { %v1986_v15 = vpop.f32.mrb[58].mxu0  ;;  %2380 = vmatpush1.bf16.msra.mxu0 %v3812_v14  ;;  %v3818_v1 = vld [vmem:[%s5314_s8 + $0xc8] ss:$16 sps:$4 sm:$0xff]  }
 0x646   : > { %v1994_v6 = vadd.f32 %v4031_v0, %v1984_v28  ;;  %v1987_v3 = vadd.f32 %v3261_v11, %v1986_v15  ;;  %v3678_v8 = vpop.f32.mrb[59].mxu0  ;;  %v3815_v28 = vld [vmem:[%s5314_s8 + $0xc0] ss:$16 sps:$4 sm:$0xff]   ;;  %2381 = vmatprep.subr.bf16.mxu0 %v3820_v29  ;;  %v3823_v15 = vld [vmem:[%s5314_s8 + $0xe4] ss:$16 sps:$4 sm:$0xff]   ;;  %v3831_v14 = vld [vmem:[%s5316_s10 + $0x48] sm:$0xff]  }
 0x647   : > { %v3826_v0 = vld [vmem:[%s5314_s8 + $0xec] ss:$16 sps:$4 sm:$0xff]  }
 0x648   : > { %2006 = vadd.xlane.f32.xlu0 %v1994_v6  ;;  %v1995_v22 = vadd.f32 %v4032_v47, %v1987_v3  ;;  %v3824_v3 = vld [vmem:[%s5314_s8 + $0xe8] ss:$16 sps:$4 sm:$0xff]  }
 0x649   : > { %2382 = vmatpush1.bf16.msra.mxu0 %v3818_v1  ;;  %v3833_v29 = vld [vmem:[%s5316_s10 + $0x8] sm:$0xff]   ;;  %v3835_v1 = vld [vmem:[%s5316_s10 + $0x50] sm:$0xff]  }
 0x64a   : > { %2008 = vadd.xlane.f32.xlu1 %v1995_v22  ;;  %2383 = vmatprep.subr.bf16.mxu0 %v3826_v0  ;;  %v3837_v0 = vld [vmem:[%s5316_s10 + $0x10] sm:$0xff]  }
 0x64d   : > { %2384 = vmatpush1.bf16.msra.mxu0 %v3824_v3  ;;  %v3839_v3 = vld [vmem:[%s5316_s10 + $0x58] sm:$0xff]  }
 0x6c3   : > { %v1999_v20 = vpop.xlane.xlu1 %1998 }
 0x6c4   : > { %v2011_v25 = vmul.f32 0.0078125, %v1999_v20 }
 0x6c5   : > { %v2001_v31 = vpop.xlane.xlu0 %2000 }
 0x6c6   : > { %v4804_v33 = vsub.f32 %v1990_v5, %v2011_v25  ;;  %v2012_v41 = vmul.f32 0.0078125, %v2001_v31  ;;  %v3799_v5 = vld [vmem:[%s5314_s8 + $0x64] ss:$16 sps:$4 sm:$0xff]   ;;  %v3270_v25 = vld [vmem:[%s5312_s6] ss:$0 sm:$0xff] }
 0x6c7   : > { %2312 = vmatprep.subr.bf16.mxu1 %v3799_v5 }
 0x6c8   : > { %v4806_v34 = vsub.f32 %v1991_v56, %v2012_v41  ;;  %v2023_v9 = vmul.f32 %v4804_v33, %v4804_v33  ;;  %v3797_v56 = vld [vmem:[%s5314_s8 + $0x60] ss:$16 sps:$4 sm:$0xff]  }
 0x6c9   : > { %2313 = vmatpush1.bf16.msra.mxu1 %v3797_v56 }
 0x6ca   : > { %2029 = vadd.xlane.f32.xlu0 %v2023_v9  ;;  %v2024_v42 = vmul.f32 %v4806_v34, %v4806_v34  ;;  %2314 = vmatprep.subr.bf16.mxu1 %v3805_v59 }
 0x6cc   : > { %2031 = vadd.xlane.f32.xlu1 %v2024_v42 }
 0x6cd   : > { %v2003_v43 = vpop.xlane.xlu0 %2002  ;;  %2315 = vmatpush1.bf16.msra.mxu1 %v3803_v24 }
 0x6ce   : > { %v2013_v27 = vmul.f32 0.0078125, %v2003_v43 }
 0x6cf   : > { %v2005_v57 = vpop.xlane.xlu1 %2004 }
 0x6d0   : > { %v4812_v51 = vsub.f32 %v1992_v30, %v2013_v27  ;;  %v2014_v44 = vmul.f32 0.0078125, %v2005_v57  ;;  %v3811_v30 = vld [vmem:[%s5314_s8 + $0xa4] ss:$16 sps:$4 sm:$0xff]  }
 0x6d1   : > { %2316 = vmatprep.subr.bf16.mxu1 %v3811_v30 }
 0x6d2   : > { %v4814_v45 = vsub.f32 %v1993_v63, %v2014_v44  ;;  %v2025_v35 = vmul.f32 %v4812_v51, %v4812_v51  ;;  %2317 = vmatpush1.bf16.msra.mxu1 %v3809_v38  ;;  %v3817_v63 = vld [vmem:[%s5314_s8 + $0xc4] ss:$16 sps:$4 sm:$0xff]   ;;  %v3271_v44 = vld [vmem:[%s5313_s7] ss:$0 sm:$0xff] }
 0x6d3   : > { %2318 = vmatprep.subr.bf16.mxu1 %v3817_v63  ;;  %v3830_v38 = vld [vmem:[%s5316_s10 + $0x80] sm:$0xff]   ;;  %v3832_v63 = vld [vmem:[%s5316_s10 + $0xc8] sm:$0xff]  }
 0x6d4   : > { %2033 = vadd.xlane.f32.xlu0 %v2025_v35  ;;  %v2026_v53 = vmul.f32 %v4814_v45, %v4814_v45 }
 0x6d5   : > { %v2007_v40 = vpop.xlane.xlu0 %2006 }
 0x6d6   : > { %v2015_v46 = vmul.f32 0.0078125, %v2007_v40  ;;  %2035 = vadd.xlane.f32.xlu1 %v2026_v53  ;;  %2319 = vmatpush1.bf16.msra.mxu1 %v3815_v28  ;;  %v3834_v28 = vld [vmem:[%s5316_s10 + $0x88] sm:$0xff]  }
 0x6d7   : > { %v2009_v48 = vpop.xlane.xlu1 %2008  ;;  %2320 = vmatprep.subr.bf16.mxu1 %v3823_v15  ;;  %v3836_v15 = vld [vmem:[%s5316_s10 + $0xd0] sm:$0xff]  }
 0x6d8   : > { %v4820_v54 = vsub.f32 %v1994_v6, %v2015_v46  ;;  %v2016_v11 = vmul.f32 0.0078125, %v2009_v48  ;;  %v3821_v6 = vld [vmem:[%s5314_s8 + $0xe0] ss:$16 sps:$4 sm:$0xff]  }
 0x6da   : > { %v4828_v10 = vsub.f32 %v1995_v22, %v2016_v11  ;;  %v2027_v26 = vmul.f32 %v4820_v54, %v4820_v54  ;;  %2321 = vmatpush1.bf16.msra.mxu1 %v3821_v6  ;;  %v3838_v6 = vld [vmem:[%s5316_s10 + $0x90] sm:$0xff]  }
 0x6dc   : > { %2037 = vadd.xlane.f32.xlu0 %v2027_v26  ;;  %v2028_v23 = vmul.f32 %v4828_v10, %v4828_v10 }
 0x6de   : > { %2039 = vadd.xlane.f32.xlu1 %v2028_v23 }
 0x757   : > { %v2030_v8 = vpop.xlane.xlu0 %2029 }
 0x758   : > { %v2041_v47 = vmul.f32 0.0078125, %v2030_v8  ;;  %v3840_v8 = vld [vmem:[%s5316_s10 + $0xd8] sm:$0xff]  }
 0x759   : > { %v2032_v22 = vpop.xlane.xlu1 %2031 }
 0x75a   : > { %v2047_v32 = vadd.f32 1e-12, %v2041_v47  ;;  %v2042_v7 = vmul.f32 0.0078125, %v2032_v22  ;;  %v3841_v47 = vld [vmem:[%s5316_s10 + $0x18] sm:$0xff]  }
 0x75b   : > { %v3842_v22 = vld [vmem:[%s5316_s10 + $0x98] sm:$0xff]  }
 0x75c   : > { %3955 = vrsqrt.f32 %v2047_v32  ;;  %v2048_v16 = vadd.f32 1e-12, %v2042_v7  ;;  %v3843_v32 = vld [vmem:[%s5316_s10 + $0x60] sm:$0xff]  }
 0x75d   : > { %v3844_v7 = vld [vmem:[%s5316_s10 + $0xe0] sm:$0xff]  }
 0x75e   : > { %3957 = vrsqrt.f32 %v2048_v16  ;;  %v3845_v16 = vld [vmem:[%s5316_s10 + $0x20] sm:$0xff]  }
 0x761   : > { %v2034_v21 = vpop.xlane.xlu0 %2033 }
 0x762   : > { %v2043_v62 = vmul.f32 0.0078125, %v2034_v21  ;;  %v3846_v21 = vld [vmem:[%s5316_s10 + $0xa0] sm:$0xff]  }
 0x763   : > { %v2036_v17 = vpop.xlane.xlu1 %2035 }
 0x764   : > { %v2049_v60 = vadd.f32 1e-12, %v2043_v62  ;;  %v2044_v58 = vmul.f32 0.0078125, %v2036_v17  ;;  %v3847_v62 = vld [vmem:[%s5316_s10 + $0x68] sm:$0xff]  }
 0x765   : > { %v3848_v17 = vld [vmem:[%s5316_s10 + $0xe8] sm:$0xff]  }
 0x766   : > { %v3956_v20 = vpop.eup %3955  ;;  %3959 = vrsqrt.f32 %v2049_v60  ;;  %v2050_v31 = vadd.f32 1e-12, %v2044_v58  ;;  %v3849_v60 = vld [vmem:[%s5316_s10 + $0x28] sm:$0xff]  }
 0x767   : > { %v2059_v41 = vmul.f32 %v3956_v20, %v4804_v33  ;;  %v3850_v58 = vld [vmem:[%s5316_s10 + $0xa8] sm:$0xff]   ;;  %v3851_v20 = vld [vmem:[%s5316_s10 + $0x70] sm:$0xff]  }
 0x768   : > { %v3958_v9 = vpop.eup %3957  ;;  %3961 = vrsqrt.f32 %v2050_v31  ;;  %v3853_v31 = vld [vmem:[%s5316_s10 + $0x30] sm:$0xff]  }
 0x769   : > { %v2071_v42 = vmul.f32 %v3270_v25, %v2059_v41  ;;  %v2060_v43 = vmul.f32 %v3958_v9, %v4806_v34  ;;  %v2038_v27 = vpop.xlane.xlu0 %2037  ;;  %v3854_v41 = vld [vmem:[%s5316_s10 + $0xb0] sm:$0xff]   ;;  %v3855_v9 = vld [vmem:[%s5316_s10 + $0x78] sm:$0xff]  }
 0x76a   : > { %v2045_v57 = vmul.f32 0.0078125, %v2038_v27  ;;  %v3858_v27 = vld [vmem:[%s5316_s10 + $0xb8] sm:$0xff]  }
 0x76b   : > { %v2072_v35 = vmul.f32 %v3270_v25, %v2060_v43  ;;  %v2040_v53 = vpop.xlane.xlu1 %2039  ;;  %v4908_v48 = vadd.f32 %v3271_v44, %v2071_v42  ;;  %v3856_v42 = vld [vmem:[%s5316_s10 + $0xf8] sm:$0xff]  }
 0x76c   : > { %v2051_v40 = vadd.f32 1e-12, %v2045_v57  ;;  %v2046_v46 = vmul.f32 0.0078125, %v2040_v53  ;;  %v3857_v43 = vld [vmem:[%s5316_s10 + $0x38] sm:$0xff]   ;;  %v2124_v57 = vld [vmem:[%s5315_s9] sm:$0xf] }
 0x76d   : > { %v4910_v11 = vadd.f32 %v3271_v44, %v2072_v35  ;;  %v5036_v35 = vrot.slane %v2124_v57, %v529_v37  ;;  %v5040_v53 = vrot.slane %v2124_v57, %v537_v13 }
 0x76e   : > { %3963 = vrsqrt.f32 %v2051_v40  ;;  %v2052_v33 = vadd.f32 1e-12, %v2046_v46  ;;  %v5044_v40 = vrot.slane %v2124_v57, %v533_v39 }
 0x76f   : > { %v2121_v50 = vpack.c.bf16 %v4910_v11, %v4908_v48 }
 0x770   : > { %v3960_v34 = vpop.eup %3959  ;;  %3965 = vrsqrt.f32 %v2052_v33 }
 0x771   : > { %2339 = vmatmul.mubr.bf16.vlgmr.msra.gmra.mrb[72].mxu1 %v2121_v50  ;;  %2402 = vmatmul.mubr.bf16.vlgmr.msra.gmra.mrb[60].mxu0 %v2121_v50  ;;  %v2061_v4 = vmul.f32 %v3960_v34, %v4812_v51 }
 0x772   : > { %v3962_v26 = vpop.eup %3961  ;;  %2348 = vmatprep.mubr.bf16.mxu1 %v4041_v2  ;;  %2411 = vmatprep.mubr.bf16.mxu0 %v4041_v2 }
 0x773   : > { %v2062_v52 = vmul.f32 %v3962_v26, %v4814_v45  ;;  %v2073_v18 = vmul.f32 %v3270_v25, %v2061_v4 }
 0x775   : > { %v2074_v23 = vmul.f32 %v3270_v25, %v2062_v52  ;;  %v4918_v5 = vadd.f32 %v3271_v44, %v2073_v18 }
 0x777   : > { %v4920_v12 = vadd.f32 %v3271_v44, %v2074_v23 }
 0x778   : > { %v3964_v56 = vpop.eup %3963 }
 0x779   : > { %v2122_v55 = vpack.c.bf16 %v4920_v12, %v4918_v5  ;;  %v2063_v59 = vmul.f32 %v3964_v56, %v4820_v54  ;;  %v3827_v54 = vld [vmem:[%s5316_s10 + $0x40] sm:$0xff]  }
 0x77a   : > { %v3966_v51 = vpop.eup %3965  ;;  %3411 = vmatprep.subr.bf16.mxu1 %v3827_v54 }
 0x77b   : > { %2349 = vmatmul.mubr.bf16.gmra.mrb[76].mxu1 %v2122_v55  ;;  %2412 = vmatmul.mubr.bf16.gmra.mrb[64].mxu0 %v2122_v55  ;;  %v2064_v61 = vmul.f32 %v3966_v51, %v4828_v10  ;;  %v2075_v24 = vmul.f32 %v3270_v25, %v2063_v59  ;;  %v3828_v10 = vld [vmem:[%s5316_s10 + $0xc0] sm:$0xff]  }
 0x77c   : > { %2358 = vmatprep.mubr.bf16.mxu1 %v4041_v2  ;;  %2421 = vmatprep.mubr.bf16.mxu0 %v4041_v2  ;;  %v3829_v2 = vld [vmem:[%s5316_s10] sm:$0xff]  }
 0x77d   : > { %v2076_v45 = vmul.f32 %v3270_v25, %v2064_v61  ;;  %v4928_v49 = vadd.f32 %v3271_v44, %v2075_v24  ;;  %3445 = vmatprep.subr.bf16.mxu0 %v3828_v10  ;;  %3412 = vmatpush3.bf16.msra.mxu1 %v3829_v2  ;;  %v3852_v25 = vld [vmem:[%s5316_s10 + $0xf0] sm:$0xff]  }
 0x77e   : > { %3446 = vmatpush3.bf16.msra.mxu0 %v3830_v38  ;;  %3413 = vmatprep.subr.bf16.mxu1 %v3831_v14 }
 0x77f   : > { %v4930_v30 = vadd.f32 %v3271_v44, %v2076_v45  ;;  %3447 = vmatprep.subr.bf16.mxu0 %v3832_v63  ;;  %v2140_v44 = vsub.s32 3, %v4241_v36 }
 0x781   : > { %v2123_v19 = vpack.c.bf16 %v4930_v30, %v4928_v49  ;;  %3414 = vmatpush3.bf16.msra.mxu1 %v3833_v29  ;;  %v5046_v46 = vrot.slane %v2124_v57, %v2140_v44 }
 0x782   : > { %3448 = vmatpush3.bf16.msra.mxu0 %v3834_v28  ;;  %3415 = vmatprep.subr.bf16.mxu1 %v3835_v1 }
 0x783   : > { %2359 = vmatmul.mubr.bf16.gmra.mrb[80].mxu1 %v2123_v19  ;;  %2422 = vmatmul.mubr.bf16.gmra.mrb[68].mxu0 %v2123_v19 }
 0x784   : > { %3449 = vmatprep.subr.bf16.mxu0 %v3836_v15 }
 0x785   : > { %3416 = vmatpush3.bf16.msra.mxu1 %v3837_v0 }
 0x786   : > { %3450 = vmatpush3.bf16.msra.mxu0 %v3838_v6  ;;  %3417 = vmatprep.subr.bf16.mxu1 %v3839_v3 }
 0x787   : > { %3451 = vmatprep.subr.bf16.mxu0 %v3840_v8 }
 0x789   : > { %3418 = vmatpush3.bf16.msra.mxu1 %v3841_v47 }
 0x78a   : > { %3452 = vmatpush3.bf16.msra.mxu0 %v3842_v22  ;;  %3419 = vmatprep.subr.bf16.mxu1 %v3843_v32 }
 0x78b   : > { %3453 = vmatprep.subr.bf16.mxu0 %v3844_v7 }
 0x78d   : > { %3420 = vmatpush3.bf16.msra.mxu1 %v3845_v16 }
 0x78e   : > { %3454 = vmatpush3.bf16.msra.mxu0 %v3846_v21  ;;  %3421 = vmatprep.subr.bf16.mxu1 %v3847_v62 }
 0x78f   : > { %3455 = vmatprep.subr.bf16.mxu0 %v3848_v17 }
 0x791   : > { %3422 = vmatpush3.bf16.msra.mxu1 %v3849_v60 }
 0x792   : > { %3456 = vmatpush3.bf16.msra.mxu0 %v3850_v58  ;;  %3423 = vmatprep.subr.bf16.mxu1 %v3851_v20 }
 0x793   : > { %3457 = vmatprep.subr.bf16.mxu0 %v3852_v25 }
 0x795   : > { %3424 = vmatpush3.bf16.msra.mxu1 %v3853_v31 }
 0x796   : > { %3458 = vmatpush3.bf16.msra.mxu0 %v3854_v41  ;;  %3425 = vmatprep.subr.bf16.mxu1 %v3855_v9 }
 0x797   : > { %3459 = vmatprep.subr.bf16.mxu0 %v3856_v42 }
 0x799   : > { %3426 = vmatpush3.bf16.msra.mxu1 %v3857_v43 }
 0x79a   : > { %3460 = vmatpush3.bf16.msra.mxu0 %v3858_v27 }
 0x844   : > { %v2340_v33 = vpop.f32.mrb[72].mxu1  ;;  %v2403_v50 = vpop.f32.mrb[60].mxu0 }
 0x845   : > { %v2341_v34 = vadd.f32 %v2340_v33, %v5036_v35  ;;  %v2404_v4 = vadd.f32 %v2403_v50, %v5040_v53  ;;  %v2342_v26 = vpop.f32.mrb[73].mxu1  ;;  %v2405_v52 = vpop.f32.mrb[61].mxu0 }
 0x846   : > { %v5051_v37 = vadd.f32 %v2342_v26, %v5044_v40  ;;  %v5054_v13 = vadd.f32 %v2405_v52, %v5046_v46  ;;  %v2344_v18 = vpop.f32.mrb[74].mxu1  ;;  %v2407_v36 = vpop.f32.mrb[62].mxu0 }
 0x847   : > { %v2456_v39 = vmul.f32 0.044715, %v2341_v34  ;;  %v2458_v23 = vmul.f32 0.044715, %v2404_v4  ;;  %v2345_v56 = vadd.f32 %v2344_v18, %v5036_v35  ;;  %v2408_v55 = vadd.f32 %v2407_v36, %v5040_v53  ;;  %v2346_v59 = vpop.f32.mrb[75].mxu1  ;;  %v2409_v51 = vpop.f32.mrb[63].mxu0 }
 0x848   : > { %v5059_v45 = vadd.f32 %v2346_v59, %v5044_v40  ;;  %v2457_v19 = vmul.f32 0.044715, %v5051_v37  ;;  %v2459_v54 = vmul.f32 0.044715, %v5054_v13  ;;  %v5064_v29 = vadd.f32 %v2409_v51, %v5046_v46 }
 0x849   : > { %v2480_v61 = vmul.f32 %v2456_v39, %v2341_v34  ;;  %v2482_v24 = vmul.f32 %v2458_v23, %v2404_v4  ;;  %v2460_v10 = vmul.f32 0.044715, %v2345_v56  ;;  %v2462_v14 = vmul.f32 0.044715, %v2408_v55 }
 0x84a   : > { %v5066_v28 = vmul.f32 0.5, %v2341_v34  ;;  %v2461_v0 = vmul.f32 0.044715, %v5059_v45  ;;  %v2481_v3 = vmul.f32 %v2457_v19, %v5051_v37  ;;  %v2483_v8 = vmul.f32 %v2459_v54, %v5054_v13 }
 0x84b   : > { %v2504_v2 = vmul.f32 %v2480_v61, %v2341_v34  ;;  %v2506_v38 = vmul.f32 %v2482_v24, %v2404_v4  ;;  %v2484_v63 = vmul.f32 %v2460_v10, %v2345_v56  ;;  %v2486_v15 = vmul.f32 %v2462_v14, %v2408_v55 }
 0x84c   : > { %v5071_v7 = vmul.f32 0.5, %v2404_v4  ;;  %v5073_v16 = vmul.f32 0.5, %v2345_v56  ;;  %v5075_v21 = vmul.f32 0.5, %v2408_v55  ;;  %v2463_v20 = vmul.f32 0.044715, %v5064_v29 }
 0x84d   : > { %v2528_v1 = vadd.f32 %v2504_v2, %v2341_v34  ;;  %v2530_v6 = vadd.f32 %v2506_v38, %v2404_v4  ;;  %v2508_v47 = vmul.f32 %v2484_v63, %v2345_v56  ;;  %v2510_v62 = vmul.f32 %v2486_v15, %v2408_v55 }
 0x84e   : > { %v2350_v22 = vpop.f32.mrb[76].mxu1  ;;  %v2413_v32 = vpop.f32.mrb[64].mxu0  ;;  %v2485_v27 = vmul.f32 %v2461_v0, %v5059_v45  ;;  %v5089_v34 = vmul.f32 %v2481_v3, %v5051_v37  ;;  %v5092_v4 = vmul.f32 %v2483_v8, %v5054_v13  ;;  %v5095_v26 = vmul.f32 0.5, %v5051_v37 }
 0x84f   : > { %v2352_v17 = vpop.f32.mrb[77].mxu1  ;;  %v2415_v60 = vpop.f32.mrb[65].mxu0  ;;  %v2532_v58 = vadd.f32 %v2508_v47, %v2345_v56  ;;  %v5079_v25 = vadd.f32 %v2350_v22, %v5036_v35  ;;  %v5082_v31 = vadd.f32 %v2413_v32, %v5040_v53  ;;  %v2552_v42 = vmul.f32 0.7978846, %v2528_v1 }
 0x850   : > { %v2354_v41 = vpop.f32.mrb[78].mxu1  ;;  %v2417_v9 = vpop.f32.mrb[66].mxu0  ;;  %v2534_v43 = vadd.f32 %v2510_v62, %v2408_v55  ;;  %v5086_v57 = vadd.f32 %v2352_v17, %v5044_v40  ;;  %v2554_v50 = vmul.f32 0.7978846, %v2530_v6  ;;  %v5099_v36 = vadd.f32 %v2415_v60, %v5046_v46 }
 0x851   : > { %v2356_v44 = vpop.f32.mrb[79].mxu1  ;;  %v2419_v33 = vpop.f32.mrb[67].mxu0  ;;  %v2556_v52 = vmul.f32 0.7978846, %v2532_v58  ;;  %v2464_v18 = vmul.f32 0.044715, %v5079_v25  ;;  %v5102_v39 = vadd.f32 %v2354_v41, %v5036_v35  ;;  %v2487_v23 = vmul.f32 %v2463_v20, %v5064_v29 }
 0x852   : > { %v2466_v56 = vmul.f32 0.044715, %v5082_v31  ;;  %v5107_v55 = vadd.f32 %v2417_v9, %v5040_v53  ;;  %v5110_v59 = vmul.f32 0.5, %v5059_v45  ;;  %3967 = vtanh.f32 %v2552_v42 }
 0x853   : > { %v2558_v51 = vmul.f32 0.7978846, %v2534_v43  ;;  %v2509_v61 = vmul.f32 %v2485_v27, %v5059_v45  ;;  %v2465_v24 = vmul.f32 0.044715, %v5086_v57  ;;  %3969 = vtanh.f32 %v2554_v50 }
 0x854   : > { %v2467_v19 = vmul.f32 0.044715, %v5099_v36  ;;  %v2468_v54 = vmul.f32 0.044715, %v5102_v39  ;;  %v5117_v10 = vadd.f32 %v2356_v44, %v5044_v40  ;;  %3971 = vtanh.f32 %v2556_v52 }
 0x855   : > { %v2488_v14 = vmul.f32 %v2464_v18, %v5079_v25  ;;  %v2470_v63 = vmul.f32 0.044715, %v5107_v55  ;;  %v5122_v1 = vadd.f32 %v2419_v33, %v5046_v46  ;;  %v2490_v6 = vmul.f32 %v2466_v56, %v5082_v31 }
 0x856   : > { %v2360_v2 = vpop.f32.mrb[80].mxu1  ;;  %v2423_v38 = vpop.f32.mrb[68].mxu0  ;;  %v2469_v3 = vmul.f32 0.044715, %v5117_v10  ;;  %3973 = vtanh.f32 %v2558_v51  ;;  %v2489_v62 = vmul.f32 %v2465_v24, %v5086_v57  ;;  %v2491_v41 = vmul.f32 %v2467_v19, %v5099_v36 }
 0x857   : > { %v2362_v15 = vpop.f32.mrb[81].mxu1  ;;  %v2425_v0 = vpop.f32.mrb[69].mxu0  ;;  %v5127_v8 = vadd.f32 %v2360_v2, %v5036_v35  ;;  %v5130_v47 = vadd.f32 %v2423_v38, %v5040_v53  ;;  %v2471_v17 = vmul.f32 0.044715, %v5122_v1  ;;  %v2492_v9 = vmul.f32 %v2468_v54, %v5102_v39 }
 0x858   : > { %v2364_v22 = vpop.f32.mrb[82].mxu1  ;;  %v2427_v32 = vpop.f32.mrb[70].mxu0  ;;  %v5135_v60 = vadd.f32 %v2362_v15, %v5044_v40  ;;  %v2494_v27 = vmul.f32 %v2470_v63, %v5107_v55  ;;  %v5144_v33 = vadd.f32 %v2425_v0, %v5046_v46  ;;  %v2511_v52 = vmul.f32 %v2487_v23, %v5064_v29 }
 0x859   : > { %v2366_v58 = vpop.f32.mrb[83].mxu1  ;;  %v2429_v20 = vpop.f32.mrb[71].mxu0  ;;  %v2472_v42 = vmul.f32 0.044715, %v5127_v8  ;;  %v2474_v43 = vmul.f32 0.044715, %v5130_v47  ;;  %v5147_v50 = vadd.f32 %v2364_v22, %v5036_v35  ;;  %v5151_v18 = vmul.f32 %v2488_v14, %v5079_v25 }
 0x85a   : > { %v2473_v44 = vmul.f32 0.044715, %v5135_v60  ;;  %v2493_v56 = vmul.f32 %v2469_v3, %v5117_v10  ;;  %v5155_v51 = vadd.f32 %v2427_v32, %v5040_v53  ;;  %v5158_v24 = vmul.f32 %v2490_v6, %v5082_v31 }
 0x85b   : > { %v2495_v19 = vmul.f32 %v2471_v17, %v5122_v1  ;;  %v2496_v54 = vmul.f32 %v2472_v42, %v5127_v8  ;;  %v2498_v35 = vmul.f32 %v2474_v43, %v5130_v47  ;;  %v2513_v2 = vmul.f32 %v2489_v62, %v5086_v57 }
 0x85c   : > { %v2515_v23 = vmul.f32 %v2491_v41, %v5099_v36  ;;  %v2497_v38 = vmul.f32 %v2473_v44, %v5135_v60  ;;  %v2475_v14 = vmul.f32 0.044715, %v5144_v33  ;;  %v3968_v63 = vpop.eup %3967  ;;  %v2516_v53 = vmul.f32 %v2492_v9, %v5102_v39 }
 0x85d   : > { %v5169_v15 = vmul.f32 %v2494_v27, %v5107_v55  ;;  %v2476_v0 = vmul.f32 0.044715, %v5147_v50  ;;  %v2478_v6 = vmul.f32 0.044715, %v5155_v51  ;;  %v3970_v3 = vpop.eup %3969  ;;  %v2517_v22 = vmul.f32 %v2493_v56, %v5117_v10 }
 0x85e   : > { %v5175_v32 = vadd.f32 %v2366_v58, %v5044_v40  ;;  %v2529_v62 = vadd.f32 %v5089_v34, %v5051_v37  ;;  %v2533_v17 = vadd.f32 %v2509_v61, %v5059_v45  ;;  %v3972_v41 = vpop.eup %3971  ;;  %v2519_v9 = vmul.f32 %v2495_v19, %v5122_v1 }
 0x85f   : > { %v5182_v42 = vmul.f32 %v2496_v54, %v5127_v8  ;;  %v5185_v43 = vmul.f32 %v2498_v35, %v5130_v47  ;;  %v5188_v27 = vadd.f32 %v2429_v20, %v5046_v46  ;;  %v2521_v40 = vmul.f32 %v2497_v38, %v5135_v60 }
 0x860   : > { %v2499_v58 = vmul.f32 %v2475_v14, %v5144_v33  ;;  %v2553_v44 = vmul.f32 0.7978846, %v2529_v62  ;;  %v2557_v37 = vmul.f32 0.7978846, %v2533_v17  ;;  %v3974_v34 = vpop.eup %3973  ;;  %v2500_v45 = vmul.f32 %v2476_v0, %v5147_v50 }
 0x861   : > { %v2502_v61 = vmul.f32 %v2478_v6, %v5155_v51  ;;  %v2531_v56 = vadd.f32 %v5092_v4, %v5054_v13  ;;  %v2535_v19 = vadd.f32 %v2511_v52, %v5064_v29  ;;  %v2477_v54 = vmul.f32 0.044715, %v5175_v32 }
 0x862   : > { %3975 = vtanh.f32 %v2553_v44  ;;  %v2600_v46 = vadd.f32 1.0, %v3968_v63  ;;  %v2604_v20 = vadd.f32 1.0, %v3972_v41  ;;  %v2479_v35 = vmul.f32 0.044715, %v5188_v27 }
 0x863   : > { %3977 = vtanh.f32 %v2557_v37  ;;  %v2555_v38 = vmul.f32 0.7978846, %v2531_v56  ;;  %v2559_v14 = vmul.f32 0.7978846, %v2535_v19  ;;  %v2602_v6 = vadd.f32 1.0, %v3970_v3 }
 0x864   : > { %v5200_v62 = vmul.f32 %v2600_v46, %v5066_v28  ;;  %v5203_v0 = vmul.f32 %v2604_v20, %v5073_v16  ;;  %v2606_v4 = vadd.f32 1.0, %v3974_v34  ;;  %v2523_v52 = vmul.f32 %v2499_v58, %v5144_v33 }
 0x865   : > { %v5207_v17 = vmul.f32 %v2500_v45, %v5147_v50  ;;  %3979 = vtanh.f32 %v2555_v38  ;;  %v2537_v63 = vadd.f32 %v2513_v2, %v5086_v57  ;;  %v5213_v28 = vmul.f32 %v2602_v6, %v5071_v7 }
 0x866   : > { %3981 = vtanh.f32 %v2559_v14  ;;  %v2712_v41 = vpack.c.bf16 %v5203_v0, %v5200_v62  ;;  %v5216_v16 = vmul.f32 %v2606_v4, %v5075_v21  ;;  %v2501_v3 = vmul.f32 %v2477_v54, %v5175_v32 }
 0x867   : > { %v2435_v58 = vmul.f32 0.5, %v5054_v13  ;;  %v2541_v44 = vadd.f32 %v2517_v22, %v5117_v10  ;;  %v2561_v37 = vmul.f32 0.7978846, %v2537_v63  ;;  %v2503_v34 = vmul.f32 %v2479_v35, %v5188_v27 }
 0x868   : > { %v2714_v2 = vpack.c.bf16 %v5216_v16, %v5213_v28  ;;  %v2539_v45 = vadd.f32 %v2515_v23, %v5099_v36  ;;  %v2543_v7 = vadd.f32 %v2519_v9, %v5122_v1  ;;  %v5227_v56 = vmul.f32 %v2502_v61, %v5155_v51 }
 0x869   : > { %v2565_v21 = vmul.f32 0.7978846, %v2541_v44  ;;  %3983 = vtanh.f32 %v2561_v37  ;;  %v2536_v13 = vadd.f32 %v5151_v18, %v5079_v25  ;;  %v2439_v22 = vmul.f32 0.5, %v5064_v29 }
 0x86a   : > { %v2563_v19 = vmul.f32 0.7978846, %v2539_v45  ;;  %v2567_v54 = vmul.f32 0.7978846, %v2543_v7  ;;  %v2540_v46 = vadd.f32 %v2516_v53, %v5102_v39  ;;  %v2525_v20 = vmul.f32 %v2501_v3, %v5175_v32 }
 0x86b   : > { %3985 = vtanh.f32 %v2565_v21  ;;  %v2560_v23 = vmul.f32 0.7978846, %v2536_v13  ;;  %v2538_v9 = vadd.f32 %v5158_v24, %v5082_v31  ;;  %v2527_v35 = vmul.f32 %v2503_v34, %v5188_v27 }
 0x86c   : > { %v3976_v61 = vpop.eup %3975  ;;  %3987 = vtanh.f32 %v2563_v19  ;;  %v2564_v38 = vmul.f32 0.7978846, %v2540_v46  ;;  %v2542_v18 = vadd.f32 %v5169_v15, %v5107_v55  ;;  %v2441_v6 = vmul.f32 0.5, %v5086_v57 }
 0x86d   : > { %v3978_v29 = vpop.eup %3977  ;;  %v2601_v14 = vadd.f32 1.0, %v3976_v61  ;;  %3989 = vtanh.f32 %v2567_v54  ;;  %v2562_v53 = vmul.f32 0.7978846, %v2538_v9  ;;  %v2545_v3 = vadd.f32 %v2521_v40, %v5135_v60 }
 0x86e   : > { %v2605_v4 = vadd.f32 1.0, %v3978_v29  ;;  %3991 = vtanh.f32 %v2560_v23  ;;  %v2566_v63 = vmul.f32 0.7978846, %v2542_v18  ;;  %v2445_v37 = vmul.f32 0.5, %v5117_v10 }
 0x86f   : > { %v3980_v24 = vpop.eup %3979  ;;  %v2625_v44 = vmul.f32 %v2601_v14, %v5095_v26  ;;  %3993 = vtanh.f32 %v2564_v38  ;;  %v2549_v34 = vadd.f32 %v2525_v20, %v5175_v32  ;;  %v2569_v57 = vmul.f32 0.7978846, %v2545_v3 }
 0x870   : > { %v3982_v15 = vpop.eup %3981  ;;  %v2629_v45 = vmul.f32 %v2605_v4, %v5110_v59  ;;  %v2603_v7 = vadd.f32 1.0, %v3980_v24  ;;  %3995 = vtanh.f32 %v2562_v53  ;;  %v2443_v13 = vmul.f32 0.5, %v5099_v36 }
 0x871   : > { %v2607_v21 = vadd.f32 1.0, %v3982_v15  ;;  %3997 = vtanh.f32 %v2566_v63  ;;  %v2573_v19 = vmul.f32 0.7978846, %v2549_v34  ;;  %v2447_v54 = vmul.f32 0.5, %v5122_v1 }
 0x872   : > { %v2713_v40 = vpack.c.bf16 %v2629_v45, %v2625_v44  ;;  %3999 = vtanh.f32 %v2569_v57  ;;  %v2547_v26 = vadd.f32 %v2523_v52, %v5144_v33  ;;  %v2627_v46 = vmul.f32 %v2603_v7, %v2435_v58 }
 0x873   : > { %v3984_v10 = vpop.eup %3983  ;;  %v2631_v20 = vmul.f32 %v2607_v21, %v2439_v22  ;;  %4001 = vtanh.f32 %v2573_v19  ;;  %v2551_v59 = vadd.f32 %v2527_v35, %v5188_v27  ;;  %v2440_v9 = vmul.f32 0.5, %v5079_v25 }
 0x874   : > { %2955 = vmatprep.mubr.bf16.mxu1 %v2713_v40  ;;  %v2609_v23 = vadd.f32 1.0, %v3984_v10  ;;  %v2571_v61 = vmul.f32 0.7978846, %v2547_v26  ;;  %v2544_v36 = vadd.f32 %v5182_v42, %v5127_v8  ;;  %v2444_v1 = vmul.f32 0.5, %v5102_v39 }
 0x875   : > { %v3986_v38 = vpop.eup %3985  ;;  %v2715_v18 = vpack.c.bf16 %v2631_v20, %v2627_v46  ;;  %2956 = vmatmul.mubr.bf16.vlgmr.msra.gmra.mrb[84].mxu1 %v2712_v41  ;;  %v2575_v52 = vmul.f32 0.7978846, %v2551_v59  ;;  %v2548_v58 = vadd.f32 %v5207_v17, %v5147_v50  ;;  %v2442_v25 = vmul.f32 0.5, %v5082_v31 }
 0x876   : > { %v3988_v22 = vpop.eup %3987  ;;  %v2613_v35 = vadd.f32 1.0, %v3986_v38  ;;  %4003 = vtanh.f32 %v2571_v61  ;;  %v2568_v29 = vmul.f32 0.7978846, %v2544_v36  ;;  %v2633_v42 = vmul.f32 %v2609_v23, %v2441_v6 }
 0x877   : > { %v3990_v14 = vpop.eup %3989  ;;  %3012 = vmatprep.mubr.bf16.mxu0 %v2715_v18  ;;  %v2611_v53 = vadd.f32 1.0, %v3988_v22  ;;  %4005 = vtanh.f32 %v2575_v52  ;;  %v2572_v4 = vmul.f32 0.7978846, %v2548_v58  ;;  %v2546_v17 = vadd.f32 %v5185_v43, %v5130_v47 }
 0x878   : > { %v3992_v62 = vpop.eup %3991  ;;  %3013 = vmatmul.mubr.bf16.vlgmr.msra.gmra.mrb[72].mxu0 %v2714_v2  ;;  %v2637_v39 = vmul.f32 %v2613_v35, %v2445_v37  ;;  %v2615_v0 = vadd.f32 1.0, %v3990_v14  ;;  %4007 = vtanh.f32 %v2568_v29  ;;  %v2550_v6 = vadd.f32 %v5227_v56, %v5155_v51 }
 0x879   : > { %v3994_v31 = vpop.eup %3993  ;;  %v2635_v41 = vmul.f32 %v2611_v53, %v2443_v13  ;;  %v2608_v63 = vadd.f32 1.0, %v3992_v62  ;;  %4009 = vtanh.f32 %v2572_v4  ;;  %v2570_v15 = vmul.f32 0.7978846, %v2546_v17 }
 0x87a   : > { %v3996_v3 = vpop.eup %3995  ;;  %v2717_v24 = vpack.c.bf16 %v2637_v39, %v2633_v42  ;;  %v2639_v44 = vmul.f32 %v2615_v0, %v2447_v54  ;;  %v2612_v34 = vadd.f32 1.0, %v3994_v31  ;;  %v2446_v2 = vmul.f32 0.5, %v5107_v55 }
 0x87b   : > { %v3998_v28 = vpop.eup %3997  ;;  %v2632_v16 = vmul.f32 %v2608_v63, %v2440_v9  ;;  %v2610_v37 = vadd.f32 1.0, %v3996_v3  ;;  %v2574_v45 = vmul.f32 0.7978846, %v2550_v6  ;;  %4011 = vtanh.f32 %v2570_v15  ;;  %v3304_v63 = vld [vmem:[%s5317_s11] ss:$0 sm:$0xff] }
 0x87c   : > { %v4000_v7 = vpop.eup %3999  ;;  %2963 = vmatprep.mubr.bf16.mxu1 %v2717_v24  ;;  %v2719_v43 = vpack.c.bf16 %v2639_v44, %v2635_v41  ;;  %v2636_v57 = vmul.f32 %v2612_v34, %v2444_v1  ;;  %v2614_v21 = vadd.f32 1.0, %v3998_v28  ;;  %v2449_v56 = vmul.f32 0.5, %v5135_v60 }
 0x87d   : > { %v4002_v13 = vpop.eup %4001  ;;  %v2453_v19 = vmul.f32 0.5, %v5175_v32  ;;  %v2617_v40 = vadd.f32 1.0, %v4000_v7  ;;  %4013 = vtanh.f32 %v2574_v45  ;;  %v2634_v26 = vmul.f32 %v2610_v37, %v2442_v25 }
 0x87e   : > { %3020 = vmatprep.mubr.bf16.mxu0 %v2719_v43  ;;  %v2716_v54 = vpack.c.bf16 %v2636_v57, %v2632_v16  ;;  %v2638_v10 = vmul.f32 %v2614_v21, %v2446_v2  ;;  %v2621_v55 = vadd.f32 1.0, %v4002_v13  ;;  %v2451_v60 = vmul.f32 0.5, %v5144_v33 }
 0x87f   : > { %v2641_v59 = vmul.f32 %v2617_v40, %v2449_v56  ;;  %v2455_v32 = vmul.f32 0.5, %v5188_v27  ;;  %v2448_v52 = vmul.f32 0.5, %v5127_v8  ;;  %v2452_v25 = vmul.f32 0.5, %v5147_v50 }
 0x880   : > { %v4004_v46 = vpop.eup %4003  ;;  %2964 = vmatmul.mubr.bf16.gmra.mrb[88].mxu1 %v2716_v54  ;;  %v2718_v20 = vpack.c.bf16 %v2638_v10, %v2634_v26  ;;  %v2645_v23 = vmul.f32 %v2621_v55, %v2453_v19  ;;  %v2450_v27 = vmul.f32 0.5, %v5130_v47  ;;  %v2454_v0 = vmul.f32 0.5, %v5155_v51 }
 0x881   : > { %v4006_v9 = vpop.eup %4005  ;;  %v2619_v61 = vadd.f32 1.0, %v4004_v46 }
 0x882   : > { %v4008_v36 = vpop.eup %4007  ;;  %3021 = vmatmul.mubr.bf16.gmra.mrb[76].mxu0 %v2718_v20  ;;  %v2721_v38 = vpack.c.bf16 %v2645_v23, %v2641_v59  ;;  %v2623_v18 = vadd.f32 1.0, %v4006_v9 }
 0x883   : > { %v4010_v1 = vpop.eup %4009  ;;  %v2616_v58 = vadd.f32 1.0, %v4008_v36  ;;  %v2643_v22 = vmul.f32 %v2619_v61, %v2451_v60 }
 0x884   : > { %2971 = vmatprep.mubr.bf16.mxu1 %v2721_v38  ;;  %v2647_v35 = vmul.f32 %v2623_v18, %v2455_v32  ;;  %v2620_v29 = vadd.f32 1.0, %v4010_v1 }
 0x885   : > { %v4012_v14 = vpop.eup %4011  ;;  %v2640_v53 = vmul.f32 %v2616_v58, %v2448_v52 }
 0x886   : > { %v2723_v42 = vpack.c.bf16 %v2647_v35, %v2643_v22  ;;  %v2644_v4 = vmul.f32 %v2620_v29, %v2452_v25  ;;  %v2618_v39 = vadd.f32 1.0, %v4012_v14 }
 0x887   : > { %v4014_v62 = vpop.eup %4013 }
 0x888   : > { %3028 = vmatprep.mubr.bf16.mxu0 %v2723_v42  ;;  %v2720_v33 = vpack.c.bf16 %v2644_v4, %v2640_v53  ;;  %v2622_v8 = vadd.f32 1.0, %v4014_v62  ;;  %v2642_v17 = vmul.f32 %v2618_v39, %v2450_v27 }
 0x88a   : > { %2972 = vmatmul.mubr.bf16.gmra.mrb[92].mxu1 %v2720_v33  ;;  %v2646_v31 = vmul.f32 %v2622_v8, %v2454_v0 }
 0x88c   : > { %v2722_v41 = vpack.c.bf16 %v2646_v31, %v2642_v17 }
 0x88e   : > { %3029 = vmatmul.mubr.bf16.gmra.mrb[80].mxu0 %v2722_v41 }
 0x948   : > { %v3427_v50 = vpop.f32.mrb[84].mxu1 }
 0x949   : > { %v3428_v6 = vpop.f32.mrb[85].mxu1 }
 0x94a   : > { %v3429_v3 = vadd.f32 %v3428_v6, %v3427_v50  ;;  %v3430_v24 = vpop.f32.mrb[86].mxu1 }
 0x94b   : > { %v3461_v44 = vpop.f32.mrb[72].mxu0  ;;  %v3431_v34 = vpop.f32.mrb[87].mxu1 }
 0x94c   : > { %v2958_v15 = vadd.f32 %v3429_v3, %v3304_v63  ;;  %v3462_v47 = vpop.f32.mrb[73].mxu0  ;;  %v3432_v28 = vadd.f32 %v3431_v34, %v3430_v24 }
 0x94d   : > { %v3463_v51 = vadd.f32 %v3462_v47, %v3461_v44  ;;  %v3464_v16 = vpop.f32.mrb[74].mxu0 }
 0x94e   : > { %v2961_v2 = vadd.f32 %v3432_v28, %v3304_v63  ;;  %v3465_v37 = vpop.f32.mrb[75].mxu0 }
 0x94f   : > { %v3015_v45 = vadd.f32 %v3463_v51, %v2958_v15  ;;  %v3466_v7 = vadd.f32 %v3465_v37, %v3464_v16 }
 0x951   : > { %v3018_v43 = vadd.f32 %v3466_v7, %v2961_v2  ;;  %v3037_v57 = vadd.f32 %v3015_v45, %v4908_v48 }
 0x953   : > { %v3433_v21 = vpop.f32.mrb[88].mxu1  ;;  %3045 = vadd.xlane.f32.xlu0 %v3037_v57  ;;  %v3038_v13 = vadd.f32 %v3018_v43, %v4910_v11 }
 0x954   : > { %v3434_v56 = vpop.f32.mrb[89].mxu1 }
 0x955   : > { %v3467_v19 = vpop.f32.mrb[76].mxu0  ;;  %v3435_v40 = vadd.f32 %v3434_v56, %v3433_v21  ;;  %v3436_v54 = vpop.f32.mrb[90].mxu1  ;;  %3047 = vadd.xlane.f32.xlu1 %v3038_v13 }
 0x956   : > { %v3468_v26 = vpop.f32.mrb[77].mxu0  ;;  %v3437_v10 = vpop.f32.mrb[91].mxu1 }
 0x957   : > { %v2966_v55 = vadd.f32 %v3435_v40, %v3304_v63  ;;  %v3469_v46 = vadd.f32 %v3468_v26, %v3467_v19  ;;  %v3470_v20 = vpop.f32.mrb[78].mxu0  ;;  %v3438_v59 = vadd.f32 %v3437_v10, %v3436_v54 }
 0x958   : > { %v3471_v23 = vpop.f32.mrb[79].mxu0 }
 0x959   : > { %v3023_v9 = vadd.f32 %v3469_v46, %v2966_v55  ;;  %v2969_v61 = vadd.f32 %v3438_v59, %v3304_v63  ;;  %v3472_v36 = vadd.f32 %v3471_v23, %v3470_v20  ;;  %v3337_v46 = vld [vmem:[%s5318_s12] ss:$0 sm:$0xff] }
 0x95b   : > { %v3026_v48 = vadd.f32 %v3472_v36, %v2969_v61  ;;  %v3039_v38 = vadd.f32 %v3023_v9, %v4918_v5  ;;  %v3338_v9 = vld [vmem:[%s5319_s13] ss:$0 sm:$0xff] }
 0x95d   : > { %v3439_v60 = vpop.f32.mrb[92].mxu1  ;;  %3049 = vadd.xlane.f32.xlu0 %v3039_v38  ;;  %v3040_v11 = vadd.f32 %v3026_v48, %v4920_v12 }
 0x95e   : > { %v3440_v32 = vpop.f32.mrb[93].mxu1 }
 0x95f   : > { %v3441_v18 = vadd.f32 %v3440_v32, %v3439_v60  ;;  %v3442_v1 = vpop.f32.mrb[94].mxu1  ;;  %3051 = vadd.xlane.f32.xlu1 %v3040_v11 }
 0x960   : > { %v3443_v52 = vpop.f32.mrb[95].mxu1 }
 0x961   : > { %v3473_v58 = vpop.f32.mrb[80].mxu0  ;;  %v2974_v22 = vadd.f32 %v3441_v18, %v3304_v63  ;;  %v3444_v35 = vadd.f32 %v3443_v52, %v3442_v1 }
 0x962   : > { %v3474_v25 = vpop.f32.mrb[81].mxu0 }
 0x963   : > { %v3475_v29 = vadd.f32 %v3474_v25, %v3473_v58  ;;  %v3476_v14 = vpop.f32.mrb[82].mxu0  ;;  %v2977_v42 = vadd.f32 %v3444_v35, %v3304_v63 }
 0x964   : > { %v3477_v53 = vpop.f32.mrb[83].mxu0 }
 0x965   : > { %v3031_v4 = vadd.f32 %v3475_v29, %v2974_v22  ;;  %v3478_v62 = vadd.f32 %v3477_v53, %v3476_v14 }
 0x967   : > { %v3034_v5 = vadd.f32 %v3478_v62, %v2977_v42  ;;  %v3041_v39 = vadd.f32 %v3031_v4, %v4928_v49 }
 0x969   : > { %3053 = vadd.xlane.f32.xlu0 %v3041_v39  ;;  %v3042_v12 = vadd.f32 %v3034_v5, %v4930_v30 }
 0x96b   : > { %3055 = vadd.xlane.f32.xlu1 %v3042_v12 }
 0x9e0   : > { %v3046_v33 = vpop.xlane.xlu0 %3045 }
 0x9e1   : > { %v3057_v27 = vmul.f32 0.0078125, %v3046_v33 }
 0x9e2   : > { %v3048_v0 = vpop.xlane.xlu1 %3047 }
 0x9e3   : > { %v3063_v8 = vsub.f32 %v3037_v57, %v3057_v27  ;;  %v3058_v17 = vmul.f32 0.0078125, %v3048_v0 }
 0x9e5   : > { %v3064_v31 = vsub.f32 %v3038_v13, %v3058_v17  ;;  %v3069_v41 = vmul.f32 %v3063_v8, %v3063_v8 }
 0x9e7   : > { %3075 = vadd.xlane.f32.xlu0 %v3069_v41  ;;  %v3070_v50 = vmul.f32 %v3064_v31, %v3064_v31 }
 0x9e9   : > { %3077 = vadd.xlane.f32.xlu1 %v3070_v50 }
 0x9ea   : > { %v3050_v63 = vpop.xlane.xlu0 %3049 }
 0x9eb   : > { %v3059_v6 = vmul.f32 0.0078125, %v3050_v63 }
 0x9ec   : > { %v3052_v3 = vpop.xlane.xlu1 %3051 }
 0x9ed   : > { %v3065_v24 = vsub.f32 %v3039_v38, %v3059_v6  ;;  %v3060_v44 = vmul.f32 0.0078125, %v3052_v3 }
 0x9ef   : > { %v3066_v49 = vsub.f32 %v3040_v11, %v3060_v44  ;;  %v3071_v34 = vmul.f32 %v3065_v24, %v3065_v24 }
 0x9f1   : > { %3079 = vadd.xlane.f32.xlu0 %v3071_v34  ;;  %v3072_v30 = vmul.f32 %v3066_v49, %v3066_v49 }
 0x9f3   : > { %3081 = vadd.xlane.f32.xlu1 %v3072_v30 }
 0x9f6   : > { %v3054_v15 = vpop.xlane.xlu0 %3053 }
 0x9f7   : > { %v3061_v47 = vmul.f32 0.0078125, %v3054_v15 }
 0x9f8   : > { %v3056_v28 = vpop.xlane.xlu1 %3055 }
 0x9f9   : > { %v3067_v51 = vsub.f32 %v3041_v39, %v3061_v47  ;;  %v3062_v16 = vmul.f32 0.0078125, %v3056_v28 }
 0x9fb   : > { %v3068_v2 = vsub.f32 %v3042_v12, %v3062_v16  ;;  %v3073_v37 = vmul.f32 %v3067_v51, %v3067_v51 }
 0x9fd   : > { %3083 = vadd.xlane.f32.xlu0 %v3073_v37  ;;  %v3074_v45 = vmul.f32 %v3068_v2, %v3068_v2 }
 0x9ff   : > { %3085 = vadd.xlane.f32.xlu1 %v3074_v45 }
 0xa74   : > { %v3076_v7 = vpop.xlane.xlu0 %3075 }
 0xa75   : > { %v3087_v43 = vmul.f32 0.0078125, %v3076_v7 }
 0xa76   : > { %v3078_v57 = vpop.xlane.xlu1 %3077 }
 0xa77   : > { %v3093_v21 = vadd.f32 1e-12, %v3087_v43  ;;  %v3088_v13 = vmul.f32 0.0078125, %v3078_v57 }
 0xa79   : > { %4015 = vrsqrt.f32 %v3093_v21  ;;  %v3094_v56 = vadd.f32 1e-12, %v3088_v13 }
 0xa7b   : > { %4017 = vrsqrt.f32 %v3094_v56 }
 0xa7e   : > { %v3080_v19 = vpop.xlane.xlu0 %3079 }
 0xa7f   : > { %v3089_v40 = vmul.f32 0.0078125, %v3080_v19 }
 0xa80   : > { %v3082_v54 = vpop.xlane.xlu1 %3081 }
 0xa81   : > { %v3095_v26 = vadd.f32 1e-12, %v3089_v40  ;;  %v3090_v10 = vmul.f32 0.0078125, %v3082_v54 }
 0xa83   : > { %v4016_v55 = vpop.eup %4015  ;;  %4019 = vrsqrt.f32 %v3095_v26  ;;  %v3096_v20 = vadd.f32 1e-12, %v3090_v10 }
 0xa84   : > { %v3105_v59 = vmul.f32 %v4016_v55, %v3063_v8 }
 0xa85   : > { %v4018_v23 = vpop.eup %4017  ;;  %4021 = vrsqrt.f32 %v3096_v20 }
 0xa86   : > { %v3117_v61 = vmul.f32 %v3337_v46, %v3105_v59  ;;  %v3106_v36 = vmul.f32 %v4018_v23, %v3064_v31 }
 0xa88   : > { %v3129_v48 = vadd.f32 %v3338_v9, %v3117_v61  ;;  %v3118_v38 = vmul.f32 %v3337_v46, %v3106_v36 }
 0xa8a   : > { %3135 = vst [vmem:[%s5295_s17] sm:$0xff] %v3129_v48  ;;  %v3130_v60 = vadd.f32 %v3338_v9, %v3118_v38  ;;  %v3084_v11 = vpop.xlane.xlu0 %3083 }
 0xa8b   : > { %v3091_v32 = vmul.f32 0.0078125, %v3084_v11 }
 0xa8c   : > { %3136 = vst [vmem:[%s5295_s17 + $0x8] sm:$0xff] %v3130_v60  ;;  %v3086_v18 = vpop.xlane.xlu1 %3085 }
 0xa8d   : > { %v4020_v1 = vpop.eup %4019  ;;  %v3097_v52 = vadd.f32 1e-12, %v3091_v32  ;;  %v3092_v58 = vmul.f32 0.0078125, %v3086_v18 }
 0xa8e   : > { %v3107_v22 = vmul.f32 %v4020_v1, %v3065_v24 }
 0xa8f   : > { %v4022_v35 = vpop.eup %4021  ;;  %4023 = vrsqrt.f32 %v3097_v52  ;;  %v3098_v25 = vadd.f32 1e-12, %v3092_v58 }
 0xa90   : > { %v3119_v29 = vmul.f32 %v3337_v46, %v3107_v22  ;;  %v3108_v14 = vmul.f32 %v4022_v35, %v3066_v49 }
 0xa91   : > { %4025 = vrsqrt.f32 %v3098_v25 }
 0xa92   : > { %v3131_v42 = vadd.f32 %v3338_v9, %v3119_v29  ;;  %v3120_v53 = vmul.f32 %v3337_v46, %v3108_v14 }
 0xa94   : > { %3137 = vst [vmem:[%s5295_s17 + $0x10] sm:$0xff] %v3131_v42  ;;  %v3132_v4 = vadd.f32 %v3338_v9, %v3120_v53 }
 0xa96   : > { %3138 = vst [vmem:[%s5295_s17 + $0x18] sm:$0xff] %v3132_v4 }
 0xa99   : > { %v4024_v62 = vpop.eup %4023 }
 0xa9a   : > { %v3109_v5 = vmul.f32 %v4024_v62, %v3067_v51 }
 0xa9b   : > { %v4026_v39 = vpop.eup %4025 }
 0xa9c   : > { %v3121_v12 = vmul.f32 %v3337_v46, %v3109_v5  ;;  %v3110_v33 = vmul.f32 %v4026_v39, %v3068_v2 }
 0xa9e   : > { %v3133_v27 = vadd.f32 %v3338_v9, %v3121_v12  ;;  %v3122_v0 = vmul.f32 %v3337_v46, %v3110_v33 }
 0xaa0   : > { %3139 = vst [vmem:[%s5295_s17 + $0x20] sm:$0xff] %v3133_v27  ;;  %v3134_v8 = vadd.f32 %v3338_v9, %v3122_v0 }
 0xaa2   : > { %3140 = vst [vmem:[%s5295_s17 + $0x28] sm:$0xff] %v3134_v8 }
 0xaa3 PF: > { %s24_s29 = sadd.s32 1, %s4039_s29  }
 0xaa4   : > { %p21_p4 = scmp.ge.s32.totalorder %s24_s29, 4  }
 0xaa6   :  { %23 = sbr.rel (!%p21_p4) target bundleno = 1 (0x1), region = 109 }

</bundles_post_ra>
